<compile_context>
chip_gen: v6e
topology: v6e:2x2x1
jax: 0.10.0
libtpu: 0.0.40
codegen_flags: <defaults>
</compile_context>

<pallas_src>
import numpy as np
import jax
import jax.numpy as jnp
from jax import lax
from jax.experimental import pallas as pl
from jax.experimental.pallas import tpu as pltpu

N_FFT = 512
N_HFFT = 257
HOP = N_FFT // 4          # torch.stft default hop_length = n_fft // 4
FH = N_FFT // 2           # 256 packed frequency lanes (Nyquist packed into Im[0])


def _dss_kernel(frames_ref, mask_ref, wf_ref, wia_ref, wib_ref, yt_ref):
    """Fused windowed rDFT -> complex mask -> windowed inverse rDFT.

    frames: (TM, 512)  bf16  (analysis window baked into wf)
    mask  : (TM, 512)  bf16  [Re M[0..255] | Re M[256], Im M[1..255]]
    wf    : (512, 512) bf16  [win*cos(0..255) | win*(-1)^n, -win*sin(1..255)]
    wia   : (256, 512) bf16  inverse rows for the real half (incl. DC)
    wib   : (256, 512) bf16  inverse rows for [Nyquist real | imag 1..255]
    yt    : (TM, 512)  bf16  windowed inverse frames (OLA in wrapper)
    """
    spec = jnp.dot(frames_ref[...], wf_ref[...],
                   preferred_element_type=jnp.float32)        # (TM, 512)
    m = mask_ref[...].astype(jnp.float32)

    sre = spec[:, :FH]     # Re X[0..255]
    sB = spec[:, FH:]      # col0 = Re X[256] (Nyquist), cols 1..255 = Im X[1..255]
    mre = m[:, :FH]        # Re M[0..255]
    mB = m[:, FH:]         # col0 = Re M[256],           cols 1..255 = Im M[1..255]

    lane = lax.broadcasted_iota(jnp.int32, sre.shape, 1)
    not0 = lane > 0
    sB0 = jnp.where(not0, sB, 0.0)
    mB0 = jnp.where(not0, mB, 0.0)

    out_re = sre * mre - sB0 * mB0                 # Re(X*M)[0..255]
    out_b = sre * mB0 + sB0 * mre                  # Im(X*M)[1..255]; col0 == 0
    out_b = jnp.where(not0, out_b, sB * mB)        # col0 = Re(X*M)[256]
    # Im(X*M) at DC and Nyquist are ignored, matching torch.fft.irfft / istft.

    yt = jnp.dot(out_re.astype(jnp.bfloat16), wia_ref[...],
                 preferred_element_type=jnp.float32)
    yt = yt + jnp.dot(out_b.astype(jnp.bfloat16), wib_ref[...],
                      preferred_element_type=jnp.float32)
    yt_ref[...] = yt.astype(yt_ref.dtype)


def _build_dft_matrices():
    n = np.arange(N_FFT)
    k = np.arange(FH)                                          # 0..255
    win = 0.5 * (1.0 - np.cos(2.0 * np.pi * n / N_FFT))        # periodic Hann
    ang = 2.0 * np.pi * np.outer(n, k) / N_FFT                 # (512, 256)

    # forward: spec = frames @ Wf -> [Re X[0..255] | ReX[256], Im X[1..255]]
    wf = np.zeros((N_FFT, N_FFT), np.float32)
    wf[:, :FH] = win[:, None] * np.cos(ang)
    wf[:, FH:] = -win[:, None] * np.sin(ang)                   # col FH is 0 (k=0)
    wf[:, FH] = win * np.cos(np.pi * n)                        # pack Nyquist real

    # inverse (one-sided weights + 1/N + synthesis window baked in)
    wk = np.ones(FH)
    wk[1:] = 2.0
    wia = (wk[:, None] * np.cos(ang.T)) / N_FFT * win[None, :]   # Re rows 0..255
    wib = -(wk[:, None] * np.sin(ang.T)) / N_FFT * win[None, :]  # Im rows 1..255
    wib[0, :] = np.cos(np.pi * n) / N_FFT * win                  # Nyquist real row
    return win, wf.astype(np.float32), wia.astype(np.float32), wib.astype(np.float32)


def _pick_tm(M):
    # Big tiles (>=512 ~ 85% of roofline) but keep >=2 blocks for v7x megacore.
    tm = min(512, max(128, ((M // 2) // 128) * 128))
    return tm


def dss_output(noisy, estim):
    """JAX/Pallas equivalent of DSS.output() with do_masking=True."""
    B, C, L = noisy.shape
    Be, two, F, T_e = estim.shape
    assert Be == B and two == 2 and F == N_HFFT

    win_np, wf_np, wia_np, wib_np = _build_dft_matrices()

    # --- glue: center (reflect) padding + framing, as torch.stft does ---
    x0 = noisy[:, 0, :].astype(jnp.bfloat16)
    x_pad = jnp.pad(x0, ((0, 0), (N_FFT // 2, N_FFT // 2)), mode='reflect')
    L_pad = L + N_FFT
    T_stft = 1 + (L_pad - N_FFT) // HOP
    assert T_e <= T_stft, "estim time dim exceeds STFT frame count"
    T = T_e                                                    # spec[:, :, :T]
    idx = np.arange(T)[:, None] * HOP + np.arange(N_FFT)[None, :]
    frames = x_pad[:, idx].reshape(B * T, N_FFT)               # bf16

    # --- glue: mask (B,2,F,T) -> (B*T, 512) packed [Re 0..255 | ReNyq, Im 1..255]
    e_bf = estim.astype(jnp.bfloat16)                          # cast BEFORE transpose
    mre_t = jnp.transpose(e_bf[:, 0, :, :T], (0, 2, 1))        # (B, T, 257)
    mim_t = jnp.transpose(e_bf[:, 1, :, :T], (0, 2, 1))        # (B, T, 257)
    mask = jnp.concatenate(
        [mre_t[..., :FH], mre_t[..., FH:FH + 1], mim_t[..., 1:FH]], axis=-1)
    mask = mask.reshape(B * T, N_FFT)                          # (B*T, 512) bf16

    # --- row tiling over B*T frames ---
    M = B * T
    TM = _pick_tm(M)
    n_blk = pl.cdiv(M, TM)
    M_pad = n_blk * TM
    if M_pad != M:
        frames = jnp.pad(frames, ((0, M_pad - M), (0, 0)))
        mask = jnp.pad(mask, ((0, M_pad - M), (0, 0)))

    yt = pl.pallas_call(
        _dss_kernel,
        out_shape=jax.ShapeDtypeStruct((M_pad, N_FFT), jnp.bfloat16),
        grid_spec=pltpu.PrefetchScalarGridSpec(
            num_scalar_prefetch=0,
            grid=(n_blk,),
            in_specs=[
                pl.BlockSpec((TM, N_FFT), lambda i: (i, 0)),
                pl.BlockSpec((TM, N_FFT), lambda i: (i, 0)),
                pl.BlockSpec((N_FFT, N_FFT), lambda i: (0, 0)),
                pl.BlockSpec((FH, N_FFT), lambda i: (0, 0)),
                pl.BlockSpec((FH, N_FFT), lambda i: (0, 0)),
            ],
            out_specs=pl.BlockSpec((TM, N_FFT), lambda i: (i, 0)),
        ),
        compiler_params=pltpu.CompilerParams(
            dimension_semantics=("parallel",),
            vmem_limit_bytes=32 * 1024 * 1024),
    )(frames, mask,
      jnp.asarray(wf_np, jnp.bfloat16),
      jnp.asarray(wia_np, jnp.bfloat16),
      jnp.asarray(wib_np, jnp.bfloat16))

    # --- glue: vectorized overlap-add in f32 (HOP = N_FFT/4 -> 4 shifted adds)
    yt_f = yt[:M].astype(jnp.float32).reshape(B, T, 4, HOP)
    L_ola = (T + 3) * HOP
    y_ola = jnp.zeros((B, T + 3, HOP), jnp.float32)
    for j in range(4):
        y_ola = y_ola.at[:, j:j + T, :].add(yt_f[:, :, j, :])
    y_ola = y_ola.reshape(B, L_ola)

    # --- glue: istft envelope normalization (input-independent) + trim ---
    wsq = np.zeros(L_ola, dtype=np.float64)
    for t in range(T):
        wsq[t * HOP:t * HOP + N_FFT] += win_np ** 2
    y = y_ola / jnp.maximum(jnp.asarray(wsq, jnp.float32)[None, :], 1e-11)
    need = N_FFT // 2 + L
    if L_ola < need:
        y = jnp.pad(y, ((0, 0), (0, need - L_ola)))
    y = y[:, N_FFT // 2:N_FFT // 2 + L]                        # length = L
    return y


if __name__ == "__main__":
    key = jax.random.PRNGKey(0)
    k1, k2 = jax.random.split(key)
    B, C, L = 2, 5, 1024
    T = 1 + L // HOP                                           # 9 frames
    noisy = jax.random.normal(k1, (B, C, L), dtype=jnp.float32)
    estim = 0.1 * jax.random.normal(k2, (B, 2, N_HFFT, T), dtype=jnp.float32)

    out = dss_output(noisy, estim)
    out = jax.block_until_ready(out)
    assert out.shape == (B, L) and out.dtype == jnp.float32
    assert bool(jnp.all(jnp.isfinite(out)))
    print("KERNEL_OK")
</pallas_src>

<mosaic_0001>
module attributes {stable_mosaic.version = 11 : i64} {
  func.func @_dss_kernel(%arg0: i32, %arg1: memref<128x512xbf16, #tpu.memory_space<vmem>>, %arg2: memref<128x512xbf16, #tpu.memory_space<vmem>>, %arg3: memref<512x512xbf16, #tpu.memory_space<vmem>>, %arg4: memref<256x512xbf16, #tpu.memory_space<vmem>>, %arg5: memref<256x512xbf16, #tpu.memory_space<vmem>>, %arg6: memref<128x512xbf16, #tpu.memory_space<vmem>>) attributes {dimension_semantics = [#tpu.dimension_semantics<parallel>], iteration_bounds = array<i64: 1>, scalar_prefetch = 0 : i64, scratch_operands = 0 : i64, tpu.core_type = #tpu.core_type<tc>, window_params = [{transform_indices = @transform_0, window_bounds = array<i64: 128, 512>}, {transform_indices = @transform_1, window_bounds = array<i64: 128, 512>}, {pipeline_mode = #tpu.pipeline_mode<synchronous>, transform_indices = @transform_2, window_bounds = array<i64: 512, 512>}, {pipeline_mode = #tpu.pipeline_mode<synchronous>, transform_indices = @transform_3, window_bounds = array<i64: 256, 512>}, {pipeline_mode = #tpu.pipeline_mode<synchronous>, transform_indices = @transform_4, window_bounds = array<i64: 256, 512>}, {transform_indices = @transform_5, window_bounds = array<i64: 128, 512>}]} {
    %c0 = arith.constant 0 : index
    %c0_0 = arith.constant 0 : index
    %0 = vector.load %arg1[%c0, %c0_0] : memref<128x512xbf16, #tpu.memory_space<vmem>>, vector<128x512xbf16>
    %c0_1 = arith.constant 0 : index
    %c0_2 = arith.constant 0 : index
    %1 = vector.load %arg3[%c0_1, %c0_2] : memref<512x512xbf16, #tpu.memory_space<vmem>>, vector<512x512xbf16>
    %cst = arith.constant dense<0.000000e+00> : vector<128x512xf32>
    %2 = tpu.matmul %0, %1, %cst {dimension_numbers = #tpu.dot_dimension_numbers<[1], [0], [0], [1], [0, 0, 1, 1], [], []>} : vector<128x512xbf16>, vector<512x512xbf16>, vector<128x512xf32> -> vector<128x512xf32>
    %c0_3 = arith.constant 0 : index
    %c0_4 = arith.constant 0 : index
    %3 = vector.load %arg2[%c0_3, %c0_4] : memref<128x512xbf16, #tpu.memory_space<vmem>>, vector<128x512xbf16>
    %4 = arith.extf %3 : vector<128x512xbf16> to vector<128x512xf32>
    %5 = vector.extract_strided_slice %2 {offsets = [0, 0], sizes = [128, 256], strides = [1, 1]} : vector<128x512xf32> to vector<128x256xf32>
    %6 = vector.extract_strided_slice %2 {offsets = [0, 256], sizes = [128, 256], strides = [1, 1]} : vector<128x512xf32> to vector<128x256xf32>
    %7 = vector.extract_strided_slice %4 {offsets = [0, 0], sizes = [128, 256], strides = [1, 1]} : vector<128x512xf32> to vector<128x256xf32>
    %8 = vector.extract_strided_slice %4 {offsets = [0, 256], sizes = [128, 256], strides = [1, 1]} : vector<128x512xf32> to vector<128x256xf32>
    %9 = tpu.iota {dimensions = array<i32: 1>} : vector<128x256xi32>
    %c0_i32 = arith.constant 0 : i32
    %10 = vector.broadcast %c0_i32 : i32 to vector<128x256xi32>
    %11 = arith.cmpi sgt, %9, %10 : vector<128x256xi32>
    %cst_5 = arith.constant 0.000000e+00 : f32
    %12 = vector.broadcast %cst_5 : f32 to vector<128x256xf32>
    %13 = arith.select %11, %6, %12 : vector<128x256xi1>, vector<128x256xf32>
    %cst_6 = arith.constant 0.000000e+00 : f32
    %14 = vector.broadcast %cst_6 : f32 to vector<128x256xf32>
    %15 = arith.select %11, %8, %14 : vector<128x256xi1>, vector<128x256xf32>
    %16 = arith.mulf %5, %7 : vector<128x256xf32>
    %17 = arith.mulf %13, %15 : vector<128x256xf32>
    %18 = arith.subf %16, %17 : vector<128x256xf32>
    %19 = arith.mulf %5, %15 : vector<128x256xf32>
    %20 = arith.mulf %13, %7 : vector<128x256xf32>
    %21 = arith.addf %19, %20 : vector<128x256xf32>
    %22 = arith.mulf %6, %8 : vector<128x256xf32>
    %23 = arith.select %11, %21, %22 : vector<128x256xi1>, vector<128x256xf32>
    %24 = arith.truncf %18 : vector<128x256xf32> to vector<128x256xbf16>
    %c0_7 = arith.constant 0 : index
    %c0_8 = arith.constant 0 : index
    %25 = vector.load %arg4[%c0_7, %c0_8] : memref<256x512xbf16, #tpu.memory_space<vmem>>, vector<256x512xbf16>
    %cst_9 = arith.constant dense<0.000000e+00> : vector<128x512xf32>
    %26 = tpu.matmul %24, %25, %cst_9 {dimension_numbers = #tpu.dot_dimension_numbers<[1], [0], [0], [1], [0, 0, 1, 1], [], []>} : vector<128x256xbf16>, vector<256x512xbf16>, vector<128x512xf32> -> vector<128x512xf32>
    %27 = arith.truncf %23 : vector<128x256xf32> to vector<128x256xbf16>
    %c0_10 = arith.constant 0 : index
    %c0_11 = arith.constant 0 : index
    %28 = vector.load %arg5[%c0_10, %c0_11] : memref<256x512xbf16, #tpu.memory_space<vmem>>, vector<256x512xbf16>
    %cst_12 = arith.constant dense<0.000000e+00> : vector<128x512xf32>
    %29 = tpu.matmul %27, %28, %cst_12 {dimension_numbers = #tpu.dot_dimension_numbers<[1], [0], [0], [1], [0, 0, 1, 1], [], []>} : vector<128x256xbf16>, vector<256x512xbf16>, vector<128x512xf32> -> vector<128x512xf32>
    %30 = arith.addf %26, %29 : vector<128x512xf32>
    %31 = arith.truncf %30 : vector<128x512xf32> to vector<128x512xbf16>
    %c0_13 = arith.constant 0 : index
    %c0_14 = arith.constant 0 : index
    %32 = vector.load %arg6[%c0_13, %c0_14] : memref<128x512xbf16, #tpu.memory_space<vmem>>, vector<128x512xbf16>
    tpu.vector_store %arg6[%c0_13, %c0_14], %31 {strides = array<i32>} : memref<128x512xbf16, #tpu.memory_space<vmem>>, vector<128x512xbf16>,
    return
  }
  func.func @transform_0(%arg0: i32) -> (i32, i32) {
    %c0_i32 = arith.constant 0 : i32
    %c0_i32_0 = arith.constant 0 : i32
    return %arg0, %c0_i32 : i32, i32
  }
  func.func @transform_1(%arg0: i32) -> (i32, i32) {
    %c0_i32 = arith.constant 0 : i32
    %c0_i32_0 = arith.constant 0 : i32
    return %arg0, %c0_i32 : i32, i32
  }
  func.func @transform_2(%arg0: i32) -> (i32, i32) {
    %c0_i32 = arith.constant 0 : i32
    %c0_i32_0 = arith.constant 0 : i32
    %c0_i32_1 = arith.constant 0 : i32
    return %c0_i32, %c0_i32_0 : i32, i32
  }
  func.func @transform_3(%arg0: i32) -> (i32, i32) {
    %c0_i32 = arith.constant 0 : i32
    %c0_i32_0 = arith.constant 0 : i32
    %c0_i32_1 = arith.constant 0 : i32
    return %c0_i32, %c0_i32_0 : i32, i32
  }
  func.func @transform_4(%arg0: i32) -> (i32, i32) {
    %c0_i32 = arith.constant 0 : i32
    %c0_i32_0 = arith.constant 0 : i32
    %c0_i32_1 = arith.constant 0 : i32
    return %c0_i32, %c0_i32_0 : i32, i32
  }
  func.func @transform_5(%arg0: i32) -> (i32, i32) {
    %c0_i32 = arith.constant 0 : i32
    %c0_i32_0 = arith.constant 0 : i32
    return %arg0, %c0_i32 : i32, i32
  }
}

</mosaic_0001>

<bundles_post_ra>
// kernel: tpu_custom_call.1
= control target key start
LH: loop header
LB: loop body
LE: loop exit
PB: predicated region body
PF: predicated region fallthrough
CT: control target
= control target key end

     0   :  { %10 = vsyncpa [#allocation3], 0  ;;  %s5799_s0 = inlined_call_operand.hbm [shape: bf16[128,512], index: 0, kind: input, shape index: {}]   ;;  %s5800_s1 = inlined_call_operand.hbm [shape: bf16[128,512], index: 1, kind: input, shape index: {}]   ;;  %s5801_s2 = inlined_call_operand.hbm [shape: bf16[512,512], index: 2, kind: input, shape index: {}]   ;;  %s5802_s3 = inlined_call_operand.hbm [shape: bf16[256,512], index: 3, kind: input, shape index: {}]   ;;  %s5803_s4 = inlined_call_operand.hbm [shape: bf16[256,512], index: 4, kind: input, shape index: {}]   ;;  %s5804_s5 = inlined_call_operand.hbm [shape: bf16[128,512], index: 5, kind: output, shape index: {}]  }
   0x1   :  { %11 = vsyncpa [#allocation6], 0 }
   0x2   :  { %12 = vsyncpa [#allocation9], 0 }
   0x3   :  { %13 = vsyncpa [#allocation4], 0  ;;  %s4337_s18 = smov [#allocation5]   ;;  %s4338_s20 = smov [#allocation8]  }
   0x4   :  { %s31_s19 = sshll.u32 %s4337_s18, 4  ;;  %s55_s21 = sshll.u32 %s4338_s20, 4  ;;  %s32_s19 = int_to_ptr.vmem [resolvable:$true] %s31_s19  ;;  %s56_s21 = int_to_ptr.vmem [resolvable:$true] %s55_s21 }
   0x5   :  { %s4217_s22 = scalar_lea.vmem %s32_s19, 4096  ;;  %p4222_p1 = scmp.lt.s32.totalorder %s32_s19, %s32_s19 }
   0x6   :  { %p4218_p0 = scmp.ne.s32.totalorder %s32_s19, %s4217_s22  ;;  %p4223_p2 = scmp.lt.s32.totalorder %s4217_s22, %s4217_s22 }
   0x8   :  { %p4224_p3 = por %p4223_p2, %p4222_p1 }
   0xa   :  { %p4225_p4 = pnand %p4224_p3, %p4218_p0 }
   0xc   :  { %4228 = shalt.err (!%p4225_p4)
}
   0xd   :  { %s4339_s23 = smov 256   ;;  %s4340_s24 = smov 16  }
   0xe   :  { %37 = dma.hbm_to_vmem [thread:$0]  %s5800_s1, 4096, %s32_s19, [#allocation6], %s4339_s23, %s4339_s23, %s4340_s24  }
   0xf   :  { %s4237_s27 = scalar_lea.vmem %s56_s21, 8192  ;;  %p4242_p6 = scmp.lt.s32.totalorder %s56_s21, %s56_s21 }
  0x10   :  { %p4238_p5 = scmp.ne.s32.totalorder %s56_s21, %s4237_s27  ;;  %p4243_p7 = scmp.lt.s32.totalorder %s4237_s27, %s4237_s27 }
  0x12   :  { %p4244_p8 = por %p4243_p7, %p4242_p6 }
  0x14   :  { %p4245_p9 = pnand %p4244_p8, %p4238_p5 }
  0x16   :  { %4248 = shalt.err (!%p4245_p9)
}
  0x17   :  { %61 = dma.hbm_to_vmem [thread:$0]  %s5802_s3, 8192, %s56_s21, [#allocation9], %s4339_s23, %s4339_s23, %s4340_s24  }
  0x18   :  { %s4341_s30 = smov [#allocation2]   ;;  %s4342_s7 = smov [#allocation7]  }
  0x19   :  { %s19_s6 = sshll.u32 %s4341_s30, 4  ;;  %s43_s8 = sshll.u32 %s4342_s7, 4  ;;  %s20_s6 = int_to_ptr.vmem [resolvable:$true] %s19_s6  ;;  %s44_s8 = int_to_ptr.vmem [resolvable:$true] %s43_s8 }
  0x1a   :  { %s4257_s1 = scalar_lea.vmem %s20_s6, 4096  ;;  %p4262_p11 = scmp.lt.s32.totalorder %s20_s6, %s20_s6 }
  0x1b   :  { %p4258_p10 = scmp.ne.s32.totalorder %s20_s6, %s4257_s1  ;;  %p4263_p12 = scmp.lt.s32.totalorder %s4257_s1, %s4257_s1 }
  0x1d   :  { %p4264_p13 = por %p4263_p12, %p4262_p11 }
  0x1f   :  { %p4265_p0 = pnand %p4264_p13, %p4258_p10 }
  0x21   :  { %4268 = shalt.err (!%p4265_p0)
}
  0x22   :  { %25 = dma.hbm_to_vmem [thread:$0]  %s5799_s0, 4096, %s20_s6, [#allocation3], %s4339_s23, %s4339_s23, %s4340_s24  }
  0x23   :  { %s4277_s3 = scalar_lea.vmem %s44_s8, 16384  ;;  %p4282_p2 = scmp.lt.s32.totalorder %s44_s8, %s44_s8 }
  0x24   :  { %p4278_p1 = scmp.ne.s32.totalorder %s44_s8, %s4277_s3  ;;  %p4283_p3 = scmp.lt.s32.totalorder %s4277_s3, %s4277_s3 }
  0x26   :  { %p4284_p4 = por %p4283_p3, %p4282_p2 }
  0x28   :  { %p4285_p5 = pnand %p4284_p4, %p4278_p1 }
  0x2a   :  { %4288 = shalt.err (!%p4285_p5)
}
  0x2b   :  { %49 = dma.hbm_to_vmem [thread:$0]  %s5801_s2, 16384, %s44_s8, [#allocation6], %s4339_s23, %s4339_s23, %s4340_s24  }
  0x2c   :  { %s4343_s13 = smov [#allocation10]  }
  0x2d   :  { %s67_s14 = sshll.u32 %s4343_s13, 4  ;;  %s68_s14 = int_to_ptr.vmem [resolvable:$true] %s67_s14 }
  0x2e   :  { %s4297_s15 = scalar_lea.vmem %s68_s14, 8192  ;;  %p4302_p7 = scmp.lt.s32.totalorder %s68_s14, %s68_s14 }
  0x2f   :  { %p4298_p6 = scmp.ne.s32.totalorder %s68_s14, %s4297_s15  ;;  %p4303_p8 = scmp.lt.s32.totalorder %s4297_s15, %s4297_s15 }
  0x31   :  { %p4304_p9 = por %p4303_p8, %p4302_p7 }
  0x33   :  { %p4305_p10 = pnand %p4304_p9, %p4298_p6 }
  0x35   :  { %4308 = shalt.err (!%p4305_p10)
}
  0x36   :  { %73 = dma.hbm_to_vmem [thread:$0]  %s5803_s4, 8192, %s68_s14, [#allocation9], %s4339_s23, %s4339_s23, %s4340_s24  }
  0x37   :  { %4329 = dma.done.wait [#allocation3], 4096  }
  0x38   :  { %4330 = vsyncadd [#allocation3], 4294963200 }
  0x39   :  { %4331 = dma.done.wait [#allocation6], 20480  }
  0x3a   :  { %4332 = vsyncadd [#allocation6], 4294946816 }
  0x3b   :  { %4333 = dma.done.wait [#allocation9], 16384  }
  0x3c   :  { %4334 = vsyncadd [#allocation9], 4294950912  ;;  %v3777_v0 = vld [vmem:[#allocation7 + $0xe4] ss:$16 sps:$4 sm:$0xff]   ;;  %v3781_v2 = vld [vmem:[#allocation7 + $0xe0] ss:$16 sps:$4 sm:$0xff]  }
  0x3d   :  { %v3779_v1 = vld [vmem:[#allocation7 + $0x2e4] ss:$16 sps:$4 sm:$0xff]   ;;  %1049 = vmatprep.subr.bf16.mxu0 %v3777_v0  ;;  %v3782_v3 = vld [vmem:[#allocation7 + $0x2e0] ss:$16 sps:$4 sm:$0xff]   ;;  %v4407_v51 = vld [vmem:[#allocation2 + $0xc] ss:$16 sps:$4 sm:$0xff]  }
  0x3e   :  { %1162 = vmatprep.subr.bf16.mxu1 %v3779_v1  ;;  %v3783_v4 = vld [vmem:[#allocation7 + $0xc4] ss:$16 sps:$4 sm:$0xff]   ;;  %1050 = vmatpush1.bf16.msra.mxu0 %v3781_v2  ;;  %v3787_v6 = vld [vmem:[#allocation7 + $0xc0] ss:$16 sps:$4 sm:$0xff]   ;;  %v3881_v2 = vld [vmem:[#allocation7 + $0xec] ss:$16 sps:$4 sm:$0xff]  }
  0x3f   :  { %1163 = vmatpush1.bf16.msra.mxu1 %v3782_v3  ;;  %v3785_v5 = vld [vmem:[#allocation7 + $0x2c4] ss:$16 sps:$4 sm:$0xff]   ;;  %1051 = vmatprep.subr.bf16.mxu0 %v3783_v4  ;;  %v3788_v7 = vld [vmem:[#allocation7 + $0x2c0] ss:$16 sps:$4 sm:$0xff]   ;;  %v3884_v3 = vld [vmem:[#allocation7 + $0x2ec] ss:$16 sps:$4 sm:$0xff]  }
  0x40   :  { %1164 = vmatprep.subr.bf16.mxu1 %v3785_v5  ;;  %v3789_v8 = vld [vmem:[#allocation7 + $0xa4] ss:$16 sps:$4 sm:$0xff]   ;;  %v3793_v10 = vld [vmem:[#allocation7 + $0xa0] ss:$16 sps:$4 sm:$0xff]   ;;  %1194 = vmatprep.mubr.bf16.mxu1 %v4407_v51  ;;  %v4413_v5 = vld [vmem:[#allocation2 + $0x8] ss:$16 sps:$4 sm:$0xff]  }
  0x41   :  { %v3791_v9 = vld [vmem:[#allocation7 + $0x2a4] ss:$16 sps:$4 sm:$0xff]   ;;  %v3794_v11 = vld [vmem:[#allocation7 + $0x2a0] ss:$16 sps:$4 sm:$0xff]   ;;  %s4344_s2 = smov [#allocation11]  }
  0x42   :  { %1052 = vmatpush1.bf16.msra.mxu0 %v3787_v6  ;;  %v3795_v12 = vld [vmem:[#allocation7 + $0x84] ss:$16 sps:$4 sm:$0xff]   ;;  %v3799_v14 = vld [vmem:[#allocation7 + $0x80] ss:$16 sps:$4 sm:$0xff]   ;;  %v3879_v6 = vld [vmem:[#allocation7 + $0xe8] ss:$16 sps:$4 sm:$0xff]  }
  0x43   :  { %1165 = vmatpush1.bf16.msra.mxu1 %v3788_v7  ;;  %1053 = vmatprep.subr.bf16.mxu0 %v3789_v8  ;;  %v3797_v13 = vld [vmem:[#allocation7 + $0x284] ss:$16 sps:$4 sm:$0xff]   ;;  %v3800_v15 = vld [vmem:[#allocation7 + $0x280] ss:$16 sps:$4 sm:$0xff]   ;;  %v3882_v7 = vld [vmem:[#allocation7 + $0x2e8] ss:$16 sps:$4 sm:$0xff]  }
  0x44   :  { %1166 = vmatprep.subr.bf16.mxu1 %v3791_v9  ;;  %v3801_v16 = vld [vmem:[#allocation7 + $0x64] ss:$16 sps:$4 sm:$0xff]   ;;  %v3805_v18 = vld [vmem:[#allocation7 + $0x60] ss:$16 sps:$4 sm:$0xff]   ;;  %v3887_v8 = vld [vmem:[#allocation7 + $0xcc] ss:$16 sps:$4 sm:$0xff]  }
  0x45   :  { %v3803_v17 = vld [vmem:[#allocation7 + $0x264] ss:$16 sps:$4 sm:$0xff]   ;;  %v3806_v19 = vld [vmem:[#allocation7 + $0x260] ss:$16 sps:$4 sm:$0xff]   ;;  %v3890_v9 = vld [vmem:[#allocation7 + $0x2cc] ss:$16 sps:$4 sm:$0xff]  }
  0x46   :  { %1054 = vmatpush1.bf16.msra.mxu0 %v3793_v10  ;;  %v3807_v20 = vld [vmem:[#allocation7 + $0x44] ss:$16 sps:$4 sm:$0xff]   ;;  %v3811_v22 = vld [vmem:[#allocation7 + $0x40] ss:$16 sps:$4 sm:$0xff]   ;;  %s3403_s4 = sshll.u32 %s4344_s2, 4  ;;  %s3404_s4 = int_to_ptr.vmem [resolvable:$true] %s3403_s4 }
  0x47   :  { %1167 = vmatpush1.bf16.msra.mxu1 %v3794_v11  ;;  %1055 = vmatprep.subr.bf16.mxu0 %v3795_v12  ;;  %v3809_v21 = vld [vmem:[#allocation7 + $0x244] ss:$16 sps:$4 sm:$0xff]   ;;  %v3812_v23 = vld [vmem:[#allocation7 + $0x240] ss:$16 sps:$4 sm:$0xff]   ;;  %v4417_v11 = vld [vmem:[#allocation2 + $0x2c] ss:$16 sps:$4 sm:$0xff]   ;;  %p4314_p12 = scmp.lt.s32.totalorder %s3404_s4, %s3404_s4 }
  0x48   :  { %1168 = vmatprep.subr.bf16.mxu1 %v3797_v13  ;;  %v3813_v24 = vld [vmem:[#allocation7 + $0x24] ss:$16 sps:$4 sm:$0xff]   ;;  %v3817_v26 = vld [vmem:[#allocation7 + $0x20] ss:$16 sps:$4 sm:$0xff]   ;;  %v3885_v12 = vld [vmem:[#allocation7 + $0xc8] ss:$16 sps:$4 sm:$0xff]  }
  0x49   :  { %v3815_v25 = vld [vmem:[#allocation7 + $0x224] ss:$16 sps:$4 sm:$0xff]   ;;  %v3818_v27 = vld [vmem:[#allocation7 + $0x220] ss:$16 sps:$4 sm:$0xff]   ;;  %v3888_v13 = vld [vmem:[#allocation7 + $0x2c8] ss:$16 sps:$4 sm:$0xff]  }
  0x4a   :  { %1056 = vmatpush1.bf16.msra.mxu0 %v3799_v14  ;;  %v3819_v28 = vld [vmem:[#allocation7 + $0x4] ss:$16 sps:$4 sm:$0xff]   ;;  %v3823_v30 = vld [vmem:[#allocation7] ss:$16 sps:$4 sm:$0xff]   ;;  %v3899_v14 = vld [vmem:[#allocation7 + $0xac] ss:$16 sps:$4 sm:$0xff]  }
  0x4b   :  { %1169 = vmatpush1.bf16.msra.mxu1 %v3800_v15  ;;  %1057 = vmatprep.subr.bf16.mxu0 %v3801_v16  ;;  %v3821_v29 = vld [vmem:[#allocation7 + $0x204] ss:$16 sps:$4 sm:$0xff]   ;;  %v3824_v31 = vld [vmem:[#allocation7 + $0x200] ss:$16 sps:$4 sm:$0xff]   ;;  %v3902_v15 = vld [vmem:[#allocation7 + $0x2ac] ss:$16 sps:$4 sm:$0xff]  }
  0x4c   :  { %1170 = vmatprep.subr.bf16.mxu1 %v3803_v17  ;;  %v3825_v32 = vld [vmem:[#allocation7 + $0x1e4] ss:$16 sps:$4 sm:$0xff]   ;;  %v3829_v34 = vld [vmem:[#allocation7 + $0x1e0] ss:$16 sps:$4 sm:$0xff]   ;;  %v4425_v17 = vld [vmem:[#allocation2 + $0x28] ss:$16 sps:$4 sm:$0xff]  }
  0x4d   :  { %v3827_v33 = vld [vmem:[#allocation7 + $0x3e4] ss:$16 sps:$4 sm:$0xff]   ;;  %v3830_v35 = vld [vmem:[#allocation7 + $0x3e0] ss:$16 sps:$4 sm:$0xff]   ;;  %s4309_s17 = scalar_lea.vmem %s3404_s4, 4096 }
  0x4e   :  { %1058 = vmatpush1.bf16.msra.mxu0 %v3805_v18  ;;  %v3831_v36 = vld [vmem:[#allocation7 + $0x1c4] ss:$16 sps:$4 sm:$0xff]   ;;  %v3835_v38 = vld [vmem:[#allocation7 + $0x1c0] ss:$16 sps:$4 sm:$0xff]   ;;  %v3897_v18 = vld [vmem:[#allocation7 + $0xa8] ss:$16 sps:$4 sm:$0xff]   ;;  %p4310_p11 = scmp.ne.s32.totalorder %s3404_s4, %s4309_s17  ;;  %p4315_p13 = scmp.lt.s32.totalorder %s4309_s17, %s4309_s17 }
  0x4f   :  { %1171 = vmatpush1.bf16.msra.mxu1 %v3806_v19  ;;  %1059 = vmatprep.subr.bf16.mxu0 %v3807_v20  ;;  %v3833_v37 = vld [vmem:[#allocation7 + $0x3c4] ss:$16 sps:$4 sm:$0xff]   ;;  %v3836_v39 = vld [vmem:[#allocation7 + $0x3c0] ss:$16 sps:$4 sm:$0xff]   ;;  %v3900_v19 = vld [vmem:[#allocation7 + $0x2a8] ss:$16 sps:$4 sm:$0xff]  }
  0x50   :  { %1172 = vmatprep.subr.bf16.mxu1 %v3809_v21  ;;  %v3837_v40 = vld [vmem:[#allocation7 + $0x1a4] ss:$16 sps:$4 sm:$0xff]   ;;  %v3841_v42 = vld [vmem:[#allocation7 + $0x1a0] ss:$16 sps:$4 sm:$0xff]   ;;  %v3905_v20 = vld [vmem:[#allocation7 + $0x8c] ss:$16 sps:$4 sm:$0xff]   ;;  %p4316_p0 = por %p4315_p13, %p4314_p12 }
  0x51   :  { %v3839_v41 = vld [vmem:[#allocation7 + $0x3a4] ss:$16 sps:$4 sm:$0xff]   ;;  %v3842_v43 = vld [vmem:[#allocation7 + $0x3a0] ss:$16 sps:$4 sm:$0xff]   ;;  %v3908_v21 = vld [vmem:[#allocation7 + $0x28c] ss:$16 sps:$4 sm:$0xff]  }
  0x52   :  { %1060 = vmatpush1.bf16.msra.mxu0 %v3811_v22  ;;  %v3843_v44 = vld [vmem:[#allocation7 + $0x184] ss:$16 sps:$4 sm:$0xff]   ;;  %v3847_v46 = vld [vmem:[#allocation7 + $0x180] ss:$16 sps:$4 sm:$0xff]   ;;  %p4317_p1 = pnand %p4316_p0, %p4310_p11 }
  0x53   :  { %1173 = vmatpush1.bf16.msra.mxu1 %v3812_v23  ;;  %1061 = vmatprep.subr.bf16.mxu0 %v3813_v24  ;;  %v3845_v45 = vld [vmem:[#allocation7 + $0x384] ss:$16 sps:$4 sm:$0xff]   ;;  %v3848_v47 = vld [vmem:[#allocation7 + $0x380] ss:$16 sps:$4 sm:$0xff]   ;;  %v4429_v23 = vld [vmem:[#allocation2 + $0x4c] ss:$16 sps:$4 sm:$0xff]  }
  0x54   :  { %1174 = vmatprep.subr.bf16.mxu1 %v3815_v25  ;;  %v3849_v48 = vld [vmem:[#allocation7 + $0x164] ss:$16 sps:$4 sm:$0xff]   ;;  %v3853_v52 = vld [vmem:[#allocation7 + $0x160] ss:$16 sps:$4 sm:$0xff]   ;;  %v3903_v24 = vld [vmem:[#allocation7 + $0x88] ss:$16 sps:$4 sm:$0xff]  }
  0x55   :  { %v4405_v49 = vld [vmem:[#allocation2 + $0x4] ss:$16 sps:$4 sm:$0xff]   ;;  %v3854_v53 = vld [vmem:[#allocation7 + $0x360] ss:$16 sps:$4 sm:$0xff]   ;;  %v3906_v25 = vld [vmem:[#allocation7 + $0x288] ss:$16 sps:$4 sm:$0xff]  }
  0x56   :  { %1062 = vmatpush1.bf16.msra.mxu0 %v3817_v26  ;;  %v3851_v50 = vld [vmem:[#allocation7 + $0x364] ss:$16 sps:$4 sm:$0xff]   ;;  %1081 = vmatprep.mubr.bf16.mxu0 %v4405_v49  ;;  %v3859_v56 = vld [vmem:[#allocation7 + $0x140] ss:$16 sps:$4 sm:$0xff]   ;;  %v3917_v26 = vld [vmem:[#allocation7 + $0x6c] ss:$16 sps:$4 sm:$0xff]  }
  0x57   :  { %1175 = vmatpush1.bf16.msra.mxu1 %v3818_v27  ;;  %1063 = vmatprep.subr.bf16.mxu0 %v3819_v28  ;;  %v3855_v54 = vld [vmem:[#allocation7 + $0x144] ss:$16 sps:$4 sm:$0xff]   ;;  %v3860_v57 = vld [vmem:[#allocation7 + $0x340] ss:$16 sps:$4 sm:$0xff]   ;;  %v3920_v27 = vld [vmem:[#allocation7 + $0x26c] ss:$16 sps:$4 sm:$0xff]  }
  0x58   :  { %1176 = vmatprep.subr.bf16.mxu1 %v3821_v29  ;;  %v3857_v55 = vld [vmem:[#allocation7 + $0x344] ss:$16 sps:$4 sm:$0xff]   ;;  %v3865_v60 = vld [vmem:[#allocation7 + $0x120] ss:$16 sps:$4 sm:$0xff]   ;;  %v4437_v29 = vld [vmem:[#allocation2 + $0x48] ss:$16 sps:$4 sm:$0xff]  }
  0x59   :  { %v3861_v58 = vld [vmem:[#allocation7 + $0x124] ss:$16 sps:$4 sm:$0xff]   ;;  %v3866_v61 = vld [vmem:[#allocation7 + $0x320] ss:$16 sps:$4 sm:$0xff]  }
  0x5a   :  { %1064 = vmatpush1.bf16.msra.mxu0 %v3823_v30  ;;  %v3863_v59 = vld [vmem:[#allocation7 + $0x324] ss:$16 sps:$4 sm:$0xff]   ;;  %v3871_v0 = vld [vmem:[#allocation7 + $0x100] ss:$16 sps:$4 sm:$0xff]   ;;  %v3915_v30 = vld [vmem:[#allocation7 + $0x68] ss:$16 sps:$4 sm:$0xff]  }
  0x5b   :  { %1177 = vmatpush1.bf16.msra.mxu1 %v3824_v31  ;;  %1065 = vmatprep.subr.bf16.mxu0 %v3825_v32  ;;  %v3867_v62 = vld [vmem:[#allocation7 + $0x104] ss:$16 sps:$4 sm:$0xff]   ;;  %v3872_v1 = vld [vmem:[#allocation7 + $0x300] ss:$16 sps:$4 sm:$0xff]   ;;  %v3918_v31 = vld [vmem:[#allocation7 + $0x268] ss:$16 sps:$4 sm:$0xff]  }
  0x5c   :  { %1178 = vmatprep.subr.bf16.mxu1 %v3827_v33  ;;  %v3869_v63 = vld [vmem:[#allocation7 + $0x304] ss:$16 sps:$4 sm:$0xff]   ;;  %v4411_v4 = vld [vmem:[#allocation2] ss:$16 sps:$4 sm:$0xff]   ;;  %v3923_v32 = vld [vmem:[#allocation7 + $0x4c] ss:$16 sps:$4 sm:$0xff]  }
  0x5d   :  { %v4415_v10 = vld [vmem:[#allocation2 + $0x24] ss:$16 sps:$4 sm:$0xff]   ;;  %v4423_v16 = vld [vmem:[#allocation2 + $0x20] ss:$16 sps:$4 sm:$0xff]   ;;  %v3926_v33 = vld [vmem:[#allocation7 + $0x24c] ss:$16 sps:$4 sm:$0xff]  }
  0x5e   :  { %1066 = vmatpush2.bf16.msra.mxu0 %v3829_v34  ;;  %v4427_v22 = vld [vmem:[#allocation2 + $0x44] ss:$16 sps:$4 sm:$0xff]   ;;  %v4435_v28 = vld [vmem:[#allocation2 + $0x40] ss:$16 sps:$4 sm:$0xff]  }
  0x5f   :  { %1179 = vmatpush2.bf16.msra.mxu1 %v3830_v35  ;;  %1067 = vmatprep.subr.bf16.mxu0 %v3831_v36  ;;  %v4439_v34 = vld [vmem:[#allocation2 + $0x64] ss:$16 sps:$4 sm:$0xff]   ;;  %v4441_v35 = vld [vmem:[#allocation2 + $0x6c] ss:$16 sps:$4 sm:$0xff]   ;;  %v3921_v36 = vld [vmem:[#allocation7 + $0x48] ss:$16 sps:$4 sm:$0xff]  }
  0x60   :  { %1180 = vmatprep.subr.bf16.mxu1 %v3833_v37  ;;  %v3924_v37 = vld [vmem:[#allocation7 + $0x248] ss:$16 sps:$4 sm:$0xff]  }
  0x62   :  { %1068 = vmatpush2.bf16.msra.mxu0 %v3835_v38  ;;  %v3935_v38 = vld [vmem:[#allocation7 + $0x2c] ss:$16 sps:$4 sm:$0xff]  }
  0x63   :  { %1181 = vmatpush2.bf16.msra.mxu1 %v3836_v39  ;;  %1069 = vmatprep.subr.bf16.mxu0 %v3837_v40  ;;  %v3938_v39 = vld [vmem:[#allocation7 + $0x22c] ss:$16 sps:$4 sm:$0xff]   ;;  %v4447_v40 = vld [vmem:[#allocation2 + $0x60] ss:$16 sps:$4 sm:$0xff]  }
  0x64   :  { %1182 = vmatprep.subr.bf16.mxu1 %v3839_v41  ;;  %v4449_v41 = vld [vmem:[#allocation2 + $0x68] ss:$16 sps:$4 sm:$0xff]  }
  0x66   :  { %1070 = vmatpush2.bf16.msra.mxu0 %v3841_v42  ;;  %v3933_v42 = vld [vmem:[#allocation7 + $0x28] ss:$16 sps:$4 sm:$0xff]  }
  0x67   :  { %1183 = vmatpush2.bf16.msra.mxu1 %v3842_v43  ;;  %1071 = vmatprep.subr.bf16.mxu0 %v3843_v44  ;;  %v3936_v43 = vld [vmem:[#allocation7 + $0x228] ss:$16 sps:$4 sm:$0xff]   ;;  %v3941_v44 = vld [vmem:[#allocation7 + $0xc] ss:$16 sps:$4 sm:$0xff]  }
  0x68   :  { %1184 = vmatprep.subr.bf16.mxu1 %v3845_v45  ;;  %v3944_v45 = vld [vmem:[#allocation7 + $0x20c] ss:$16 sps:$4 sm:$0xff]  }
  0x6a   :  { %1072 = vmatpush2.bf16.msra.mxu0 %v3847_v46  ;;  %v4451_v46 = vld [vmem:[#allocation2 + $0x84] ss:$16 sps:$4 sm:$0xff]  }
  0x6b   :  { %1185 = vmatpush2.bf16.msra.mxu1 %v3848_v47  ;;  %1073 = vmatprep.subr.bf16.mxu0 %v3849_v48  ;;  %v4453_v47 = vld [vmem:[#allocation2 + $0x8c] ss:$16 sps:$4 sm:$0xff]   ;;  %v3939_v48 = vld [vmem:[#allocation7 + $0x8] ss:$16 sps:$4 sm:$0xff]  }
  0x6c   :  { %1186 = vmatprep.subr.bf16.mxu1 %v3851_v50  ;;  %v3942_v50 = vld [vmem:[#allocation7 + $0x208] ss:$16 sps:$4 sm:$0xff]  }
  0x6e   :  { %1074 = vmatpush2.bf16.msra.mxu0 %v3853_v52  ;;  %v3953_v52 = vld [vmem:[#allocation7 + $0x1ec] ss:$16 sps:$4 sm:$0xff]  }
  0x6f   :  { %1187 = vmatpush2.bf16.msra.mxu1 %v3854_v53  ;;  %1075 = vmatprep.subr.bf16.mxu0 %v3855_v54  ;;  %v3956_v53 = vld [vmem:[#allocation7 + $0x3ec] ss:$16 sps:$4 sm:$0xff]   ;;  %v4459_v54 = vld [vmem:[#allocation2 + $0x80] ss:$16 sps:$4 sm:$0xff]  }
  0x70   :  { %1188 = vmatprep.subr.bf16.mxu1 %v3857_v55  ;;  %v4461_v55 = vld [vmem:[#allocation2 + $0x88] ss:$16 sps:$4 sm:$0xff]  }
  0x72   :  { %1076 = vmatpush2.bf16.msra.mxu0 %v3859_v56  ;;  %v3951_v56 = vld [vmem:[#allocation7 + $0x1e8] ss:$16 sps:$4 sm:$0xff]  }
  0x73   :  { %1189 = vmatpush2.bf16.msra.mxu1 %v3860_v57  ;;  %1077 = vmatprep.subr.bf16.mxu0 %v3861_v58  ;;  %v3954_v57 = vld [vmem:[#allocation7 + $0x3e8] ss:$16 sps:$4 sm:$0xff]   ;;  %v3959_v58 = vld [vmem:[#allocation7 + $0x1cc] ss:$16 sps:$4 sm:$0xff]  }
  0x74   :  { %1190 = vmatprep.subr.bf16.mxu1 %v3863_v59  ;;  %v3962_v59 = vld [vmem:[#allocation7 + $0x3cc] ss:$16 sps:$4 sm:$0xff]  }
  0x76   :  { %1078 = vmatpush2.bf16.msra.mxu0 %v3865_v60  ;;  %v4463_v60 = vld [vmem:[#allocation2 + $0xa4] ss:$16 sps:$4 sm:$0xff]  }
  0x77   :  { %1191 = vmatpush2.bf16.msra.mxu1 %v3866_v61  ;;  %1079 = vmatprep.subr.bf16.mxu0 %v3867_v62  ;;  %v4465_v61 = vld [vmem:[#allocation2 + $0xac] ss:$16 sps:$4 sm:$0xff]   ;;  %v3957_v62 = vld [vmem:[#allocation7 + $0x1c8] ss:$16 sps:$4 sm:$0xff]  }
  0x78   :  { %1192 = vmatprep.subr.bf16.mxu1 %v3869_v63  ;;  %v3960_v63 = vld [vmem:[#allocation7 + $0x3c8] ss:$16 sps:$4 sm:$0xff]  }
  0x7a   :  { %1080 = vmatpush2.bf16.msra.mxu0 %v3871_v0  ;;  %v3971_v0 = vld [vmem:[#allocation7 + $0x1ac] ss:$16 sps:$4 sm:$0xff]  }
  0x7b   :  { %1193 = vmatpush2.bf16.msra.mxu1 %v3872_v1  ;;  %1275 = vmatprep.subr.bf16.mxu0 %v3881_v2  ;;  %v3974_v1 = vld [vmem:[#allocation7 + $0x3ac] ss:$16 sps:$4 sm:$0xff]   ;;  %v4471_v2 = vld [vmem:[#allocation2 + $0xa0] ss:$16 sps:$4 sm:$0xff]  }
  0x7c   :  { %1388 = vmatprep.subr.bf16.mxu1 %v3884_v3  ;;  %v4473_v3 = vld [vmem:[#allocation2 + $0xa8] ss:$16 sps:$4 sm:$0xff]  }
  0x7d   :  { %1082 = vmatmul.mubr.bf16.vlgmr.msra.gmra.mxu0 %v4411_v4 }
  0x7e   :  { %1195 = vmatmul.mubr.bf16.vlgmr.msra.gmra.mxu1 %v4413_v5  ;;  %1276 = vmatpush1.bf16.msra.mxu0 %v3879_v6  ;;  %v3969_v6 = vld [vmem:[#allocation7 + $0x1a8] ss:$16 sps:$4 sm:$0xff]  }
  0x7f   :  { %1389 = vmatpush1.bf16.msra.mxu1 %v3882_v7  ;;  %1277 = vmatprep.subr.bf16.mxu0 %v3887_v8  ;;  %v3972_v7 = vld [vmem:[#allocation7 + $0x3a8] ss:$16 sps:$4 sm:$0xff]   ;;  %v3977_v8 = vld [vmem:[#allocation7 + $0x18c] ss:$16 sps:$4 sm:$0xff]  }
  0x80   :  { %1390 = vmatprep.subr.bf16.mxu1 %v3890_v9  ;;  %1091 = vmatprep.mubr.bf16.mxu0 %v4415_v10  ;;  %v3980_v9 = vld [vmem:[#allocation7 + $0x38c] ss:$16 sps:$4 sm:$0xff]  }
  0x81   :  { %1204 = vmatprep.mubr.bf16.mxu1 %v4417_v11 }
  0x82   :  { %1278 = vmatpush1.bf16.msra.mxu0 %v3885_v12  ;;  %v3975_v12 = vld [vmem:[#allocation7 + $0x188] ss:$16 sps:$4 sm:$0xff]  }
  0x83   :  { %1391 = vmatpush1.bf16.msra.mxu1 %v3888_v13  ;;  %1279 = vmatprep.subr.bf16.mxu0 %v3899_v14  ;;  %v3978_v13 = vld [vmem:[#allocation7 + $0x388] ss:$16 sps:$4 sm:$0xff]   ;;  %v4475_v14 = vld [vmem:[#allocation2 + $0xc4] ss:$16 sps:$4 sm:$0xff]  }
  0x84   :  { %1392 = vmatprep.subr.bf16.mxu1 %v3902_v15  ;;  %v4477_v15 = vld [vmem:[#allocation2 + $0xcc] ss:$16 sps:$4 sm:$0xff]  }
  0x85   :  { %1092 = vmatmul.mubr.bf16.gmra.mxu0 %v4423_v16 }
  0x86   :  { %1205 = vmatmul.mubr.bf16.gmra.mxu1 %v4425_v17  ;;  %1280 = vmatpush1.bf16.msra.mxu0 %v3897_v18  ;;  %v3989_v18 = vld [vmem:[#allocation7 + $0x16c] ss:$16 sps:$4 sm:$0xff]  }
  0x87   :  { %1393 = vmatpush1.bf16.msra.mxu1 %v3900_v19  ;;  %1281 = vmatprep.subr.bf16.mxu0 %v3905_v20  ;;  %v3992_v19 = vld [vmem:[#allocation7 + $0x36c] ss:$16 sps:$4 sm:$0xff]   ;;  %v4481_v20 = vld [vmem:[#allocation2 + $0xc0] ss:$16 sps:$4 sm:$0xff]  }
  0x88   :  { %1394 = vmatprep.subr.bf16.mxu1 %v3908_v21  ;;  %1101 = vmatprep.mubr.bf16.mxu0 %v4427_v22  ;;  %v4483_v21 = vld [vmem:[#allocation2 + $0xc8] ss:$16 sps:$4 sm:$0xff]  }
  0x89   :  { %1214 = vmatprep.mubr.bf16.mxu1 %v4429_v23 }
  0x8a   :  { %1282 = vmatpush1.bf16.msra.mxu0 %v3903_v24  ;;  %v3987_v24 = vld [vmem:[#allocation7 + $0x168] ss:$16 sps:$4 sm:$0xff]  }
  0x8b   :  { %1395 = vmatpush1.bf16.msra.mxu1 %v3906_v25  ;;  %1283 = vmatprep.subr.bf16.mxu0 %v3917_v26  ;;  %v3990_v25 = vld [vmem:[#allocation7 + $0x368] ss:$16 sps:$4 sm:$0xff]   ;;  %v3995_v26 = vld [vmem:[#allocation7 + $0x14c] ss:$16 sps:$4 sm:$0xff]  }
  0x8c   :  { %1396 = vmatprep.subr.bf16.mxu1 %v3920_v27  ;;  %v3998_v27 = vld [vmem:[#allocation7 + $0x34c] ss:$16 sps:$4 sm:$0xff]  }
  0x8d   :  { %1102 = vmatmul.mubr.bf16.gmra.mxu0 %v4435_v28 }
  0x8e   :  { %1215 = vmatmul.mubr.bf16.gmra.mxu1 %v4437_v29  ;;  %1284 = vmatpush1.bf16.msra.mxu0 %v3915_v30  ;;  %v4487_v30 = vld [vmem:[#allocation2 + $0xe4] ss:$16 sps:$4 sm:$0xff]  }
  0x8f   :  { %1397 = vmatpush1.bf16.msra.mxu1 %v3918_v31  ;;  %1285 = vmatprep.subr.bf16.mxu0 %v3923_v32  ;;  %v4489_v31 = vld [vmem:[#allocation2 + $0xec] ss:$16 sps:$4 sm:$0xff]   ;;  %v3993_v32 = vld [vmem:[#allocation7 + $0x148] ss:$16 sps:$4 sm:$0xff]  }
  0x90   :  { %1398 = vmatprep.subr.bf16.mxu1 %v3926_v33  ;;  %1111 = vmatprep.mubr.bf16.mxu0 %v4439_v34  ;;  %v3996_v33 = vld [vmem:[#allocation7 + $0x348] ss:$16 sps:$4 sm:$0xff]  }
  0x91   :  { %1224 = vmatprep.mubr.bf16.mxu1 %v4441_v35 }
  0x92   :  { %1286 = vmatpush1.bf16.msra.mxu0 %v3921_v36  ;;  %v4007_v36 = vld [vmem:[#allocation7 + $0x12c] ss:$16 sps:$4 sm:$0xff]  }
  0x93   :  { %1399 = vmatpush1.bf16.msra.mxu1 %v3924_v37  ;;  %1287 = vmatprep.subr.bf16.mxu0 %v3935_v38  ;;  %v4010_v37 = vld [vmem:[#allocation7 + $0x32c] ss:$16 sps:$4 sm:$0xff]   ;;  %v4493_v38 = vld [vmem:[#allocation2 + $0xe0] ss:$16 sps:$4 sm:$0xff]  }
  0x94   :  { %1400 = vmatprep.subr.bf16.mxu1 %v3938_v39  ;;  %v4495_v39 = vld [vmem:[#allocation2 + $0xe8] ss:$16 sps:$4 sm:$0xff]  }
  0x95   :  { %1112 = vmatmul.mubr.bf16.gmra.mxu0 %v4447_v40 }
  0x96   :  { %1225 = vmatmul.mubr.bf16.gmra.mxu1 %v4449_v41  ;;  %1288 = vmatpush1.bf16.msra.mxu0 %v3933_v42  ;;  %v4005_v42 = vld [vmem:[#allocation7 + $0x128] ss:$16 sps:$4 sm:$0xff]  }
  0x97   :  { %1401 = vmatpush1.bf16.msra.mxu1 %v3936_v43  ;;  %1289 = vmatprep.subr.bf16.mxu0 %v3941_v44  ;;  %v4008_v43 = vld [vmem:[#allocation7 + $0x328] ss:$16 sps:$4 sm:$0xff]   ;;  %v4013_v44 = vld [vmem:[#allocation7 + $0x10c] ss:$16 sps:$4 sm:$0xff]  }
  0x98   :  { %1402 = vmatprep.subr.bf16.mxu1 %v3944_v45  ;;  %1121 = vmatprep.mubr.bf16.mxu0 %v4451_v46  ;;  %v4016_v45 = vld [vmem:[#allocation7 + $0x30c] ss:$16 sps:$4 sm:$0xff]  }
  0x99   :  { %1234 = vmatprep.mubr.bf16.mxu1 %v4453_v47 }
  0x9a   :  { %1290 = vmatpush1.bf16.msra.mxu0 %v3939_v48  ;;  %v4011_v48 = vld [vmem:[#allocation7 + $0x108] ss:$16 sps:$4 sm:$0xff]  }
  0x9b   :  { %1403 = vmatpush1.bf16.msra.mxu1 %v3942_v50  ;;  %1291 = vmatprep.subr.bf16.mxu0 %v3953_v52  ;;  %v4014_v50 = vld [vmem:[#allocation7 + $0x308] ss:$16 sps:$4 sm:$0xff]   ;;  %v4017_v52 = vld [vmem:[#allocation10 + $0xe0] ss:$16 sps:$4 sm:$0xff]  }
  0x9c   :  { %1404 = vmatprep.subr.bf16.mxu1 %v3956_v53  ;;  %v4020_v53 = vld [vmem:[#allocation10 + $0xe8] ss:$16 sps:$4 sm:$0xff]  }
  0x9d   :  { %1122 = vmatmul.mubr.bf16.gmra.mxu0 %v4459_v54 }
  0x9e   :  { %1235 = vmatmul.mubr.bf16.gmra.mxu1 %v4461_v55  ;;  %1292 = vmatpush2.bf16.msra.mxu0 %v3951_v56  ;;  %v4043_v56 = vld [vmem:[#allocation10 + $0x64] ss:$16 sps:$4 sm:$0xff]  }
  0x9f   :  { %1405 = vmatpush2.bf16.msra.mxu1 %v3954_v57  ;;  %1293 = vmatprep.subr.bf16.mxu0 %v3959_v58  ;;  %v4046_v57 = vld [vmem:[#allocation10 + $0x6c] ss:$16 sps:$4 sm:$0xff]   ;;  %v4047_v58 = vld [vmem:[#allocation10 + $0x40] ss:$16 sps:$4 sm:$0xff]  }
  0xa0   :  { %1406 = vmatprep.subr.bf16.mxu1 %v3962_v59  ;;  %1131 = vmatprep.mubr.bf16.mxu0 %v4463_v60  ;;  %v4050_v59 = vld [vmem:[#allocation10 + $0x48] ss:$16 sps:$4 sm:$0xff]  }
  0xa1   :  { %1244 = vmatprep.mubr.bf16.mxu1 %v4465_v61 }
  0xa2   :  { %1294 = vmatpush2.bf16.msra.mxu0 %v3957_v62  ;;  %v4055_v62 = vld [vmem:[#allocation10 + $0x24] ss:$16 sps:$4 sm:$0xff]  }
  0xa3   :  { %1407 = vmatpush2.bf16.msra.mxu1 %v3960_v63  ;;  %1295 = vmatprep.subr.bf16.mxu0 %v3971_v0  ;;  %v4058_v63 = vld [vmem:[#allocation10 + $0x2c] ss:$16 sps:$4 sm:$0xff]   ;;  %v4059_v0 = vld [vmem:[#allocation10] ss:$16 sps:$4 sm:$0xff]  }
  0xa4   :  { %1408 = vmatprep.subr.bf16.mxu1 %v3974_v1  ;;  %v4062_v1 = vld [vmem:[#allocation10 + $0x8] ss:$16 sps:$4 sm:$0xff]  }
  0xa5   :  { %1132 = vmatmul.mubr.bf16.gmra.mxu0 %v4471_v2 }
  0xa6   :  { %1245 = vmatmul.mubr.bf16.gmra.mxu1 %v4473_v3  ;;  %1296 = vmatpush2.bf16.msra.mxu0 %v3969_v6  ;;  %v4067_v6 = vld [vmem:[#allocation10 + $0x1e4] ss:$16 sps:$4 sm:$0xff]  }
  0xa7   :  { %1409 = vmatpush2.bf16.msra.mxu1 %v3972_v7  ;;  %1297 = vmatprep.subr.bf16.mxu0 %v3977_v8  ;;  %v4070_v7 = vld [vmem:[#allocation10 + $0x1ec] ss:$16 sps:$4 sm:$0xff]   ;;  %v4073_v8 = vld [vmem:[#allocation10 + $0x1c4] ss:$16 sps:$4 sm:$0xff]  }
  0xa8   :  { %1410 = vmatprep.subr.bf16.mxu1 %v3980_v9  ;;  %1141 = vmatprep.mubr.bf16.mxu0 %v4475_v14  ;;  %v4076_v9 = vld [vmem:[#allocation10 + $0x1cc] ss:$16 sps:$4 sm:$0xff]  }
  0xa9   :  { %1254 = vmatprep.mubr.bf16.mxu1 %v4477_v15 }
  0xaa   :  { %1298 = vmatpush2.bf16.msra.mxu0 %v3975_v12  ;;  %v4071_v12 = vld [vmem:[#allocation10 + $0x1c0] ss:$16 sps:$4 sm:$0xff]  }
  0xab   :  { %1411 = vmatpush2.bf16.msra.mxu1 %v3978_v13  ;;  %1299 = vmatprep.subr.bf16.mxu0 %v3989_v18  ;;  %v4074_v13 = vld [vmem:[#allocation10 + $0x1c8] ss:$16 sps:$4 sm:$0xff]   ;;  %v4077_v18 = vld [vmem:[#allocation10 + $0x1a0] ss:$16 sps:$4 sm:$0xff]  }
  0xac   :  { %1412 = vmatprep.subr.bf16.mxu1 %v3992_v19  ;;  %v4080_v19 = vld [vmem:[#allocation10 + $0x1a8] ss:$16 sps:$4 sm:$0xff]  }
  0xad   :  { %1142 = vmatmul.mubr.bf16.gmra.mxu0 %v4481_v20 }
  0xae   :  { %1255 = vmatmul.mubr.bf16.gmra.mxu1 %v4483_v21  ;;  %1300 = vmatpush2.bf16.msra.mxu0 %v3987_v24  ;;  %v4083_v24 = vld [vmem:[#allocation10 + $0x180] ss:$16 sps:$4 sm:$0xff]  }
  0xaf   :  { %1413 = vmatpush2.bf16.msra.mxu1 %v3990_v25  ;;  %1301 = vmatprep.subr.bf16.mxu0 %v3995_v26  ;;  %v4086_v25 = vld [vmem:[#allocation10 + $0x188] ss:$16 sps:$4 sm:$0xff]   ;;  %v4091_v26 = vld [vmem:[#allocation10 + $0x164] ss:$16 sps:$4 sm:$0xff]  }
  0xb0   :  { %1414 = vmatprep.subr.bf16.mxu1 %v3998_v27  ;;  %1151 = vmatprep.mubr.bf16.mxu0 %v4487_v30  ;;  %v4094_v27 = vld [vmem:[#allocation10 + $0x16c] ss:$16 sps:$4 sm:$0xff]  }
  0xb1   :  { %1264 = vmatprep.mubr.bf16.mxu1 %v4489_v31 }
  0xb2   :  { %1302 = vmatpush2.bf16.msra.mxu0 %v3993_v32  ;;  %v4097_v32 = vld [vmem:[#allocation10 + $0x144] ss:$16 sps:$4 sm:$0xff]  }
  0xb3   :  { %1415 = vmatpush2.bf16.msra.mxu1 %v3996_v33  ;;  %1303 = vmatprep.subr.bf16.mxu0 %v4007_v36  ;;  %v4100_v33 = vld [vmem:[#allocation10 + $0x14c] ss:$16 sps:$4 sm:$0xff]   ;;  %v4095_v36 = vld [vmem:[#allocation10 + $0x140] ss:$16 sps:$4 sm:$0xff]  }
  0xb4   :  { %1416 = vmatprep.subr.bf16.mxu1 %v4010_v37  ;;  %v4098_v37 = vld [vmem:[#allocation10 + $0x148] ss:$16 sps:$4 sm:$0xff]  }
  0xb5   :  { %1152 = vmatmul.mubr.bf16.gmra.mxu0 %v4493_v38 }
  0xb6   :  { %1265 = vmatmul.mubr.bf16.gmra.mxu1 %v4495_v39  ;;  %1304 = vmatpush2.bf16.msra.mxu0 %v4005_v42  ;;  %v4101_v42 = vld [vmem:[#allocation10 + $0x120] ss:$16 sps:$4 sm:$0xff]  }
  0xb7   :  { %1417 = vmatpush2.bf16.msra.mxu1 %v4008_v43  ;;  %1305 = vmatprep.subr.bf16.mxu0 %v4013_v44  ;;  %v4104_v43 = vld [vmem:[#allocation10 + $0x128] ss:$16 sps:$4 sm:$0xff]   ;;  %v4109_v44 = vld [vmem:[#allocation10 + $0x104] ss:$16 sps:$4 sm:$0xff]  }
  0xb8   :  { %1418 = vmatprep.subr.bf16.mxu1 %v4016_v45  ;;  %1307 = vmatprep.mubr.bf16.mxu0 %v4405_v49  ;;  %v4019_v49 = vld [vmem:[#allocation10 + $0xe4] ss:$16 sps:$4 sm:$0xff]   ;;  %v4112_v45 = vld [vmem:[#allocation10 + $0x10c] ss:$16 sps:$4 sm:$0xff]  }
  0xb9   :  { %1420 = vmatprep.mubr.bf16.mxu1 %v4407_v51  ;;  %v4022_v51 = vld [vmem:[#allocation10 + $0xec] ss:$16 sps:$4 sm:$0xff]  }
  0xba   :  { %1306 = vmatpush2.bf16.msra.mxu0 %v4011_v48  ;;  %v4107_v48 = vld [vmem:[#allocation10 + $0x100] ss:$16 sps:$4 sm:$0xff]  }
  0xbb   :  { %1419 = vmatpush2.bf16.msra.mxu1 %v4014_v50  ;;  %2402 = vmatprep.subr.bf16.mxu0 %v4019_v49  ;;  %v4110_v50 = vld [vmem:[#allocation10 + $0x108] ss:$16 sps:$4 sm:$0xff]   ;;  %v4115_v49 = vld [vmem:[#allocation8 + $0xe4] ss:$16 sps:$4 sm:$0xff]  }
  0xbc   :  { %2515 = vmatprep.subr.bf16.mxu1 %v4022_v51  ;;  %v4118_v51 = vld [vmem:[#allocation8 + $0xec] ss:$16 sps:$4 sm:$0xff]  }
  0xbd   :  { %1308 = vmatmul.mubr.bf16.vlgmr.msra.gmra.mxu0 %v4411_v4  ;;  %v4025_v4 = vld [vmem:[#allocation10 + $0xc4] ss:$16 sps:$4 sm:$0xff]  }
  0xbe   :  { %1421 = vmatmul.mubr.bf16.vlgmr.msra.gmra.mxu1 %v4413_v5  ;;  %1317 = vmatprep.mubr.bf16.mxu0 %v4415_v10  ;;  %v4028_v5 = vld [vmem:[#allocation10 + $0xcc] ss:$16 sps:$4 sm:$0xff]   ;;  %v4023_v10 = vld [vmem:[#allocation10 + $0xc0] ss:$16 sps:$4 sm:$0xff]  }
  0xbf   :  { %1430 = vmatprep.mubr.bf16.mxu1 %v4417_v11  ;;  %2403 = vmatpush1.bf16.msra.mxu0 %v4017_v52  ;;  %v4026_v11 = vld [vmem:[#allocation10 + $0xc8] ss:$16 sps:$4 sm:$0xff]  }
  0xc0   :  { %2516 = vmatpush1.bf16.msra.mxu1 %v4020_v53  ;;  %2404 = vmatprep.subr.bf16.mxu0 %v4025_v4 }
  0xc1   :  { %2517 = vmatprep.subr.bf16.mxu1 %v4028_v5 }
  0xc3   :  { %2405 = vmatpush1.bf16.msra.mxu0 %v4023_v10 }
  0xc4   :  { %2518 = vmatpush1.bf16.msra.mxu1 %v4026_v11 }
  0xc5   :  { %1318 = vmatmul.mubr.bf16.gmra.mxu0 %v4423_v16  ;;  %v4031_v16 = vld [vmem:[#allocation10 + $0xa4] ss:$16 sps:$4 sm:$0xff]  }
  0xc6   :  { %1431 = vmatmul.mubr.bf16.gmra.mxu1 %v4425_v17  ;;  %1327 = vmatprep.mubr.bf16.mxu0 %v4427_v22  ;;  %v4034_v17 = vld [vmem:[#allocation10 + $0xac] ss:$16 sps:$4 sm:$0xff]   ;;  %v4029_v22 = vld [vmem:[#allocation10 + $0xa0] ss:$16 sps:$4 sm:$0xff]  }
  0xc7   :  { %1440 = vmatprep.mubr.bf16.mxu1 %v4429_v23  ;;  %v4032_v23 = vld [vmem:[#allocation10 + $0xa8] ss:$16 sps:$4 sm:$0xff]   ;;  %2406 = vmatprep.subr.bf16.mxu0 %v4031_v16 }
  0xc8   :  { %2519 = vmatprep.subr.bf16.mxu1 %v4034_v17  ;;  %2407 = vmatpush1.bf16.msra.mxu0 %v4029_v22 }
  0xc9   :  { %2520 = vmatpush1.bf16.msra.mxu1 %v4032_v23 }
  0xcd   :  { %1328 = vmatmul.mubr.bf16.gmra.mxu0 %v4435_v28  ;;  %v4037_v28 = vld [vmem:[#allocation10 + $0x84] ss:$16 sps:$4 sm:$0xff]  }
  0xce   :  { %1441 = vmatmul.mubr.bf16.gmra.mxu1 %v4437_v29  ;;  %1337 = vmatprep.mubr.bf16.mxu0 %v4439_v34  ;;  %v4040_v29 = vld [vmem:[#allocation10 + $0x8c] ss:$16 sps:$4 sm:$0xff]   ;;  %v4035_v34 = vld [vmem:[#allocation10 + $0x80] ss:$16 sps:$4 sm:$0xff]  }
  0xcf   :  { %1450 = vmatprep.mubr.bf16.mxu1 %v4441_v35  ;;  %v4038_v35 = vld [vmem:[#allocation10 + $0x88] ss:$16 sps:$4 sm:$0xff]   ;;  %2408 = vmatprep.subr.bf16.mxu0 %v4037_v28 }
  0xd0   :  { %2521 = vmatprep.subr.bf16.mxu1 %v4040_v29  ;;  %2409 = vmatpush1.bf16.msra.mxu0 %v4035_v34 }
  0xd1   :  { %2522 = vmatpush1.bf16.msra.mxu1 %v4038_v35  ;;  %2410 = vmatprep.subr.bf16.mxu0 %v4043_v56 }
  0xd2   :  { %2523 = vmatprep.subr.bf16.mxu1 %v4046_v57 }
  0xd5   :  { %1338 = vmatmul.mubr.bf16.gmra.mxu0 %v4447_v40  ;;  %v4041_v40 = vld [vmem:[#allocation10 + $0x60] ss:$16 sps:$4 sm:$0xff]  }
  0xd6   :  { %1451 = vmatmul.mubr.bf16.gmra.mxu1 %v4449_v41  ;;  %1347 = vmatprep.mubr.bf16.mxu0 %v4451_v46  ;;  %v4044_v41 = vld [vmem:[#allocation10 + $0x68] ss:$16 sps:$4 sm:$0xff]   ;;  %v4049_v46 = vld [vmem:[#allocation10 + $0x44] ss:$16 sps:$4 sm:$0xff]  }
  0xd7   :  { %1460 = vmatprep.mubr.bf16.mxu1 %v4453_v47  ;;  %v4052_v47 = vld [vmem:[#allocation10 + $0x4c] ss:$16 sps:$4 sm:$0xff]   ;;  %2411 = vmatpush1.bf16.msra.mxu0 %v4041_v40 }
  0xd8   :  { %2524 = vmatpush1.bf16.msra.mxu1 %v4044_v41  ;;  %2412 = vmatprep.subr.bf16.mxu0 %v4049_v46 }
  0xd9   :  { %2525 = vmatprep.subr.bf16.mxu1 %v4052_v47 }
  0xdb   :  { %2413 = vmatpush1.bf16.msra.mxu0 %v4047_v58 }
  0xdc   :  { %2526 = vmatpush1.bf16.msra.mxu1 %v4050_v59  ;;  %2414 = vmatprep.subr.bf16.mxu0 %v4055_v62 }
  0xdd   :  { %1348 = vmatmul.mubr.bf16.gmra.mxu0 %v4459_v54  ;;  %v4053_v54 = vld [vmem:[#allocation10 + $0x20] ss:$16 sps:$4 sm:$0xff]   ;;  %2527 = vmatprep.subr.bf16.mxu1 %v4058_v63 }
  0xde   :  { %1461 = vmatmul.mubr.bf16.gmra.mxu1 %v4461_v55  ;;  %1357 = vmatprep.mubr.bf16.mxu0 %v4463_v60  ;;  %v4056_v55 = vld [vmem:[#allocation10 + $0x28] ss:$16 sps:$4 sm:$0xff]   ;;  %v4061_v60 = vld [vmem:[#allocation10 + $0x4] ss:$16 sps:$4 sm:$0xff]  }
  0xdf   :  { %1470 = vmatprep.mubr.bf16.mxu1 %v4465_v61  ;;  %v4064_v61 = vld [vmem:[#allocation10 + $0xc] ss:$16 sps:$4 sm:$0xff]   ;;  %2415 = vmatpush1.bf16.msra.mxu0 %v4053_v54 }
  0xe0   :  { %2528 = vmatpush1.bf16.msra.mxu1 %v4056_v55  ;;  %2416 = vmatprep.subr.bf16.mxu0 %v4061_v60 }
  0xe1   :  { %2529 = vmatprep.subr.bf16.mxu1 %v4064_v61 }
  0xe3   :  { %2417 = vmatpush1.bf16.msra.mxu0 %v4059_v0 }
  0xe4   :  { %2530 = vmatpush1.bf16.msra.mxu1 %v4062_v1  ;;  %2418 = vmatprep.subr.bf16.mxu0 %v4067_v6 }
  0xe5   :  { %1358 = vmatmul.mubr.bf16.gmra.mxu0 %v4471_v2  ;;  %v4065_v2 = vld [vmem:[#allocation10 + $0x1e0] ss:$16 sps:$4 sm:$0xff]   ;;  %2531 = vmatprep.subr.bf16.mxu1 %v4070_v7 }
  0xe6   :  { %1471 = vmatmul.mubr.bf16.gmra.mxu1 %v4473_v3  ;;  %1367 = vmatprep.mubr.bf16.mxu0 %v4475_v14  ;;  %v4068_v3 = vld [vmem:[#allocation10 + $0x1e8] ss:$16 sps:$4 sm:$0xff]   ;;  %v4079_v14 = vld [vmem:[#allocation10 + $0x1a4] ss:$16 sps:$4 sm:$0xff]  }
  0xe7   :  { %1480 = vmatprep.mubr.bf16.mxu1 %v4477_v15  ;;  %2419 = vmatpush2.bf16.msra.mxu0 %v4065_v2  ;;  %v4082_v15 = vld [vmem:[#allocation10 + $0x1ac] ss:$16 sps:$4 sm:$0xff]  }
  0xe8   :  { %2532 = vmatpush2.bf16.msra.mxu1 %v4068_v3  ;;  %2420 = vmatprep.subr.bf16.mxu0 %v4073_v8 }
  0xe9   :  { %2533 = vmatprep.subr.bf16.mxu1 %v4076_v9 }
  0xeb   :  { %2421 = vmatpush2.bf16.msra.mxu0 %v4071_v12  ;;  %v1597_v12 = vlaneseq }
  0xec   :  { %2534 = vmatpush2.bf16.msra.mxu1 %v4074_v13  ;;  %2422 = vmatprep.subr.bf16.mxu0 %v4079_v14 }
  0xed   :  { %1368 = vmatmul.mubr.bf16.gmra.mxu0 %v4481_v20  ;;  %2535 = vmatprep.subr.bf16.mxu1 %v4082_v15  ;;  %v4085_v20 = vld [vmem:[#allocation10 + $0x184] ss:$16 sps:$4 sm:$0xff]  }
  0xee   :  { %1481 = vmatmul.mubr.bf16.gmra.mxu1 %v4483_v21  ;;  %1377 = vmatprep.mubr.bf16.mxu0 %v4487_v30  ;;  %v4088_v21 = vld [vmem:[#allocation10 + $0x18c] ss:$16 sps:$4 sm:$0xff]   ;;  %v4089_v30 = vld [vmem:[#allocation10 + $0x160] ss:$16 sps:$4 sm:$0xff]  }
  0xef   :  { %1490 = vmatprep.mubr.bf16.mxu1 %v4489_v31  ;;  %2423 = vmatpush2.bf16.msra.mxu0 %v4077_v18  ;;  %v4092_v31 = vld [vmem:[#allocation10 + $0x168] ss:$16 sps:$4 sm:$0xff]  }
  0xf0   :  { %2536 = vmatpush2.bf16.msra.mxu1 %v4080_v19  ;;  %2424 = vmatprep.subr.bf16.mxu0 %v4085_v20 }
  0xf1   :  { %2537 = vmatprep.subr.bf16.mxu1 %v4088_v21  ;;  %v4569_v21 = vld [vmem:[#allocation5 + $0x8] sm:$0xff] }
  0xf3   :  { %2425 = vmatpush2.bf16.msra.mxu0 %v4083_v24  ;;  %v4571_v24 = vand.u32 127, %v1597_v12 }
  0xf4   :  { %2538 = vmatpush2.bf16.msra.mxu1 %v4086_v25  ;;  %2426 = vmatprep.subr.bf16.mxu0 %v4091_v26 }
  0xf5   :  { %1378 = vmatmul.mubr.bf16.gmra.mxu0 %v4493_v38  ;;  %2539 = vmatprep.subr.bf16.mxu1 %v4094_v27  ;;  %v4103_v38 = vld [vmem:[#allocation10 + $0x124] ss:$16 sps:$4 sm:$0xff]   ;;  %v4577_v27 = vld [vmem:[#allocation5 + $0x18] sm:$0xff]  ;;  %vm1600_vm0 = vcmp.gt.s32.totalorder %v4571_v24, 0 }
  0xf6   :  { %1491 = vmatmul.mubr.bf16.gmra.mxu1 %v4495_v39  ;;  %v4106_v39 = vld [vmem:[#allocation10 + $0x12c] ss:$16 sps:$4 sm:$0xff]   ;;  %v4194_v24 = vld [vmem:[#allocation8 + $0x148] ss:$16 sps:$4 sm:$0xff]  }
  0xf7   :  { %2427 = vmatpush2.bf16.msra.mxu0 %v4089_v30 }
  0xf8   :  { %2540 = vmatpush2.bf16.msra.mxu1 %v4092_v31  ;;  %2428 = vmatprep.subr.bf16.mxu0 %v4097_v32  ;;  %v5807_v32 = vunpack.c.l.bf16 %v4569_v21 }
  0xf9   :  { %2541 = vmatprep.subr.bf16.mxu1 %v4100_v33  ;;  %v4580_v33 = vld [vmem:[#allocation5 + $0x28] sm:$0xff] }
  0xfa   :  { %5914 = vst [vmem:[#allocation20_spill] sm:$0xff] %v4580_v33 }
  0xfb   :  { %2429 = vmatpush2.bf16.msra.mxu0 %v4095_v36 }
  0xfc   :  { %2542 = vmatpush2.bf16.msra.mxu1 %v4098_v37  ;;  %2430 = vmatprep.subr.bf16.mxu0 %v4103_v38  ;;  %v4584_v37 = vld [vmem:[#allocation5] sm:$0xff] }
  0xfd   :  { %2543 = vmatprep.subr.bf16.mxu1 %v4106_v39  ;;  %5916 = vst [vmem:[#allocation22_spill] sm:$0xff] %v4584_v37 }
  0xff   :  { %2431 = vmatpush2.bf16.msra.mxu0 %v4101_v42  ;;  %v4587_v42 = vld [vmem:[#allocation5 + $0x10] sm:$0xff] }
 0x100   :  { %2544 = vmatpush2.bf16.msra.mxu1 %v4104_v43  ;;  %2432 = vmatprep.subr.bf16.mxu0 %v4109_v44  ;;  %v5806_v43 = vunpack.c.l.bf16 %v4577_v27  ;;  %v4590_v44 = vld [vmem:[#allocation5 + $0x38] sm:$0xff] }
 0x101   :  { %2545 = vmatprep.subr.bf16.mxu1 %v4112_v45  ;;  %5917 = vst [vmem:[#allocation23_spill] sm:$0xff] %v4590_v44 }
 0x103   :  { %2433 = vmatpush2.bf16.msra.mxu0 %v4107_v48  ;;  %v5805_v48 = vunpack.c.l.bf16 %v4580_v33 }
 0x104   :  { %2546 = vmatpush2.bf16.msra.mxu1 %v4110_v50  ;;  %2948 = vmatprep.subr.bf16.mxu0 %v4115_v49  ;;  %v4595_v50 = vld [vmem:[#allocation5 + $0x48] sm:$0xff] }
 0x105   :  { %3061 = vmatprep.subr.bf16.mxu1 %v4118_v51  ;;  %5919 = vst [vmem:[#allocation25_spill] sm:$0xff] %v4595_v50 }
 0x13d   :  { %v1083_v52 = vpop.f32.mrf.mxu0 }
 0x13e   :  { %v1196_v53 = vpop.f32.mrf.mxu1 }
 0x13f   :  { %v4533_v4 = vadd.f32 %v1196_v53, %v1083_v52  ;;  %v1085_v5 = vpop.f32.mrf.mxu0  ;;  %v4602_v53 = vsel %vm1600_vm0, %v5807_v32, 0.0 }
 0x140   :  { %v1198_v10 = vpop.f32.mrf.mxu1 }
 0x141   :  { %v4535_v11 = vadd.f32 %v1198_v10, %v1085_v5  ;;  %v1087_v16 = vpop.f32.mrf.mxu0  ;;  %v4604_v5 = vld [vmem:[#allocation5 + $0x20] sm:$0xff] }
 0x142   :  { %v1200_v17 = vpop.f32.mrf.mxu1  ;;  %5920 = vst [vmem:[#allocation26_spill] sm:$0xff] %v4604_v5 }
 0x143   :  { %5910 = vst [vmem:[#allocation16_spill] sm:$0xff] %v4535_v11  ;;  %v4537_v22 = vadd.f32 %v1200_v17, %v1087_v16  ;;  %v4539_v23 = vpop.f32.mrf.mxu0  ;;  %v4693_v17 = vld [vmem:[#allocation5 + $0xb8] sm:$0xff] }
 0x144   :  { %v4541_v28 = vpop.f32.mrf.mxu1 }
 0x145   :  { %v1093_v29 = vpop.f32.mrf.mxu0 }
 0x146   :  { %v1206_v34 = vpop.f32.mrf.mxu1 }
 0x147   :  { %v4543_v35 = vadd.f32 %v1206_v34, %v1093_v29  ;;  %v1095_v56 = vpop.f32.mrf.mxu0  ;;  %v4611_v34 = vld [vmem:[#allocation5 + $0x30] sm:$0xff] }
 0x148   :  { %v1208_v57 = vpop.f32.mrf.mxu1  ;;  %5922 = vst [vmem:[#allocation28_spill] sm:$0xff] %v4611_v34 }
 0x149   :  { %v4545_v40 = vadd.f32 %v1208_v57, %v1095_v56  ;;  %v1097_v41 = vpop.f32.mrf.mxu0  ;;  %v5808_v56 = vunpack.c.l.bf16 %v4590_v44  ;;  %v4614_v57 = vld [vmem:[#allocation5 + $0x58] sm:$0xff] }
 0x14a   :  { %v1210_v46 = vpop.f32.mrf.mxu1  ;;  %5923 = vst [vmem:[#allocation29_spill] sm:$0xff] %v4614_v57 }
 0x14b   :  { %5911 = vst [vmem:[#allocation17_spill] sm:$0xff] %v4545_v40  ;;  %v4547_v47 = vadd.f32 %v1210_v46, %v1097_v41  ;;  %v4549_v58 = vpop.f32.mrf.mxu0 }
 0x14c   :  { %v4551_v59 = vpop.f32.mrf.mxu1 }
 0x14d   :  { %v1103_v62 = vpop.f32.mrf.mxu0 }
 0x14e   :  { %v1216_v63 = vpop.f32.mrf.mxu1 }
 0x14f   :  { %v4553_v54 = vadd.f32 %v1216_v63, %v1103_v62  ;;  %v1105_v55 = vpop.f32.mrf.mxu0  ;;  %v4620_v62 = vsel %vm1600_vm0, %v5806_v43, 0.0 }
 0x150   :  { %v1218_v60 = vpop.f32.mrf.mxu1 }
 0x151   :  { %v4555_v61 = vadd.f32 %v1218_v60, %v1105_v55  ;;  %v1107_v0 = vpop.f32.mrf.mxu0  ;;  %v5809_v55 = vunpack.c.l.bf16 %v4595_v50  ;;  %v4624_v60 = vld [vmem:[#allocation5 + $0x68] sm:$0xff] }
 0x152   :  { %v1220_v1 = vpop.f32.mrf.mxu1  ;;  %5924 = vst [vmem:[#allocation30_spill] sm:$0xff] %v4624_v60  ;;  %v5813_v12 = vunpack.c.l.bf16 %v4624_v60 }
 0x153   :  { %5912 = vst [vmem:[#allocation18_spill] sm:$0xff] %v4555_v61  ;;  %v4557_v6 = vadd.f32 %v1220_v1, %v1107_v0  ;;  %v4559_v7 = vpop.f32.mrf.mxu0 }
 0x154   :  { %v4561_v2 = vpop.f32.mrf.mxu1  ;;  %v4700_v1 = vsel %vm1600_vm0, %v5813_v12, 0.0 }
 0x155   :  { %v1113_v3 = vpop.f32.mrf.mxu0  ;;  %5938 = vst [vmem:[#allocation44_spill] sm:$0xff] %v4700_v1 }
 0x156   :  { %v1226_v8 = vpop.f32.mrf.mxu1 }
 0x157   :  { %v4563_v9 = vadd.f32 %v1226_v8, %v1113_v3  ;;  %v1115_v13 = vpop.f32.mrf.mxu0  ;;  %v4634_v8 = vsel %vm1600_vm0, %v5805_v48, 0.0  ;;  %v4676_v3 = vld [vmem:[#allocation5 + $0x70] sm:$0xff] }
 0x158   :  { %v1228_v14 = vpop.f32.mrf.mxu1  ;;  %5934 = vst [vmem:[#allocation40_spill] sm:$0xff] %v4676_v3 }
 0x159   :  { %v4565_v15 = vadd.f32 %v1228_v14, %v1115_v13  ;;  %v1117_v18 = vpop.f32.mrf.mxu0  ;;  %v4637_v13 = vld [vmem:[#allocation5 + $0x40] sm:$0xff]  ;;  %v4639_v14 = vld [vmem:[#allocation5 + $0x78] sm:$0xff] }
 0x15a   :  { %v1230_v19 = vpop.f32.mrf.mxu1  ;;  %5926 = vst [vmem:[#allocation32_spill] sm:$0xff] %v4637_v13  ;;  %5927 = vst [vmem:[#allocation33_spill] sm:$0xff] %v4639_v14 }
 0x15b   :  { %5913 = vst [vmem:[#allocation19_spill] sm:$0xff] %v4565_v15  ;;  %v4567_v20 = vadd.f32 %v1230_v19, %v1117_v18  ;;  %v4573_v25 = vpop.f32.mrf.mxu0 }
 0x15c   :  { %v4575_v26 = vpop.f32.mrf.mxu1 }
 0x15d   :  { %v1123_v30 = vpop.f32.mrf.mxu0 }
 0x15e   :  { %v1236_v31 = vpop.f32.mrf.mxu1 }
 0x15f   :  { %v4582_v36 = vadd.f32 %v1236_v31, %v1123_v30  ;;  %v1125_v38 = vpop.f32.mrf.mxu0  ;;  %v4669_v31 = vld [vmem:[#allocation5 + $0x98] sm:$0xff]  ;;  %v4689_v30 = vld [vmem:[#allocation5 + $0x80] sm:$0xff] }
 0x160   :  { %v1238_v39 = vpop.f32.mrf.mxu1  ;;  %5932 = vst [vmem:[#allocation38_spill] sm:$0xff] %v4669_v31  ;;  %5936 = vst [vmem:[#allocation42_spill] sm:$0xff] %v4689_v30 }
 0x161   :  { %5915 = vst [vmem:[#allocation21_spill] sm:$0xff] %v4582_v36  ;;  %v4592_v45 = vadd.f32 %v1238_v39, %v1125_v38  ;;  %v1127_v49 = vpop.f32.mrf.mxu0  ;;  %v4643_v38 = vld [vmem:[#allocation5 + $0x50] sm:$0xff]  ;;  %v5810_v39 = vunpack.c.l.bf16 %v4614_v57 }
 0x162   :  { %v1240_v51 = vpop.f32.mrf.mxu1  ;;  %5928 = vst [vmem:[#allocation34_spill] sm:$0xff] %v4643_v38 }
 0x163   :  { %5918 = vst [vmem:[#allocation24_spill] sm:$0xff] %v4592_v45  ;;  %v4606_v10 = vadd.f32 %v1240_v51, %v1127_v49  ;;  %v1129_v41 = vpop.f32.mrf.mxu0  ;;  %v4646_v49 = vld [vmem:[#allocation5 + $0x88] sm:$0xff] }
 0x164   :  { %v1242_v46 = vpop.f32.mrf.mxu1  ;;  %5929 = vst [vmem:[#allocation35_spill] sm:$0xff] %v4646_v49 }
 0x165   :  { %5921 = vst [vmem:[#allocation27_spill] sm:$0xff] %v4606_v10  ;;  %v4626_v0 = vadd.f32 %v1242_v46, %v1129_v41  ;;  %v1133_v18 = vpop.f32.mrf.mxu0  ;;  %v4654_v41 = vsel %vm1600_vm0, %v5808_v56, 0.0  ;;  %v4703_v56 = vld [vmem:[#allocation5 + $0x90] sm:$0xff]  ;;  %v4726_v10 = vld [vmem:[#allocation5 + $0xa0] sm:$0xff] }
 0x166   :  { %v1246_v19 = vpop.f32.mrf.mxu1  ;;  %5939 = vst [vmem:[#allocation45_spill] sm:$0xff] %v4703_v56  ;;  %5946 = vst [vmem:[#allocation50_spill] sm:$0xff] %v4726_v10 }
 0x167   :  { %5925 = vst [vmem:[#allocation31_spill] sm:$0xff] %v4626_v0  ;;  %v4648_v51 = vadd.f32 %v1246_v19, %v1133_v18  ;;  %v1135_v43 = vpop.f32.mrf.mxu0  ;;  %v4664_v18 = vsel %vm1600_vm0, %v5809_v55, 0.0  ;;  %v4666_v19 = vld [vmem:[#allocation5 + $0x60] sm:$0xff]  ;;  %v4679_v55 = vld [vmem:[#allocation5 + $0xa8] sm:$0xff]  ;;  %v5944_v0 = vunpack.c.l.bf16 %v4646_v49 }
 0x168   :  { %v1248_v32 = vpop.f32.mrf.mxu1  ;;  %5931 = vst [vmem:[#allocation37_spill] sm:$0xff] %v4666_v19  ;;  %5935 = vst [vmem:[#allocation41_spill] sm:$0xff] %v4679_v55  ;;  %v4747_v49 = vld [vmem:[#allocation5 + $0xe8] sm:$0xff] }
 0x169   :  { %5930 = vst [vmem:[#allocation36_spill] sm:$0xff] %v4648_v51  ;;  %v4671_v46 = vadd.f32 %v1248_v32, %v1135_v43  ;;  %v1137_v63 = vpop.f32.mrf.mxu0  ;;  %v4685_v32 = vsel %vm1600_vm0, %v5810_v39, 0.0  ;;  %v4716_v51 = vld [vmem:[#allocation5 + $0xc8] sm:$0xff]  ;;  %5952 = vst [vmem:[#allocation55_spill] sm:$0xff] %v4747_v49 }
 0x16a   :  { %v1250_v29 = vpop.f32.mrf.mxu1  ;;  %5943 = vst [vmem:[#allocation48_spill] sm:$0xff] %v4716_v51 }
 0x16b   :  { %5933 = vst [vmem:[#allocation39_spill] sm:$0xff] %v4671_v46  ;;  %v4691_v16 = vadd.f32 %v1250_v29, %v1137_v63  ;;  %v1139_v48 = vpop.f32.mrf.mxu0  ;;  %v5940_v63 = vunpack.c.l.bf16 %v4639_v14  ;;  %v4724_v29 = vsel %vm1600_vm0, %v5944_v0, 0.0  ;;  %v5950_v0 = vunpack.c.l.bf16 %v4669_v31 }
 0x16c   :  { %v1252_v46 = vpop.f32.mrf.mxu1  ;;  %5945 = vst [vmem:[#allocation49_spill] sm:$0xff] %v4724_v29 }
 0x16d   :  { %5937 = vst [vmem:[#allocation43_spill] sm:$0xff] %v4691_v16  ;;  %v4711_v52 = vsel %vm1600_vm0, %v5940_v63, 0.0  ;;  %v4714_v12 = vadd.f32 %v1252_v46, %v1139_v48  ;;  %v1143_v45 = vpop.f32.mrf.mxu0  ;;  %v4729_v48 = vld [vmem:[#allocation5 + $0xd8] sm:$0xff]  ;;  %v4742_v29 = vsel %vm1600_vm0, %v5950_v0, 0.0  ;;  %v4756_v0 = vld [vmem:[#allocation5 + $0xc0] sm:$0xff] }
 0x16e   :  { %5941 = vst [vmem:[#allocation46_spill] sm:$0xff] %v4711_v52  ;;  %v1256_v16 = vpop.f32.mrf.mxu1  ;;  %5947 = vst [vmem:[#allocation51_spill] sm:$0xff] %v4729_v48  ;;  %v4761_v63 = vld [vmem:[#allocation5 + $0xf8] sm:$0xff]  ;;  %v4778_v46 = vld [vmem:[#allocation5 + $0xe0] sm:$0xff]  ;;  %v5962_v43 = vunpack.c.l.bf16 %v4729_v48 }
 0x16f   :  { %5942 = vst [vmem:[#allocation47_spill] sm:$0xff] %v4714_v12  ;;  %v4734_v12 = vld [vmem:[#allocation5 + $0xb0] sm:$0xff]  ;;  %v4736_v36 = vadd.f32 %v1256_v16, %v1143_v45  ;;  %5951 = vst [vmem:[#allocation54_spill] sm:$0xff] %v4742_v29  ;;  %v1145_v30 = vpop.f32.mrf.mxu0  ;;  %v5953_v45 = vunpack.c.l.bf16 %v4679_v55  ;;  %v5957_v29 = vunpack.c.l.bf16 %v4693_v17  ;;  %v5960_v55 = vunpack.c.l.bf16 %v4716_v51 }
 0x170   :  { %5948 = vst [vmem:[#allocation52_spill] sm:$0xff] %v4734_v12  ;;  %v1258_v39 = vpop.f32.mrf.mxu1  ;;  %5955 = vst [vmem:[#allocation57_spill] sm:$0xff] %v4756_v0  ;;  %v4796_v31 = vsel %vm1600_vm0, %v5962_v43, 0.0  ;;  %v5964_v43 = vunpack.c.l.bf16 %v4747_v49 }
 0x171   :  { %5949 = vst [vmem:[#allocation53_spill] sm:$0xff] %v4736_v36  ;;  %v4754_v16 = vsel %vm1600_vm0, %v5953_v45, 0.0  ;;  %v4758_v36 = vadd.f32 %v1258_v39, %v1145_v30  ;;  %v4770_v45 = vsel %vm1600_vm0, %v5957_v29, 0.0  ;;  %v4772_v30 = vld [vmem:[#allocation5 + $0xd0] sm:$0xff]  ;;  %v4786_v29 = vsel %vm1600_vm0, %v5960_v55, 0.0 }
 0x172   :  { %5954 = vst [vmem:[#allocation56_spill] sm:$0xff] %v4754_v16  ;;  %5958 = vst [vmem:[#allocation59_spill] sm:$0xff] %v4770_v45  ;;  %v1147_v16 = vpop.f32.mrf.mxu0  ;;  %v1260_v56 = vpop.f32.mrf.mxu1  ;;  %v4800_v55 = vld [vmem:[#allocation5 + $0xf0] sm:$0xff]  ;;  %v1203_v45 = vadd.f32 %v4541_v28, %v4539_v23  ;;  %v5965_v28 = vunpack.c.l.bf16 %v4584_v37  ;;  %v4832_v23 = vmul.f32 %v4602_v53, %v4533_v4 }
 0x173   :  { %5956 = vst [vmem:[#allocation58_spill] sm:$0xff] %v4758_v36  ;;  %v4776_v36 = vadd.f32 %v1260_v56, %v1147_v16  ;;  %5961 = vst [vmem:[#allocation61_spill] sm:$0xff] %v4786_v29 }
 0x174   :  { %v1149_v10 = vpop.f32.mrf.mxu0  ;;  %v1262_v39 = vpop.f32.mrf.mxu1  ;;  %5963 = vst [vmem:[#allocation62_spill] sm:$0xff] %v4800_v55  ;;  %v4820_v14 = vmul.f32 %v5965_v28, %v4533_v4  ;;  %v5968_v28 = vunpack.c.h.bf16 %v4569_v21  ;;  %v4852_v4 = vmul.f32 %v4620_v62, %v4537_v22 }
 0x175   :  { %5959 = vst [vmem:[#allocation60_spill] sm:$0xff] %v4776_v36  ;;  %v4798_v36 = vadd.f32 %v1262_v39, %v1149_v10  ;;  %v4813_v10 = vsel %vm1600_vm0, %v5964_v43, 0.0  ;;  %v5971_v43 = vunpack.c.h.bf16 %v4587_v42 }
 0x176   :  { %v1153_v56 = vpop.f32.mrf.mxu0  ;;  %v1266_v51 = vpop.f32.mrf.mxu1  ;;  %v4837_v39 = vmul.f32 %v5968_v28, %v4535_v11  ;;  %v4860_v28 = vadd.f32 %v4561_v2, %v4559_v7  ;;  %v5976_v7 = vunpack.c.h.bf16 %v4580_v33 }
 0x177   :  { %v4807_v0 = vadd.f32 %v1266_v51, %v1153_v56  ;;  %v5966_v56 = vunpack.c.l.bf16 %v4761_v63  ;;  %v4841_v51 = vadd.f32 %v4551_v59, %v4549_v58  ;;  %v4856_v55 = vmul.f32 %v5971_v43, %v1203_v45 }
 0x178   :  { %v1155_v29 = vpop.f32.mrf.mxu0  ;;  %v1268_v48 = vpop.f32.mrf.mxu1  ;;  %5973 = vst [vmem:[#allocation66_spill] sm:$0xff] %v4860_v28  ;;  %v4880_v2 = vmul.f32 %v5976_v7, %v4545_v40  ;;  %v5980_v40 = vunpack.c.l.bf16 %v4637_v13 }
 0x179   :  { %v4827_v16 = vsel %vm1600_vm0, %v5966_v56, 0.0  ;;  %5969 = vst [vmem:[#allocation64_spill] sm:$0xff] %v4841_v51  ;;  %v4843_v49 = vadd.f32 %v1268_v48, %v1155_v29  ;;  %v5970_v56 = vunpack.c.l.bf16 %v4587_v42  ;;  %5972 = vst [vmem:[#allocation65_spill] sm:$0xff] %v4856_v55  ;;  %v5974_v48 = vunpack.c.h.bf16 %v4577_v27 }
 0x17a   :  { %5967 = vst [vmem:[#allocation63_spill] sm:$0xff] %v4827_v16  ;;  %v1157_v58 = vpop.f32.mrf.mxu0  ;;  %v1270_v59 = vpop.f32.mrf.mxu1  ;;  %v5979_v55 = vunpack.c.h.bf16 %v4590_v44 }
 0x17b   :  { %v4848_v16 = vmul.f32 %v5970_v56, %v4537_v22  ;;  %v4864_v29 = vmul.f32 %v5974_v48, %v1203_v45  ;;  %v5975_v56 = vunpack.c.l.bf16 %v4604_v5  ;;  %v4873_v22 = vmul.f32 %v4634_v8, %v4543_v35 }
 0x17c   :  { %v4875_v43 = vadd.f32 %v1270_v59, %v1157_v58  ;;  %v5977_v45 = vunpack.c.l.bf16 %v4611_v34  ;;  %v1159_v58 = vpop.f32.mrf.mxu0  ;;  %v1272_v59 = vpop.f32.mrf.mxu1  ;;  %v4898_v7 = vmul.f32 %v5979_v55, %v4841_v51  ;;  %v5984_v55 = vunpack.c.l.bf16 %v4643_v38 }
 0x17d   :  { %v4869_v11 = vmul.f32 %v5975_v56, %v4543_v35  ;;  %v4889_v56 = vmul.f32 %v4654_v41, %v4547_v47  ;;  %v4893_v35 = vadd.f32 %v4575_v26, %v4573_v25  ;;  %v4909_v33 = vadd.f32 %v1272_v59, %v1159_v58 }
 0x17e   :  { %v4885_v48 = vmul.f32 %v5977_v45, %v4547_v47  ;;  %v4903_v45 = vmul.f32 %v5980_v40, %v4553_v54  ;;  %v4907_v47 = vmul.f32 %v4664_v18, %v4553_v54  ;;  %v5982_v25 = vunpack.c.h.bf16 %v4595_v50  ;;  %v1309_v58 = vpop.f32.mrf.mxu0  ;;  %v1422_v59 = vpop.f32.mrf.mxu1 }
 0x17f   :  { %5978 = vst [vmem:[#allocation67_spill] sm:$0xff] %v4893_v35  ;;  %v4919_v51 = vmul.f32 %v5984_v55, %v4557_v6  ;;  %v4923_v40 = vmul.f32 %v4685_v32, %v4557_v6  ;;  %v5986_v54 = vunpack.c.h.bf16 %v4614_v57  ;;  %v4937_v55 = vmul.f32 %v4700_v1, %v4563_v9  ;;  %v6000_v1 = vld [vmem:[#allocation42_spill] sm:$0xff]  ;;  %v6018_v57 = vld [vmem:[#allocation31_spill] sm:$0xff] }
 0x180   :  { %5981 = vst [vmem:[#allocation68_spill] sm:$0xff] %v4907_v47  ;;  %v4914_v26 = vmul.f32 %v5982_v25, %v4555_v61  ;;  %v5988_v25 = vunpack.c.l.bf16 %v4666_v19  ;;  %v5991_v6 = vunpack.c.h.bf16 %v4624_v60  ;;  %v6001_v60 = vunpack.c.l.bf16 %v6000_v1 }
 0x181   :  { %5985 = vst [vmem:[#allocation70_spill] sm:$0xff] %v4923_v40  ;;  %v4928_v47 = vmul.f32 %v5986_v54, %v4860_v28  ;;  %5990 = vst [vmem:[#allocation73_spill] sm:$0xff] %v4937_v55  ;;  %v5993_v54 = vunpack.c.l.bf16 %v4676_v3  ;;  %v5999_v55 = vld [vmem:[#allocation21_spill] sm:$0xff]  ;;  %v6025_v3 = vld [vmem:[#allocation50_spill] sm:$0xff] }
 0x182   :  { %5983 = vst [vmem:[#allocation69_spill] sm:$0xff] %v4914_v26  ;;  %v4933_v61 = vmul.f32 %v5988_v25, %v4563_v9  ;;  %v4942_v50 = vmul.f32 %v5991_v6, %v4565_v15  ;;  %v1423_v26 = vadd.f32 %v1422_v59, %v1309_v58  ;;  %v5996_v25 = vld [vmem:[#allocation33_spill] sm:$0xff]  ;;  %v4961_v6 = vmul.f32 %v6001_v60, %v5999_v55  ;;  %v1311_v58 = vpop.f32.mrf.mxu0  ;;  %v1424_v59 = vpop.f32.mrf.mxu1  ;;  %v6028_v40 = vld [vmem:[#allocation56_spill] sm:$0xff] }
 0x183   :  { %5987 = vst [vmem:[#allocation71_spill] sm:$0xff] %v4928_v47  ;;  %v4947_v28 = vmul.f32 %v5993_v54, %v4567_v20  ;;  %v4951_v47 = vmul.f32 %v4711_v52, %v4567_v20  ;;  %v6003_v15 = vld [vmem:[#allocation49_spill] sm:$0xff]  ;;  %v6006_v20 = vunpack.c.h.bf16 %v6000_v1 }
 0x184   :  { %5989 = vst [vmem:[#allocation72_spill] sm:$0xff] %v4933_v61  ;;  %5992 = vst [vmem:[#allocation74_spill] sm:$0xff] %v4942_v50  ;;  %v5997_v61 = vunpack.c.h.bf16 %v5996_v25  ;;  %v4965_v54 = vmul.f32 %v6003_v15, %v5999_v55  ;;  %v6005_v50 = vld [vmem:[#allocation24_spill] sm:$0xff]  ;;  %v6011_v25 = vld [vmem:[#allocation27_spill] sm:$0xff]  ;;  %v1313_v1 = vpop.f32.mrf.mxu0  ;;  %v1426_v15 = vpop.f32.mrf.mxu1 }
 0x185   :  { %5994 = vst [vmem:[#allocation75_spill] sm:$0xff] %v4947_v28  ;;  %5995 = vst [vmem:[#allocation76_spill] sm:$0xff] %v4951_v47  ;;  %v4970_v47 = vmul.f32 %v6006_v20, %v6005_v50  ;;  %v6012_v28 = vld [vmem:[#allocation45_spill] sm:$0xff]  ;;  %v6015_v20 = vunpack.c.l.bf16 %v4584_v37 }
 0x186   :  { %v4956_v9 = vmul.f32 %v5997_v61, %v4893_v35  ;;  %6002 = vst [vmem:[#allocation21_spill] sm:$0xff] %v4961_v6  ;;  %6004 = vst [vmem:[#allocation78_spill] sm:$0xff] %v4965_v54  ;;  %v1602_v61 = vsel %vm1600_vm0, %v1423_v26, 0.0  ;;  %v4974_v35 = vadd.f32 %v1424_v59, %v1311_v58  ;;  %v6013_v52 = vunpack.c.l.bf16 %v6012_v28  ;;  %v6016_v58 = vld [vmem:[#allocation54_spill] sm:$0xff] }
 0x187   :  { %6007 = vst [vmem:[#allocation24_spill] sm:$0xff] %v4970_v47  ;;  %v1698_v54 = vmul.f32 %v4602_v53, %v1602_v61  ;;  %v1794_v47 = vmul.f32 %v1602_v61, %v6015_v20  ;;  %v4991_v59 = vmul.f32 %v6016_v58, %v6011_v25  ;;  %v1427_v53 = vadd.f32 %v1426_v15, %v1313_v1  ;;  %v6033_v15 = vld [vmem:[#allocation41_spill] sm:$0xff] }
 0x188   :  { %5998 = vst [vmem:[#allocation77_spill] sm:$0xff] %v4956_v9  ;;  %v6008_v9 = vld [vmem:[#allocation35_spill] sm:$0xff]  ;;  %v4984_v55 = vmul.f32 %v6013_v52, %v6011_v25  ;;  %v6026_v61 = vunpack.c.l.bf16 %v6025_v3  ;;  %v6034_v1 = vunpack.c.h.bf16 %v6033_v15 }
 0x189   :  { %v6009_v60 = vunpack.c.h.bf16 %v6008_v9  ;;  %6017 = vst [vmem:[#allocation54_spill] sm:$0xff] %v4991_v59  ;;  %v6024_v9 = vld [vmem:[#allocation36_spill] sm:$0xff]  ;;  %v6030_v59 = vld [vmem:[#allocation39_spill] sm:$0xff] }
 0x18a   :  { %6014 = vst [vmem:[#allocation27_spill] sm:$0xff] %v4984_v55  ;;  %v5006_v20 = vmul.f32 %v6026_v61, %v6024_v9  ;;  %v5010_v25 = vmul.f32 %v6028_v40, %v6024_v9  ;;  %v6036_v61 = vld [vmem:[#allocation43_spill] sm:$0xff]  ;;  %v6039_v9 = vunpack.c.h.bf16 %v4584_v37 }
 0x18b   :  { %v4979_v6 = vmul.f32 %v6009_v60, %v6005_v50  ;;  %v6019_v50 = vunpack.c.h.bf16 %v6012_v28  ;;  %v6031_v28 = vunpack.c.h.bf16 %v6025_v3  ;;  %v6043_v37 = vld [vmem:[#allocation47_spill] sm:$0xff] }
 0x18c   :  { %6027 = vst [vmem:[#allocation36_spill] sm:$0xff] %v5006_v20  ;;  %6029 = vst [vmem:[#allocation56_spill] sm:$0xff] %v5010_v25  ;;  %v6037_v20 = vunpack.c.l.bf16 %v4734_v12  ;;  %v1795_v25 = vmul.f32 %v6039_v9, %v4974_v35  ;;  %v6044_v9 = vunpack.c.h.bf16 %v4734_v12 }
 0x18d   :  { %6010 = vst [vmem:[#allocation79_spill] sm:$0xff] %v4979_v6  ;;  %v4996_v60 = vmul.f32 %v6019_v50, %v6018_v57  ;;  %v6021_v6 = vld [vmem:[#allocation38_spill] sm:$0xff]  ;;  %v5015_v50 = vmul.f32 %v6031_v28, %v6030_v59  ;;  %v1604_v28 = vsel %vm1600_vm0, %v1427_v53, 0.0 }
 0x18e   :  { %v6022_v52 = vunpack.c.h.bf16 %v6021_v6  ;;  %v1315_v6 = vpop.f32.mrf.mxu0  ;;  %v5046_v3 = vmul.f32 %v6044_v9, %v6043_v37  ;;  %v6049_v9 = vunpack.c.h.bf16 %v4693_v17 }
 0x18f   :  { %6020 = vst [vmem:[#allocation31_spill] sm:$0xff] %v4996_v60  ;;  %6032 = vst [vmem:[#allocation39_spill] sm:$0xff] %v5015_v50  ;;  %v1730_v60 = vsub.f32 %v4820_v14, %v1698_v54  ;;  %v1826_v14 = vadd.f32 %v1794_v47, %v4832_v23  ;;  %v1700_v54 = vmul.f32 %v4620_v62, %v1604_v28  ;;  %v6040_v50 = vunpack.c.l.bf16 %v4587_v42 }
 0x190   :  { %v5001_v55 = vmul.f32 %v6022_v52, %v6018_v57  ;;  %v1428_v57 = vpop.f32.mrf.mxu1  ;;  %v5021_v52 = vmul.f32 %v6034_v1, %v6030_v59  ;;  %6045 = vst [vmem:[#allocation47_spill] sm:$0xff] %v5046_v3  ;;  %v6046_v23 = vunpack.c.l.bf16 %v4569_v21  ;;  %v5062_v3 = vmul.f32 %v6049_v9, %v6043_v37 }
 0x191   :  { %v1796_v59 = vmul.f32 %v1604_v28, %v6040_v50  ;;  %v5037_v1 = vadd.f32 %v1428_v57, %v1315_v6  ;;  %v1732_v50 = vsub.f32 %v4848_v16, %v1700_v54  ;;  %v6047_v57 = vunpack.c.l.bf16 %v4577_v27 }
 0x192   :  { %6023 = vst [vmem:[#allocation80_spill] sm:$0xff] %v5001_v55  ;;  %6035 = vst [vmem:[#allocation81_spill] sm:$0xff] %v5021_v52  ;;  %v5026_v55 = vmul.f32 %v6037_v20, %v6036_v61  ;;  %v1319_v52 = vpop.f32.mrf.mxu0  ;;  %v1432_v15 = vpop.f32.mrf.mxu1  ;;  %v6041_v20 = vld [vmem:[#allocation59_spill] sm:$0xff]  ;;  %v1858_v47 = vmul.f32 %v6046_v23, %v1423_v26  ;;  %v1827_v26 = vadd.f32 %v1795_v25, %v4837_v39  ;;  %v6053_v39 = vld [vmem:[#allocation57_spill] sm:$0xff] }
 0x193   :  { %v5050_v62 = vadd.f32 %v1432_v15, %v1319_v52  ;;  %v1828_v6 = vadd.f32 %v1796_v59, %v4852_v4  ;;  %v1860_v28 = vmul.f32 %v6047_v57, %v1427_v53  ;;  %v5074_v15 = vpack.c.bf16 %v1732_v50, %v1730_v60  ;;  %v6052_v59 = vld [vmem:[#allocation53_spill] sm:$0xff] }
 0x194   :  { %6038 = vst [vmem:[#allocation43_spill] sm:$0xff] %v5026_v55  ;;  %v5041_v55 = vmul.f32 %v6041_v20, %v6036_v61  ;;  %v6048_v61 = vunpack.c.h.bf16 %v4587_v42  ;;  %v1321_v20 = vpop.f32.mrf.mxu0  ;;  %v1434_v12 = vpop.f32.mrf.mxu1  ;;  %v1890_v53 = vsel %vm1600_vm0, %v1826_v14, %v1858_v47  ;;  %v6054_v25 = vunpack.c.l.bf16 %v6053_v39  ;;  %v6056_v47 = vld [vmem:[#allocation58_spill] sm:$0xff] }
 0x195   :  { %v1606_v16 = vsel %vm1600_vm0, %v5050_v62, 0.0  ;;  %v5068_v4 = vadd.f32 %v1434_v12, %v1321_v20  ;;  %v1892_v42 = vsel %vm1600_vm0, %v1828_v6, %v1860_v28  ;;  %6051 = vst [vmem:[#allocation84_spill] sm:$0xff] %v5074_v15  ;;  %v6055_v12 = vld [vmem:[#allocation61_spill] sm:$0xff]  ;;  %v6057_v60 = vunpack.c.h.bf16 %v6053_v39  ;;  %v6061_v15 = vld [vmem:[#allocation60_spill] sm:$0xff] }
 0x196   :  { %6042 = vst [vmem:[#allocation82_spill] sm:$0xff] %v5041_v55  ;;  %v1797_v55 = vmul.f32 %v6048_v61, %v5037_v1  ;;  %v1323_v37 = vpop.f32.mrf.mxu0  ;;  %v1436_v54 = vpop.f32.mrf.mxu1  ;;  %v5080_v23 = vmul.f32 %v6054_v25, %v6052_v59  ;;  %v5084_v20 = vmul.f32 %v6055_v12, %v6052_v59  ;;  %v2002_v57 = vpack.c.bf16 %v1892_v42, %v1890_v53  ;;  %v4113_v59 = vld [vmem:[#allocation8 + $0xe0] ss:$16 sps:$4 sm:$0xff]   ;;  %v4124_v42 = vld [vmem:[#allocation8 + $0xcc] ss:$16 sps:$4 sm:$0xff]  }
 0x197   :  { %6050 = vst [vmem:[#allocation83_spill] sm:$0xff] %v5068_v4  ;;  %v5087_v14 = vmul.f32 %v4634_v8, %v1606_v16  ;;  %v5092_v50 = vmul.f32 %v6057_v60, %v6056_v47  ;;  %v1437_v28 = vadd.f32 %v1436_v54, %v1323_v37  ;;  %v6062_v53 = vunpack.c.l.bf16 %v4772_v30 }
 0x198   :  { %v1829_v52 = vadd.f32 %v1797_v55, %v4864_v29  ;;  %v6059_v29 = vld [vmem:[#allocation48_spill] sm:$0xff]  ;;  %v1325_v61 = vpop.f32.mrf.mxu0  ;;  %v1438_v9 = vpop.f32.mrf.mxu1  ;;  %v6064_v60 = vunpack.c.h.bf16 %v4604_v5  ;;  %v5113_v37 = vmul.f32 %v4796_v31, %v6061_v15  ;;  %v6069_v54 = vunpack.c.l.bf16 %v4604_v5 }
 0x199   :  { %6058 = vst [vmem:[#allocation53_spill] sm:$0xff] %v5092_v50  ;;  %v6060_v55 = vunpack.c.h.bf16 %v6059_v29  ;;  %v5102_v8 = vmul.f32 %v6062_v53, %v6061_v15  ;;  %v5109_v29 = vadd.f32 %v1438_v9, %v1325_v61  ;;  %v1608_v53 = vsel %vm1600_vm0, %v1437_v28, 0.0  ;;  %v6070_v15 = vld [vmem:[#allocation51_spill] sm:$0xff] }
 0x19a   :  { %v2003_v25 = vpack.c.bf16 %v1829_v52, %v1827_v26  ;;  %v1799_v50 = vmul.f32 %v6064_v60, %v5068_v4  ;;  %6066 = vst [vmem:[#allocation58_spill] sm:$0xff] %v5113_v37  ;;  %v6067_v26 = vunpack.c.h.bf16 %v4772_v30  ;;  %v1329_v61 = vpop.f32.mrf.mxu0  ;;  %v1442_v9 = vpop.f32.mrf.mxu1  ;;  %v4121_v60 = vld [vmem:[#allocation8 + $0xc4] ss:$16 sps:$4 sm:$0xff]   ;;  %v6071_v4 = vunpack.c.h.bf16 %v6070_v15 }
 0x19b   :  { %v5097_v6 = vmul.f32 %v6060_v55, %v6056_v47  ;;  %6063 = vst [vmem:[#allocation57_spill] sm:$0xff] %v5102_v8  ;;  %6065 = vst [vmem:[#allocation61_spill] sm:$0xff] %v5109_v29  ;;  %v4116_v47 = vld [vmem:[#allocation8 + $0xe8] ss:$16 sps:$4 sm:$0xff]   ;;  %v1798_v55 = vmul.f32 %v1606_v16, %v6069_v54  ;;  %v6072_v5 = vunpack.c.l.bf16 %v4611_v34  ;;  %v6073_v54 = vunpack.c.h.bf16 %v4611_v34  ;;  %v4119_v34 = vld [vmem:[#allocation8 + $0xc0] ss:$16 sps:$4 sm:$0xff]  }
 0x19c   :  { %v5118_v52 = vmul.f32 %v6067_v26, %v4798_v36  ;;  %2434 = vmatprep.mubr.bf16.mxu0 %v2003_v25  ;;  %2547 = vmatprep.mubr.bf16.mxu1 %v2003_v25  ;;  %v5127_v37 = vmul.f32 %v6071_v4, %v4798_v36  ;;  %v5130_v26 = vmul.f32 %v4654_v41, %v1608_v53  ;;  %v6074_v25 = vunpack.c.l.bf16 %v4778_v46 }
 0x19d   :  { %v1800_v16 = vmul.f32 %v1608_v53, %v6072_v5  ;;  %2435 = vmatmul.mubr.bf16.vlgmr.msra.gmra.mxu0 %v2002_v57  ;;  %v5144_v36 = vmul.f32 %v4813_v10, %v4807_v0  ;;  %v5147_v4 = vadd.f32 %v1442_v9, %v1329_v61  ;;  %2548 = vmatmul.mubr.bf16.vlgmr.msra.gmra.mxu1 %v2002_v57  ;;  %v1331_v5 = vpop.f32.mrf.mxu0  ;;  %v1444_v53 = vpop.f32.mrf.mxu1  ;;  %v6076_v61 = vunpack.c.l.bf16 %v4590_v44 }
 0x19e   :  { %6068 = vst [vmem:[#allocation60_spill] sm:$0xff] %v5118_v52  ;;  %v1801_v52 = vmul.f32 %v6073_v54, %v5109_v29  ;;  %v5140_v8 = vmul.f32 %v6074_v25, %v4807_v0  ;;  %2949 = vmatpush1.bf16.msra.mxu0 %v4113_v59  ;;  %v1831_v54 = vadd.f32 %v1799_v50, %v4880_v2  ;;  %v4122_v0 = vld [vmem:[#allocation8 + $0xc8] ss:$16 sps:$4 sm:$0xff]  }
 0x19f   :  { %v1736_v29 = vsub.f32 %v4885_v48, %v5130_v26  ;;  %v1832_v25 = vadd.f32 %v1800_v16, %v4889_v56  ;;  %3062 = vmatpush1.bf16.msra.mxu1 %v4116_v47  ;;  %v1830_v41 = vadd.f32 %v1798_v55, %v4873_v22  ;;  %v1864_v57 = vmul.f32 %v6076_v61, %v1437_v28  ;;  %v1333_v2 = vpop.f32.mrf.mxu0  ;;  %v1446_v50 = vpop.f32.mrf.mxu1  ;;  %v4127_v47 = vld [vmem:[#allocation8 + $0xa4] ss:$16 sps:$4 sm:$0xff]   ;;  %v6079_v55 = vld [vmem:[#allocation55_spill] sm:$0xff] }
 0x1a0   :  { %6075 = vst [vmem:[#allocation51_spill] sm:$0xff] %v5140_v8  ;;  %v1833_v8 = vadd.f32 %v1801_v52, %v4898_v7  ;;  %v1610_v59 = vsel %vm1600_vm0, %v5147_v4, 0.0  ;;  %v5160_v9 = vadd.f32 %v1444_v53, %v1331_v5  ;;  %2950 = vmatprep.subr.bf16.mxu0 %v4121_v60  ;;  %3063 = vmatprep.subr.bf16.mxu1 %v4124_v42  ;;  %v6078_v48 = vunpack.c.h.bf16 %v4778_v46  ;;  %v4130_v52 = vld [vmem:[#allocation8 + $0xac] ss:$16 sps:$4 sm:$0xff]   ;;  %v6081_v60 = vld [vmem:[#allocation62_spill] sm:$0xff]  ;;  %v6084_v53 = vld [vmem:[#allocation20_spill] sm:$0xff] }
 0x1a1   :  { %v5168_v22 = vmul.f32 %v4664_v18, %v1610_v59  ;;  %v1447_v7 = vadd.f32 %v1446_v50, %v1333_v2  ;;  %v6080_v26 = vunpack.c.h.bf16 %v6079_v55  ;;  %v6082_v42 = vunpack.c.l.bf16 %v6081_v60  ;;  %v1335_v18 = vpop.f32.mrf.mxu0  ;;  %v1448_v2 = vpop.f32.mrf.mxu1  ;;  %v6086_v50 = vld [vmem:[#allocation63_spill] sm:$0xff] }
 0x1a2   :  { %6077 = vst [vmem:[#allocation85_spill] sm:$0xff] %v5160_v9  ;;  %v5165_v56 = vmul.f32 %v6078_v48, %v4843_v49  ;;  %v2005_v28 = vpack.c.bf16 %v1833_v8, %v1831_v54  ;;  %v6085_v61 = vunpack.c.l.bf16 %v6084_v53  ;;  %2951 = vmatpush1.bf16.msra.mxu0 %v4119_v34  ;;  %v1896_v8 = vsel %vm1600_vm0, %v1832_v25, %v1864_v57  ;;  %v4125_v54 = vld [vmem:[#allocation8 + $0xa0] ss:$16 sps:$4 sm:$0xff]  }
 0x1a3   :  { %v5173_v16 = vmul.f32 %v6080_v26, %v4843_v49  ;;  %v5178_v5 = vmul.f32 %v6082_v42, %v4875_v43  ;;  %v5187_v49 = vmul.f32 %v6086_v50, %v4875_v43  ;;  %v6088_v42 = vunpack.c.l.bf16 %v4637_v13  ;;  %3064 = vmatpush1.bf16.msra.mxu1 %v4122_v0  ;;  %v1339_v26 = vpop.f32.mrf.mxu0  ;;  %v1452_v53 = vpop.f32.mrf.mxu1  ;;  %2952 = vmatprep.subr.bf16.mxu0 %v4127_v47 }
 0x1a4   :  { %v1862_v48 = vmul.f32 %v6085_v61, %v5050_v62  ;;  %v1612_v62 = vsel %vm1600_vm0, %v1447_v7, 0.0  ;;  %2444 = vmatprep.mubr.bf16.mxu0 %v2005_v28  ;;  %v6089_v34 = vunpack.c.h.bf16 %v4637_v13  ;;  %v6090_v43 = vunpack.c.l.bf16 %v4643_v38  ;;  %2557 = vmatprep.mubr.bf16.mxu1 %v2005_v28 }
 0x1a5   :  { %6083 = vst [vmem:[#allocation55_spill] sm:$0xff] %v5178_v5  ;;  %6087 = vst [vmem:[#allocation62_spill] sm:$0xff] %v5187_v49  ;;  %v1802_v44 = vmul.f32 %v1610_v59, %v6088_v42  ;;  %v5199_v57 = vmul.f32 %v4685_v32, %v1612_v62  ;;  %v4128_v42 = vld [vmem:[#allocation8 + $0xa8] ss:$16 sps:$4 sm:$0xff]   ;;  %v4133_v49 = vld [vmem:[#allocation8 + $0x84] ss:$16 sps:$4 sm:$0xff]   ;;  %v5206_v5 = vadd.f32 %v1448_v2, %v1335_v18  ;;  %3065 = vmatprep.subr.bf16.mxu1 %v4130_v52  ;;  %v1454_v0 = vpop.f32.mrf.mxu1 }
 0x1a6   :  { %v1803_v25 = vmul.f32 %v6089_v34, %v5160_v9  ;;  %v1804_v61 = vmul.f32 %v1612_v62, %v6090_v43  ;;  %v1894_v59 = vsel %vm1600_vm0, %v1830_v41, %v1862_v48  ;;  %v1453_v13 = vadd.f32 %v1452_v53, %v1339_v26  ;;  %v4136_v32 = vld [vmem:[#allocation8 + $0x8c] ss:$16 sps:$4 sm:$0xff]   ;;  %v6094_v41 = vld [vmem:[#allocation70_spill] sm:$0xff]  ;;  %2953 = vmatpush1.bf16.msra.mxu0 %v4125_v54  ;;  %v1341_v9 = vpop.f32.mrf.mxu0  ;;  %v6104_v43 = vld [vmem:[#allocation44_spill] sm:$0xff] }
 0x1a7   :  { %6091 = vst [vmem:[#allocation63_spill] sm:$0xff] %v5206_v5  ;;  %v2004_v34 = vpack.c.bf16 %v1896_v8, %v1894_v59  ;;  %v6092_v62 = vunpack.c.h.bf16 %v6081_v60  ;;  %v4131_v18 = vld [vmem:[#allocation8 + $0x80] ss:$16 sps:$4 sm:$0xff]   ;;  %v6095_v53 = vsub.f32 %v4869_v11, %v5087_v14  ;;  %v6097_v52 = vunpack.c.h.bf16 %v4761_v63  ;;  %3066 = vmatpush1.bf16.msra.mxu1 %v4128_v42  ;;  %2954 = vmatprep.subr.bf16.mxu0 %v4133_v49 }
 0x1a8   :  { %v1836_v48 = vadd.f32 %v1804_v61, %v6094_v41  ;;  %v6099_v8 = vld [vmem:[#allocation68_spill] sm:$0xff]  ;;  %v6100_v59 = vunpack.c.h.bf16 %v4643_v38  ;;  %v1614_v54 = vsel %vm1600_vm0, %v1453_v13, 0.0  ;;  %3067 = vmatprep.subr.bf16.mxu1 %v4136_v32  ;;  %v4142_v32 = vld [vmem:[#allocation8 + $0x6c] ss:$16 sps:$4 sm:$0xff]  }
 0x1a9   :  { %v5211_v28 = vmul.f32 %v6092_v62, %v4909_v33  ;;  %v5219_v47 = vpack.c.bf16 %v1736_v29, %v6095_v53  ;;  %v5224_v2 = vmul.f32 %v6097_v52, %v4909_v33  ;;  %v1834_v26 = vadd.f32 %v1802_v44, %v6099_v8  ;;  %2445 = vmatmul.mubr.bf16.gmra.mxu0 %v2004_v34  ;;  %v4139_v62 = vld [vmem:[#allocation8 + $0x64] ss:$16 sps:$4 sm:$0xff]   ;;  %v6102_v29 = vld [vmem:[#allocation29_spill] sm:$0xff]  ;;  %v1343_v52 = vpop.f32.mrf.mxu0  ;;  %v1456_v8 = vpop.f32.mrf.mxu1 }
 0x1aa   :  { %v1805_v61 = vmul.f32 %v6100_v59, %v5206_v5  ;;  %2558 = vmatmul.mubr.bf16.gmra.mxu1 %v2004_v34  ;;  %v6101_v11 = vld [vmem:[#allocation40_spill] sm:$0xff]  ;;  %v6103_v41 = vunpack.c.l.bf16 %v6102_v29  ;;  %v5236_v33 = vmul.f32 %v6104_v43, %v1614_v54  ;;  %v5238_v44 = vadd.f32 %v1454_v0, %v1341_v9  ;;  %v4134_v59 = vld [vmem:[#allocation8 + $0x88] ss:$16 sps:$4 sm:$0xff]   ;;  %2955 = vmatpush1.bf16.msra.mxu0 %v4131_v18  ;;  %v6116_v18 = vld [vmem:[#allocation30_spill] sm:$0xff] }
 0x1ab   :  { %6093 = vst [vmem:[#allocation86_spill] sm:$0xff] %v5211_v28  ;;  %6096 = vst [vmem:[#allocation70_spill] sm:$0xff] %v5219_v47  ;;  %v6106_v47 = vld [vmem:[#allocation69_spill] sm:$0xff]  ;;  %v6107_v5 = vld [vmem:[#allocation71_spill] sm:$0xff]  ;;  %v1457_v28 = vadd.f32 %v1456_v8, %v1343_v52  ;;  %2956 = vmatprep.subr.bf16.mxu0 %v4139_v62  ;;  %v6117_v8 = vunpack.c.l.bf16 %v6116_v18  ;;  %3068 = vmatpush1.bf16.msra.mxu1 %v4134_v59 }
 0x1ac   :  { %6098 = vst [vmem:[#allocation87_spill] sm:$0xff] %v5224_v2  ;;  %v1868_v53 = vmul.f32 %v6103_v41, %v1447_v7  ;;  %6105 = vst [vmem:[#allocation68_spill] sm:$0xff] %v5238_v44  ;;  %v1835_v38 = vadd.f32 %v1803_v25, %v6106_v47  ;;  %v1837_v34 = vadd.f32 %v1805_v61, %v6107_v5  ;;  %v6108_v2 = vunpack.c.l.bf16 %v4666_v19  ;;  %v6111_v9 = vld [vmem:[#allocation25_spill] sm:$0xff]  ;;  %v6113_v49 = vld [vmem:[#allocation72_spill] sm:$0xff]  ;;  %v1345_v25 = vpop.f32.mrf.mxu0  ;;  %v1458_v5 = vpop.f32.mrf.mxu1 }
 0x1ad   :  { %v6109_v7 = vunpack.c.h.bf16 %v4569_v21  ;;  %v6112_v42 = vunpack.c.l.bf16 %v6111_v9  ;;  %v6114_v21 = vunpack.c.h.bf16 %v4666_v19  ;;  %v1616_v61 = vsel %vm1600_vm0, %v1457_v28, 0.0  ;;  %v4145_v52 = vld [vmem:[#allocation8 + $0x44] ss:$16 sps:$4 sm:$0xff]   ;;  %3069 = vmatprep.subr.bf16.mxu1 %v4142_v32  ;;  %v6125_v9 = vld [vmem:[#allocation33_spill] sm:$0xff] }
 0x1ae   :  { %v1806_v14 = vmul.f32 %v1614_v54, %v6108_v2  ;;  %v1900_v47 = vsel %vm1600_vm0, %v1836_v48, %v1868_v53  ;;  %v4137_v2 = vld [vmem:[#allocation8 + $0x60] ss:$16 sps:$4 sm:$0xff]   ;;  %v5261_v54 = vadd.f32 %v1458_v5, %v1345_v25  ;;  %v6119_v48 = vunpack.c.l.bf16 %v6101_v11  ;;  %v1349_v19 = vpop.f32.mrf.mxu0  ;;  %v6120_v25 = vld [vmem:[#allocation73_spill] sm:$0xff] }
 0x1af   :  { %v5247_v43 = vmul.f32 %v6109_v7, %v4974_v35  ;;  %v1866_v0 = vmul.f32 %v6112_v42, %v5147_v4  ;;  %v1807_v35 = vmul.f32 %v6114_v21, %v5238_v44  ;;  %v2007_v4 = vpack.c.bf16 %v1837_v34, %v1835_v38  ;;  %v6118_v42 = vld [vmem:[#allocation46_spill] sm:$0xff]  ;;  %v1462_v21 = vpop.f32.mrf.mxu1  ;;  %v4140_v34 = vld [vmem:[#allocation8 + $0x68] ss:$16 sps:$4 sm:$0xff]   ;;  %2957 = vmatpush1.bf16.msra.mxu0 %v4137_v2 }
 0x1b0   :  { %6115 = vst [vmem:[#allocation69_spill] sm:$0xff] %v5261_v54  ;;  %v1870_v7 = vmul.f32 %v6117_v8, %v1453_v13  ;;  %v5266_v41 = vmul.f32 %v6118_v42, %v1616_v61  ;;  %v1808_v53 = vmul.f32 %v1616_v61, %v6119_v48  ;;  %v1838_v5 = vadd.f32 %v1806_v14, %v6120_v25  ;;  %v6122_v8 = vld [vmem:[#allocation75_spill] sm:$0xff]  ;;  %v6123_v61 = vld [vmem:[#allocation76_spill] sm:$0xff]  ;;  %v1351_v18 = vpop.f32.mrf.mxu0  ;;  %v6124_v14 = vld [vmem:[#allocation74_spill] sm:$0xff] }
 0x1b1   :  { %6110 = vst [vmem:[#allocation44_spill] sm:$0xff] %v5247_v43  ;;  %v1898_v44 = vsel %vm1600_vm0, %v1834_v26, %v1866_v0  ;;  %v6121_v38 = vunpack.c.h.bf16 %v6101_v11  ;;  %2454 = vmatprep.mubr.bf16.mxu0 %v2007_v4  ;;  %2567 = vmatprep.mubr.bf16.mxu1 %v2007_v4  ;;  %v1463_v13 = vadd.f32 %v1462_v21, %v1349_v19  ;;  %v1464_v26 = vpop.f32.mrf.mxu1  ;;  %v4148_v0 = vld [vmem:[#allocation8 + $0x4c] ss:$16 sps:$4 sm:$0xff]   ;;  %v6126_v11 = vunpack.c.l.bf16 %v6125_v9  ;;  %v4143_v21 = vld [vmem:[#allocation8 + $0x40] ss:$16 sps:$4 sm:$0xff]  }
 0x1b2   :  { %v1840_v59 = vadd.f32 %v1808_v53, %v6123_v61  ;;  %v2006_v48 = vpack.c.bf16 %v1900_v47, %v1898_v44  ;;  %v1839_v25 = vadd.f32 %v1807_v35, %v6124_v14  ;;  %2958 = vmatprep.subr.bf16.mxu0 %v4145_v52  ;;  %v6128_v42 = vld [vmem:[#allocation49_spill] sm:$0xff]  ;;  %v6130_v44 = vld [vmem:[#allocation42_spill] sm:$0xff]  ;;  %v1465_v32 = vadd.f32 %v1464_v26, %v1351_v18  ;;  %v1353_v35 = vpop.f32.mrf.mxu0 }
 0x1b3   :  { %v1809_v62 = vmul.f32 %v6121_v38, %v5261_v54  ;;  %v1872_v38 = vmul.f32 %v6126_v11, %v1457_v28  ;;  %v6127_v54 = vld [vmem:[#allocation77_spill] sm:$0xff]  ;;  %v1618_v19 = vsel %vm1600_vm0, %v1463_v13, 0.0  ;;  %v6131_v47 = vunpack.c.l.bf16 %v6130_v44  ;;  %v1466_v61 = vpop.f32.mrf.mxu1  ;;  %3070 = vmatpush1.bf16.msra.mxu1 %v4140_v34  ;;  %v4151_v14 = vld [vmem:[#allocation8 + $0x24] ss:$16 sps:$4 sm:$0xff]   ;;  %2959 = vmatpush1.bf16.msra.mxu0 %v4143_v21 }
 0x1b4   :  { %v5286_v53 = vmul.f32 %v6128_v42, %v1618_v19  ;;  %2455 = vmatmul.mubr.bf16.gmra.mxu0 %v2006_v48  ;;  %2568 = vmatmul.mubr.bf16.gmra.mxu1 %v2006_v48  ;;  %v6132_v28 = vunpack.c.h.bf16 %v4577_v27  ;;  %v6135_v48 = vld [vmem:[#allocation35_spill] sm:$0xff]  ;;  %v6137_v9 = vunpack.c.h.bf16 %v6130_v44 }
 0x1b5   :  { %v1841_v4 = vadd.f32 %v1809_v62, %v6127_v54  ;;  %v1810_v2 = vmul.f32 %v1618_v19, %v6131_v47  ;;  %v1467_v54 = vadd.f32 %v1466_v61, %v1353_v35  ;;  %v4146_v62 = vld [vmem:[#allocation8 + $0x48] ss:$16 sps:$4 sm:$0xff]   ;;  %v1904_v42 = vsel %vm1600_vm0, %v1840_v59, %v1872_v38  ;;  %3071 = vmatprep.subr.bf16.mxu1 %v4148_v0  ;;  %v1468_v34 = vpop.f32.mrf.mxu1  ;;  %v6138_v35 = vld [vmem:[#allocation78_spill] sm:$0xff] }
 0x1b6   :  { %6129 = vst [vmem:[#allocation71_spill] sm:$0xff] %v5286_v53  ;;  %v5293_v11 = vmul.f32 %v6132_v28, %v5037_v1  ;;  %v6134_v19 = vld [vmem:[#allocation21_spill] sm:$0xff]  ;;  %v6136_v18 = vunpack.c.h.bf16 %v6135_v48  ;;  %v1811_v27 = vmul.f32 %v6137_v9, %v1465_v32  ;;  %v1355_v1 = vpop.f32.mrf.mxu0  ;;  %v6139_v44 = vunpack.c.l.bf16 %v6135_v48  ;;  %2960 = vmatprep.subr.bf16.mxu0 %v4151_v14  ;;  %v6152_v14 = vld [vmem:[#allocation80_spill] sm:$0xff] }
 0x1b7   :  { %v2009_v52 = vpack.c.bf16 %v1841_v4, %v1839_v25  ;;  %v1902_v25 = vsel %vm1600_vm0, %v1838_v5, %v1870_v7  ;;  %v4154_v4 = vld [vmem:[#allocation8 + $0x2c] ss:$16 sps:$4 sm:$0xff]   ;;  %v1842_v59 = vadd.f32 %v1810_v2, %v6138_v35  ;;  %v1620_v38 = vsel %vm1600_vm0, %v1467_v54, 0.0  ;;  %v6143_v5 = vld [vmem:[#allocation38_spill] sm:$0xff]  ;;  %v1472_v43 = vpop.f32.mrf.mxu1  ;;  %3072 = vmatpush1.bf16.msra.mxu1 %v4146_v62 }
 0x1b8   :  { %6133 = vst [vmem:[#allocation72_spill] sm:$0xff] %v5293_v11  ;;  %v5301_v26 = vmul.f32 %v6136_v18, %v1465_v32  ;;  %v1469_v61 = vadd.f32 %v1468_v34, %v1355_v1  ;;  %v2008_v28 = vpack.c.bf16 %v1904_v42, %v1902_v25  ;;  %v4149_v18 = vld [vmem:[#allocation8 + $0x20] ss:$16 sps:$4 sm:$0xff]   ;;  %v1874_v9 = vmul.f32 %v6139_v44, %v1463_v13  ;;  %v6141_v32 = vld [vmem:[#allocation45_spill] sm:$0xff]  ;;  %v1359_v35 = vpop.f32.mrf.mxu0  ;;  %v4157_v34 = vld [vmem:[#allocation8 + $0x4] ss:$16 sps:$4 sm:$0xff]  }
 0x1b9   :  { %2464 = vmatprep.mubr.bf16.mxu0 %v2009_v52  ;;  %v5313_v0 = vmul.f32 %v6016_v58, %v1620_v38  ;;  %v6142_v47 = vunpack.c.l.bf16 %v6141_v32  ;;  %v6144_v29 = vunpack.c.l.bf16 %v6143_v5  ;;  %2577 = vmatprep.mubr.bf16.mxu1 %v2009_v52  ;;  %v6145_v21 = vunpack.c.h.bf16 %v6143_v5  ;;  %v4152_v58 = vld [vmem:[#allocation8 + $0x28] ss:$16 sps:$4 sm:$0xff]   ;;  %v6150_v62 = vld [vmem:[#allocation54_spill] sm:$0xff]  ;;  %v4160_v11 = vld [vmem:[#allocation8 + $0xc] ss:$16 sps:$4 sm:$0xff]  }
 0x1ba   :  { %v6146_v48 = vunpack.c.h.bf16 %v6141_v32  ;;  %v1473_v1 = vadd.f32 %v1472_v43, %v1359_v35  ;;  %3073 = vmatprep.subr.bf16.mxu1 %v4154_v4  ;;  %v1361_v5 = vpop.f32.mrf.mxu0  ;;  %2961 = vmatpush1.bf16.msra.mxu0 %v4149_v18  ;;  %v6154_v4 = vld [vmem:[#allocation50_spill] sm:$0xff] }
 0x1bb   :  { %6140 = vst [vmem:[#allocation46_spill] sm:$0xff] %v5313_v0  ;;  %v1812_v7 = vmul.f32 %v1620_v38, %v6142_v47  ;;  %v1876_v2 = vmul.f32 %v6144_v29, %v1467_v54  ;;  %v5321_v42 = vmul.f32 %v6145_v21, %v1469_v61  ;;  %v6147_v47 = vld [vmem:[#allocation24_spill] sm:$0xff]  ;;  %v6148_v38 = vld [vmem:[#allocation79_spill] sm:$0xff]  ;;  %v1474_v21 = vpop.f32.mrf.mxu1  ;;  %3074 = vmatpush1.bf16.msra.mxu1 %v4152_v58  ;;  %v6157_v54 = vld [vmem:[#allocation41_spill] sm:$0xff]  ;;  %v6161_v58 = vunpack.c.h.bf16 %v6154_v4 }
 0x1bc   :  { %v1813_v13 = vmul.f32 %v6146_v48, %v1469_v61  ;;  %v1843_v29 = vadd.f32 %v1811_v27, %v6148_v38  ;;  %v6151_v61 = vld [vmem:[#allocation31_spill] sm:$0xff]  ;;  %v1622_v35 = vsel %vm1600_vm0, %v1473_v1, 0.0  ;;  %v4155_v48 = vld [vmem:[#allocation8] ss:$16 sps:$4 sm:$0xff]   ;;  %v1906_v27 = vsel %vm1600_vm0, %v1842_v59, %v1874_v9  ;;  %2465 = vmatmul.mubr.bf16.gmra.mxu0 %v2008_v28  ;;  %2578 = vmatmul.mubr.bf16.gmra.mxu1 %v2008_v28  ;;  %v1363_v43 = vpop.f32.mrf.mxu0  ;;  %v4163_v59 = vld [vmem:[#allocation8 + $0x1e4] ss:$16 sps:$4 sm:$0xff]  }
 0x1bd   :  { %v1844_v44 = vadd.f32 %v1812_v7, %v6150_v62  ;;  %v5339_v38 = vmul.f32 %v6028_v40, %v1622_v35  ;;  %v6155_v7 = vunpack.c.l.bf16 %v6154_v4  ;;  %v1475_v52 = vadd.f32 %v1474_v21, %v1361_v5  ;;  %v1476_v25 = vpop.f32.mrf.mxu1  ;;  %2962 = vmatprep.subr.bf16.mxu0 %v4157_v34  ;;  %3075 = vmatprep.subr.bf16.mxu1 %v4160_v11  ;;  %v4166_v21 = vld [vmem:[#allocation8 + $0x1ec] ss:$16 sps:$4 sm:$0xff]   ;;  %v6165_v11 = vld [vmem:[#allocation52_spill] sm:$0xff] }
 0x1be   :  { %v1845_v32 = vadd.f32 %v1813_v13, %v6152_v14  ;;  %v1477_v13 = vadd.f32 %v1476_v25, %v1363_v43  ;;  %v4158_v14 = vld [vmem:[#allocation8 + $0x8] ss:$16 sps:$4 sm:$0xff]   ;;  %v6158_v53 = vunpack.c.l.bf16 %v6157_v54  ;;  %v6159_v28 = vunpack.c.h.bf16 %v6157_v54  ;;  %v1365_v34 = vpop.f32.mrf.mxu0  ;;  %v6162_v43 = vld [vmem:[#allocation56_spill] sm:$0xff]  ;;  %2963 = vmatpush1.bf16.msra.mxu0 %v4155_v48 }
 0x1bf   :  { %6153 = vst [vmem:[#allocation73_spill] sm:$0xff] %v5339_v38  ;;  %v1814_v62 = vmul.f32 %v1622_v35, %v6155_v7  ;;  %v1908_v0 = vsel %vm1600_vm0, %v1844_v44, %v1876_v2  ;;  %v1815_v25 = vmul.f32 %v6161_v58, %v1475_v52  ;;  %v6163_v54 = vld [vmem:[#allocation39_spill] sm:$0xff]  ;;  %v6167_v9 = vunpack.c.l.bf16 %v4693_v17  ;;  %3076 = vmatpush1.bf16.msra.mxu1 %v4158_v14  ;;  %v4169_v7 = vld [vmem:[#allocation8 + $0x1c4] ss:$16 sps:$4 sm:$0xff]   ;;  %v6170_v40 = vld [vmem:[#allocation81_spill] sm:$0xff] }
 0x1c0   :  { %v2011_v18 = vpack.c.bf16 %v1845_v32, %v1843_v29  ;;  %v1878_v35 = vmul.f32 %v6158_v53, %v1473_v1  ;;  %v5351_v5 = vmul.f32 %v6159_v28, %v1475_v52  ;;  %v1478_v29 = vpop.f32.mrf.mxu1  ;;  %v1624_v44 = vsel %vm1600_vm0, %v1477_v13, 0.0  ;;  %v4161_v1 = vld [vmem:[#allocation8 + $0x1e0] ss:$16 sps:$4 sm:$0xff]   ;;  %v6164_v28 = vld [vmem:[#allocation59_spill] sm:$0xff]  ;;  %2964 = vmatprep.subr.bf16.mxu0 %v4163_v59  ;;  %3077 = vmatprep.subr.bf16.mxu1 %v4166_v21 }
 0x1c1   :  { %v1846_v2 = vadd.f32 %v1814_v62, %v6162_v43  ;;  %v1479_v32 = vadd.f32 %v1478_v29, %v1365_v34  ;;  %v2010_v53 = vpack.c.bf16 %v1908_v0, %v1906_v27  ;;  %v5361_v4 = vmul.f32 %v6164_v28, %v1624_v44  ;;  %v1369_v43 = vpop.f32.mrf.mxu0  ;;  %v4164_v28 = vld [vmem:[#allocation8 + $0x1e8] ss:$16 sps:$4 sm:$0xff]   ;;  %v4167_v21 = vld [vmem:[#allocation8 + $0x1c0] ss:$16 sps:$4 sm:$0xff]  }
 0x1c2   :  { %6160 = vst [vmem:[#allocation75_spill] sm:$0xff] %v5351_v5  ;;  %2474 = vmatprep.mubr.bf16.mxu0 %v2011_v18  ;;  %v6166_v52 = vunpack.c.l.bf16 %v6165_v11  ;;  %v1880_v62 = vmul.f32 %v6167_v9, %v1477_v13  ;;  %2587 = vmatprep.mubr.bf16.mxu1 %v2011_v18  ;;  %v1482_v38 = vpop.f32.mrf.mxu1  ;;  %v6168_v48 = vunpack.c.h.bf16 %v4693_v17  ;;  %v6169_v27 = vunpack.c.h.bf16 %v6165_v11  ;;  %v6172_v18 = vld [vmem:[#allocation82_spill] sm:$0xff]  ;;  %v4172_v17 = vld [vmem:[#allocation8 + $0x1cc] ss:$16 sps:$4 sm:$0xff]  }
 0x1c3   :  { %v1483_v29 = vadd.f32 %v1482_v38, %v1369_v43  ;;  %v1371_v14 = vpop.f32.mrf.mxu0  ;;  %v6174_v38 = vsub.f32 %v4919_v51, %v5199_v57  ;;  %2965 = vmatpush2.bf16.msra.mxu0 %v4161_v1  ;;  %v6176_v51 = vunpack.c.l.bf16 %v6053_v39  ;;  %3078 = vmatpush2.bf16.msra.mxu1 %v4164_v28 }
 0x1c4   :  { %v1816_v58 = vmul.f32 %v1624_v44, %v6166_v52  ;;  %v5369_v0 = vmul.f32 %v6168_v48, %v1479_v32  ;;  %v1817_v34 = vmul.f32 %v6169_v27, %v1479_v32  ;;  %v1847_v44 = vadd.f32 %v1815_v25, %v6170_v40  ;;  %v6171_v52 = vld [vmem:[#allocation43_spill] sm:$0xff]  ;;  %v1484_v5 = vpop.f32.mrf.mxu1  ;;  %2475 = vmatmul.mubr.bf16.gmra.mxu0 %v2010_v53 }
 0x1c5   :  { %v1752_v13 = vsub.f32 %v6171_v52, %v5361_v4  ;;  %v6173_v48 = vsub.f32 %v4903_v45, %v5168_v22  ;;  %v6175_v32 = vld [vmem:[#allocation47_spill] sm:$0xff]  ;;  %v1626_v11 = vsel %vm1600_vm0, %v1483_v29, 0.0  ;;  %2588 = vmatmul.mubr.bf16.gmra.mxu1 %v2010_v53  ;;  %v1485_v57 = vadd.f32 %v1484_v5, %v1371_v14  ;;  %v1373_v43 = vpop.f32.mrf.mxu0  ;;  %2966 = vmatprep.subr.bf16.mxu0 %v4169_v7 }
 0x1c6   :  { %v1848_v9 = vadd.f32 %v1816_v58, %v6172_v18  ;;  %v1753_v40 = vsub.f32 %v6175_v32, %v5369_v0  ;;  %v1849_v25 = vadd.f32 %v1817_v34, %v5062_v3  ;;  %v1910_v58 = vsel %vm1600_vm0, %v1846_v2, %v1878_v35  ;;  %v1486_v27 = vpop.f32.mrf.mxu1  ;;  %v4170_v34 = vld [vmem:[#allocation8 + $0x1c8] ss:$16 sps:$4 sm:$0xff]   ;;  %v4175_v35 = vld [vmem:[#allocation8 + $0x1a4] ss:$16 sps:$4 sm:$0xff]   ;;  %3079 = vmatprep.subr.bf16.mxu1 %v4172_v17 }
 0x1c7   :  { %v5383_v59 = vpack.c.bf16 %v6174_v38, %v6173_v48  ;;  %v5393_v45 = vmul.f32 %v6055_v12, %v1626_v11  ;;  %v1818_v22 = vmul.f32 %v1626_v11, %v6176_v51  ;;  %v1487_v3 = vadd.f32 %v1486_v27, %v1373_v43  ;;  %v6177_v48 = vld [vmem:[#allocation48_spill] sm:$0xff]  ;;  %v1375_v7 = vpop.f32.mrf.mxu0  ;;  %2967 = vmatpush2.bf16.msra.mxu0 %v4167_v21 }
 0x1c8   :  { %v2013_v1 = vpack.c.bf16 %v1849_v25, %v1847_v44  ;;  %v1912_v18 = vsel %vm1600_vm0, %v1848_v9, %v1880_v62  ;;  %v6178_v38 = vunpack.c.h.bf16 %v6177_v48  ;;  %v6179_v5 = vunpack.c.h.bf16 %v6053_v39  ;;  %v1488_v14 = vpop.f32.mrf.mxu1  ;;  %v4178_v44 = vld [vmem:[#allocation8 + $0x1ac] ss:$16 sps:$4 sm:$0xff]   ;;  %v4173_v51 = vld [vmem:[#allocation8 + $0x1a0] ss:$16 sps:$4 sm:$0xff]   ;;  %3080 = vmatpush2.bf16.msra.mxu1 %v4170_v34  ;;  %2968 = vmatprep.subr.bf16.mxu0 %v4175_v35 }
 0x1c9   :  { %v1850_v2 = vadd.f32 %v1818_v22, %v5084_v20  ;;  %v6180_v25 = vunpack.c.l.bf16 %v6177_v48  ;;  %v1628_v9 = vsel %vm1600_vm0, %v1487_v3, 0.0  ;;  %v1489_v11 = vadd.f32 %v1488_v14, %v1375_v7  ;;  %v6181_v22 = vld [vmem:[#allocation53_spill] sm:$0xff]  ;;  %v1379_v48 = vpop.f32.mrf.mxu0  ;;  %v4181_v14 = vld [vmem:[#allocation8 + $0x184] ss:$16 sps:$4 sm:$0xff]   ;;  %3081 = vmatprep.subr.bf16.mxu1 %v4178_v44 }
 0x1ca   :  { %v5404_v53 = vmul.f32 %v6178_v38, %v1485_v57  ;;  %v1819_v28 = vmul.f32 %v6179_v5, %v1485_v57  ;;  %2484 = vmatprep.mubr.bf16.mxu0 %v2013_v1  ;;  %v2012_v20 = vpack.c.bf16 %v1912_v18, %v1910_v58  ;;  %v5415_v39 = vmul.f32 %v4796_v31, %v1628_v9  ;;  %v1492_v38 = vpop.f32.mrf.mxu1  ;;  %v4176_v31 = vld [vmem:[#allocation8 + $0x1a8] ss:$16 sps:$4 sm:$0xff]  }
 0x1cb   :  { %v1882_v62 = vmul.f32 %v6180_v25, %v1483_v29  ;;  %v6182_v17 = vunpack.c.l.bf16 %v4772_v30  ;;  %v6183_v27 = vunpack.c.l.bf16 %v6070_v15  ;;  %2597 = vmatprep.mubr.bf16.mxu1 %v2013_v1  ;;  %v6184_v21 = vunpack.c.h.bf16 %v6070_v15  ;;  %v6187_v1 = vld [vmem:[#allocation58_spill] sm:$0xff]  ;;  %v1381_v34 = vpop.f32.mrf.mxu0  ;;  %v4184_v15 = vld [vmem:[#allocation8 + $0x18c] ss:$16 sps:$4 sm:$0xff]   ;;  %2969 = vmatpush2.bf16.msra.mxu0 %v4173_v51 }
 0x1cc   :  { %v1755_v43 = vsub.f32 %v6181_v22, %v5404_v53  ;;  %v6185_v18 = vunpack.c.h.bf16 %v4772_v30  ;;  %v1493_v7 = vadd.f32 %v1492_v38, %v1379_v48  ;;  %v1851_v25 = vadd.f32 %v1819_v28, %v5097_v6  ;;  %v6188_v30 = vld [vmem:[#allocation60_spill] sm:$0xff]  ;;  %2485 = vmatmul.mubr.bf16.gmra.mxu0 %v2012_v20  ;;  %3082 = vmatpush2.bf16.msra.mxu1 %v4176_v31 }
 0x1cd   :  { %v1820_v57 = vmul.f32 %v1628_v9, %v6182_v17  ;;  %v1884_v29 = vmul.f32 %v6183_v27, %v1487_v3  ;;  %v5423_v58 = vmul.f32 %v6184_v21, %v1489_v11  ;;  %v6186_v9 = vld [vmem:[#allocation57_spill] sm:$0xff]  ;;  %v1494_v27 = vpop.f32.mrf.mxu1  ;;  %v1914_v21 = vsel %vm1600_vm0, %v1850_v2, %v1882_v62  ;;  %2598 = vmatmul.mubr.bf16.gmra.mxu1 %v2012_v20  ;;  %v1383_v62 = vpop.f32.mrf.mxu0 }
 0x1ce   :  { %v1821_v5 = vmul.f32 %v6185_v18, %v1489_v11  ;;  %v1630_v6 = vsel %vm1600_vm0, %v1493_v7, 0.0  ;;  %v6189_v28 = vunpack.c.l.bf16 %v6079_v55  ;;  %v6190_v38 = vunpack.c.l.bf16 %v4778_v46  ;;  %2970 = vmatprep.subr.bf16.mxu0 %v4181_v14  ;;  %3083 = vmatprep.subr.bf16.mxu1 %v4184_v15 }
 0x1cf   :  { %v1852_v17 = vadd.f32 %v1820_v57, %v6187_v1  ;;  %v1757_v11 = vsub.f32 %v6188_v30, %v5423_v58  ;;  %v4179_v57 = vld [vmem:[#allocation8 + $0x180] ss:$16 sps:$4 sm:$0xff]   ;;  %v5441_v44 = vmul.f32 %v4813_v10, %v1630_v6  ;;  %v1495_v2 = vadd.f32 %v1494_v27, %v1381_v34  ;;  %v1496_v1 = vpop.f32.mrf.mxu1  ;;  %v6191_v10 = vld [vmem:[#allocation51_spill] sm:$0xff]  ;;  %v1385_v31 = vpop.f32.mrf.mxu0 }
 0x1d0   :  { %v1853_v35 = vadd.f32 %v1821_v5, %v5127_v37  ;;  %v1886_v48 = vmul.f32 %v6189_v28, %v1493_v7  ;;  %v1822_v18 = vmul.f32 %v1630_v6, %v6190_v38  ;;  %v1497_v37 = vadd.f32 %v1496_v1, %v1383_v62  ;;  %v4182_v5 = vld [vmem:[#allocation8 + $0x188] ss:$16 sps:$4 sm:$0xff]   ;;  %v4187_v7 = vld [vmem:[#allocation8 + $0x164] ss:$16 sps:$4 sm:$0xff]   ;;  %v4190_v38 = vld [vmem:[#allocation8 + $0x16c] ss:$16 sps:$4 sm:$0xff]   ;;  %2971 = vmatpush2.bf16.msra.mxu0 %v4179_v57 }
 0x1d1   :  { %v1916_v51 = vsel %vm1600_vm0, %v1852_v17, %v1884_v29  ;;  %v1758_v28 = vsub.f32 %v6191_v10, %v5441_v44  ;;  %v6192_v6 = vunpack.c.h.bf16 %v6079_v55  ;;  %v6193_v34 = vunpack.c.h.bf16 %v4778_v46  ;;  %v1498_v14 = vpop.f32.mrf.mxu1  ;;  %v4185_v44 = vld [vmem:[#allocation8 + $0x160] ss:$16 sps:$4 sm:$0xff]   ;;  %3084 = vmatpush2.bf16.msra.mxu1 %v4182_v5  ;;  %2972 = vmatprep.subr.bf16.mxu0 %v4187_v7 }
 0x1d2   :  { %v2015_v3 = vpack.c.bf16 %v1853_v35, %v1851_v25  ;;  %v1854_v12 = vadd.f32 %v1822_v18, %v5144_v36  ;;  %v1632_v25 = vsel %vm1600_vm0, %v1497_v37, 0.0  ;;  %v6194_v29 = vunpack.c.l.bf16 %v4761_v63  ;;  %3085 = vmatprep.subr.bf16.mxu1 %v4190_v38  ;;  %v6204_v7 = vld [vmem:[#allocation86_spill] sm:$0xff] }
 0x1d3   :  { %v1727_v20 = vmul.f32 %v6192_v6, %v1495_v2  ;;  %v1823_v27 = vmul.f32 %v6193_v34, %v1495_v2  ;;  %v1499_v35 = vadd.f32 %v1498_v14, %v1385_v31  ;;  %v2014_v36 = vpack.c.bf16 %v1916_v51, %v1914_v21  ;;  %v4188_v21 = vld [vmem:[#allocation8 + $0x168] ss:$16 sps:$4 sm:$0xff]   ;;  %v4193_v51 = vld [vmem:[#allocation8 + $0x144] ss:$16 sps:$4 sm:$0xff]   ;;  %v4191_v14 = vld [vmem:[#allocation8 + $0x140] ss:$16 sps:$4 sm:$0xff]  }
 0x1d4   :  { %v1888_v17 = vmul.f32 %v6194_v29, %v1497_v37  ;;  %2494 = vmatprep.mubr.bf16.mxu0 %v2015_v3  ;;  %v1728_v15 = vmul.f32 %v6086_v50, %v1632_v25  ;;  %v6195_v18 = vunpack.c.l.bf16 %v6081_v60  ;;  %2607 = vmatprep.mubr.bf16.mxu1 %v2015_v3  ;;  %v6196_v62 = vunpack.c.h.bf16 %v4761_v63  ;;  %v6199_v50 = vld [vmem:[#allocation62_spill] sm:$0xff] }
 0x1d5   :  { %v1759_v55 = vsub.f32 %v5165_v56, %v1727_v20  ;;  %v1855_v46 = vadd.f32 %v1823_v27, %v5173_v16  ;;  %v6197_v57 = vunpack.c.h.bf16 %v6081_v60  ;;  %v1918_v56 = vsel %vm1600_vm0, %v1854_v12, %v1886_v48  ;;  %v6198_v16 = vld [vmem:[#allocation55_spill] sm:$0xff]  ;;  %2973 = vmatpush2.bf16.msra.mxu0 %v4185_v44  ;;  %2608 = vmatmul.mubr.bf16.gmra.mxu1 %v2014_v36  ;;  %v4199_v29 = vld [vmem:[#allocation8 + $0x124] ss:$16 sps:$4 sm:$0xff]  }
 0x1d6   :  { %v1824_v2 = vmul.f32 %v1632_v25, %v6195_v18  ;;  %v1729_v1 = vmul.f32 %v6196_v62, %v1499_v35  ;;  %v1760_v10 = vsub.f32 %v6198_v16, %v1728_v15  ;;  %v4196_v20 = vld [vmem:[#allocation8 + $0x14c] ss:$16 sps:$4 sm:$0xff]   ;;  %v6200_v3 = vsub.f32 %v6113_v49, %v5236_v33  ;;  %2495 = vmatmul.mubr.bf16.gmra.mxu0 %v2014_v36  ;;  %v6219_v58 = vld [vmem:[#allocation22_spill] sm:$0xff] }
 0x1d7   :  { %v1825_v37 = vmul.f32 %v6197_v57, %v1499_v35  ;;  %v6201_v63 = vsub.f32 %v6122_v8, %v5266_v41  ;;  %v6202_v5 = vsub.f32 %v6147_v47, %v5301_v26  ;;  %v6203_v12 = vsub.f32 %v6151_v61, %v5321_v42  ;;  %v6205_v27 = vld [vmem:[#allocation87_spill] sm:$0xff]  ;;  %v6209_v8 = vld [vmem:[#allocation46_spill] sm:$0xff]  ;;  %v6214_v35 = vld [vmem:[#allocation73_spill] sm:$0xff]  ;;  %3086 = vmatpush2.bf16.msra.mxu1 %v4188_v21 }
 0x1d8   :  { %v1856_v6 = vadd.f32 %v1824_v2, %v6199_v50  ;;  %v1761_v34 = vsub.f32 %v6204_v7, %v1729_v1  ;;  %v6206_v33 = vld [vmem:[#allocation71_spill] sm:$0xff]  ;;  %2974 = vmatprep.subr.bf16.mxu0 %v4193_v51  ;;  %v6217_v4 = vsub.f32 %v6186_v9, %v5415_v39  ;;  %3087 = vmatprep.subr.bf16.mxu1 %v4196_v20  ;;  %v6220_v30 = vunpack.c.h.bf16 %v6219_v58  ;;  %v6222_v36 = vld [vmem:[#allocation65_spill] sm:$0xff]  ;;  %v4203_v57 = vld [vmem:[#allocation8 + $0x100] ss:$16 sps:$4 sm:$0xff]  }
 0x1d9   :  { %v5477_v60 = vpack.c.bf16 %v6201_v63, %v6200_v3  ;;  %v5485_v48 = vpack.c.bf16 %v6203_v12, %v6202_v5  ;;  %v1857_v31 = vadd.f32 %v1825_v37, %v6205_v27  ;;  %v6207_v49 = vsub.f32 %v6134_v19, %v6206_v33  ;;  %v6208_v41 = vld [vmem:[#allocation27_spill] sm:$0xff]  ;;  %v6213_v19 = vld [vmem:[#allocation36_spill] sm:$0xff]  ;;  %2975 = vmatpush2.bf16.msra.mxu0 %v4191_v14  ;;  %v6233_v63 = vld [vmem:[#allocation17_spill] sm:$0xff] }
 0x1da   :  { %v6210_v38 = vsub.f32 %v6208_v41, %v6209_v8  ;;  %v6211_v26 = vld [vmem:[#allocation75_spill] sm:$0xff]  ;;  %v1920_v61 = vsel %vm1600_vm0, %v1856_v6, %v1888_v17  ;;  %v6215_v44 = vsub.f32 %v6213_v19, %v6214_v35  ;;  %v5531_v53 = vpack.c.bf16 %v1761_v34, %v1759_v55  ;;  %v6221_v17 = vld [vmem:[#allocation72_spill] sm:$0xff]  ;;  %2976 = vmatprep.subr.bf16.mxu0 %v4199_v29  ;;  %v6234_v5 = vld [vmem:[#allocation26_spill] sm:$0xff] }
 0x1db   :  { %v6212_v47 = vsub.f32 %v6163_v54, %v6211_v26  ;;  %v5521_v54 = vpack.c.bf16 %v1757_v11, %v1755_v43  ;;  %v2017_v0 = vpack.c.bf16 %v1857_v31, %v1855_v46  ;;  %v2016_v32 = vpack.c.bf16 %v1920_v61, %v1918_v56  ;;  %v6218_v43 = vld [vmem:[#allocation16_spill] sm:$0xff]  ;;  %3088 = vmatpush2.bf16.msra.mxu1 %v4194_v24  ;;  %v4200_v9 = vld [vmem:[#allocation8 + $0x128] ss:$16 sps:$4 sm:$0xff]   ;;  %v4208_v37 = vld [vmem:[#allocation8 + $0x10c] ss:$16 sps:$4 sm:$0xff]  }
 0x1dc   :  { %v5495_v25 = vpack.c.bf16 %v6210_v38, %v6207_v49  ;;  %v5513_v15 = vpack.c.bf16 %v1752_v13, %v6215_v44  ;;  %v4202_v13 = vld [vmem:[#allocation8 + $0x12c] ss:$16 sps:$4 sm:$0xff]   ;;  %v5533_v22 = vpack.c.bf16 %v1760_v10, %v1758_v28  ;;  %v1667_v11 = vmul.f32 %v6220_v30, %v6218_v43  ;;  %v4205_v55 = vld [vmem:[#allocation8 + $0x104] ss:$16 sps:$4 sm:$0xff]   ;;  %v4206_v3 = vld [vmem:[#allocation8 + $0x108] ss:$16 sps:$4 sm:$0xff]  }
 0x1dd   :  { %v5503_v42 = vpack.c.bf16 %v1753_v40, %v6212_v47  ;;  %v6216_v40 = vsub.f32 %v5080_v23, %v5393_v45  ;;  %v1733_v46 = vsub.f32 %v6222_v36, %v6221_v17  ;;  %2504 = vmatprep.mubr.bf16.mxu0 %v2017_v0  ;;  %v4197_v23 = vld [vmem:[#allocation8 + $0x120] ss:$16 sps:$4 sm:$0xff]   ;;  %2617 = vmatprep.mubr.bf16.mxu1 %v2017_v0  ;;  %v6224_v28 = vld [vmem:[#allocation61_spill] sm:$0xff]  ;;  %v6225_v18 = vld [vmem:[#allocation23_spill] sm:$0xff]  ;;  %v6235_v12 = vunpack.c.h.bf16 %v6234_v5 }
 0x1de   :  { %v6223_v45 = vld [vmem:[#allocation44_spill] sm:$0xff]  ;;  %3089 = vmatprep.subr.bf16.mxu1 %v4202_v13  ;;  %v6226_v2 = vunpack.c.h.bf16 %v6225_v18  ;;  %2977 = vmatpush2.bf16.msra.mxu0 %v4197_v23  ;;  %v6230_v10 = vld [vmem:[#allocation83_spill] sm:$0xff]  ;;  %v6237_v14 = vld [vmem:[#allocation29_spill] sm:$0xff] }
 0x1df   :  { %v5529_v52 = vpack.c.bf16 %v6217_v4, %v6216_v40  ;;  %v1731_v39 = vsub.f32 %v1667_v11, %v6223_v45  ;;  %2505 = vmatmul.mubr.bf16.gmra.mxu0 %v2016_v32  ;;  %2618 = vmatmul.mubr.bf16.gmra.mxu1 %v2016_v32  ;;  %v6227_v21 = vld [vmem:[#allocation64_spill] sm:$0xff]  ;;  %v1671_v7 = vmul.f32 %v6235_v12, %v6233_v63  ;;  %v6236_v31 = vld [vmem:[#allocation63_spill] sm:$0xff]  ;;  %v6238_v33 = vunpack.c.h.bf16 %v6237_v14  ;;  %v6240_v38 = vld [vmem:[#allocation66_spill] sm:$0xff] }
 0x1e0   :  { %v1705_v62 = vmul.f32 %v6226_v2, %v6224_v28  ;;  %v6228_v51 = vld [vmem:[#allocation28_spill] sm:$0xff]  ;;  %3090 = vmatpush2.bf16.msra.mxu1 %v4200_v9  ;;  %2978 = vmatprep.subr.bf16.mxu0 %v4205_v55  ;;  %v6241_v26 = vld [vmem:[#allocation34_spill] sm:$0xff]  ;;  %v6243_v29 = vld [vmem:[#allocation85_spill] sm:$0xff] }
 0x1e1   :  { %v1923_v1 = vpack.c.bf16 %v1733_v46, %v1731_v39  ;;  %v6229_v56 = vunpack.c.h.bf16 %v6228_v51  ;;  %v6231_v50 = vld [vmem:[#allocation20_spill] sm:$0xff]  ;;  %3091 = vmatprep.subr.bf16.mxu1 %v4208_v37  ;;  %v1709_v49 = vmul.f32 %v6238_v33, %v6236_v31  ;;  %v6242_v47 = vunpack.c.h.bf16 %v6241_v26  ;;  %v6244_v19 = vld [vmem:[#allocation25_spill] sm:$0xff]  ;;  %v6246_v24 = vld [vmem:[#allocation18_spill] sm:$0xff] }
 0x1e2   :  { %v6232_v6 = vunpack.c.h.bf16 %v6231_v50  ;;  %2979 = vmatpush2.bf16.msra.mxu0 %v4203_v57  ;;  %v6239_v8 = vld [vmem:[#allocation84_spill] sm:$0xff]  ;;  %v6245_v35 = vunpack.c.h.bf16 %v6244_v19  ;;  %v6249_v43 = vld [vmem:[#allocation69_spill] sm:$0xff]  ;;  %v6252_v36 = vld [vmem:[#allocation70_spill] sm:$0xff] }
 0x1e3   :  { %v1673_v16 = vmul.f32 %v6229_v56, %v6227_v21  ;;  %2980 = vmatprep.mubr.bf16.mxu0 %v1923_v1  ;;  %3093 = vmatprep.mubr.bf16.mxu1 %v1923_v1  ;;  %v1677_v61 = vmul.f32 %v6242_v47, %v6240_v38  ;;  %v6247_v0 = vld [vmem:[#allocation32_spill] sm:$0xff]  ;;  %v6250_v58 = vld [vmem:[#allocation33_spill] sm:$0xff]  ;;  %v6253_v46 = vld [vmem:[#allocation67_spill] sm:$0xff] }
 0x1e4   :  { %v1703_v20 = vmul.f32 %v6232_v6, %v6230_v10  ;;  %3092 = vmatpush2.bf16.msra.mxu1 %v4206_v3  ;;  %v1707_v44 = vmul.f32 %v6245_v35, %v6243_v29  ;;  %v6248_v32 = vunpack.c.h.bf16 %v6247_v0  ;;  %v6251_v30 = vunpack.c.h.bf16 %v6250_v58  ;;  %v6254_v23 = vld [vmem:[#allocation40_spill] sm:$0xff]  ;;  %v6257_v55 = vld [vmem:[#allocation30_spill] sm:$0xff]  ;;  %v6259_v2 = vld [vmem:[#allocation19_spill] sm:$0xff] }
 0x1e5   :  { %v1737_v34 = vsub.f32 %v1673_v16, %v1705_v62  ;;  %v1741_v4 = vsub.f32 %v1677_v61, %v1709_v49  ;;  %v6255_v45 = vunpack.c.h.bf16 %v6254_v23  ;;  %v6256_v9 = vld [vmem:[#allocation68_spill] sm:$0xff]  ;;  %v6258_v28 = vunpack.c.h.bf16 %v6257_v55  ;;  %v6260_v62 = vld [vmem:[#allocation37_spill] sm:$0xff] }
 0x1e6   :  { %v1735_v27 = vsub.f32 %v1671_v7, %v1703_v20  ;;  %v1675_v40 = vmul.f32 %v6248_v32, %v6246_v24  ;;  %v1713_v11 = vmul.f32 %v6251_v30, %v6249_v43  ;;  %v6261_v1 = vunpack.c.h.bf16 %v6260_v62 }
 0x1e7   :  { %2981 = vmatmul.mubr.bf16.vlgmr.msra.gmra.mxu0 %v6239_v8  ;;  %3094 = vmatmul.mubr.bf16.vlgmr.msra.gmra.mxu1 %v6239_v8  ;;  %v1681_v39 = vmul.f32 %v6255_v45, %v6253_v46  ;;  %v1711_v18 = vmul.f32 %v6258_v28, %v6256_v9 }
 0x1e8   :  { %v1925_v41 = vpack.c.bf16 %v1737_v34, %v1735_v27  ;;  %v1739_v13 = vsub.f32 %v1675_v40, %v1707_v44  ;;  %v1679_v57 = vmul.f32 %v6261_v1, %v6259_v2 }
 0x1e9   :  { %v1745_v37 = vsub.f32 %v1681_v39, %v1713_v11 }
 0x1ea   :  { %2990 = vmatprep.mubr.bf16.mxu0 %v1925_v41  ;;  %3103 = vmatprep.mubr.bf16.mxu1 %v1925_v41  ;;  %v1927_v17 = vpack.c.bf16 %v1741_v4, %v1739_v13  ;;  %v1743_v21 = vsub.f32 %v1679_v57, %v1711_v18 }
 0x1ec   :  { %v1929_v51 = vpack.c.bf16 %v1745_v37, %v1743_v21 }
 0x1ef   :  { %2991 = vmatmul.mubr.bf16.gmra.mxu0 %v6252_v36  ;;  %3104 = vmatmul.mubr.bf16.gmra.mxu1 %v6252_v36 }
 0x1f0   :  { %3000 = vmatprep.mubr.bf16.mxu0 %v1927_v17  ;;  %3113 = vmatprep.mubr.bf16.mxu1 %v1927_v17 }
 0x1f7   :  { %3001 = vmatmul.mubr.bf16.gmra.mxu0 %v5383_v59  ;;  %3114 = vmatmul.mubr.bf16.gmra.mxu1 %v5383_v59 }
 0x1f8   :  { %3010 = vmatprep.mubr.bf16.mxu0 %v1929_v51  ;;  %3123 = vmatprep.mubr.bf16.mxu1 %v1929_v51 }
 0x1ff   :  { %3011 = vmatmul.mubr.bf16.gmra.mxu0 %v5477_v60  ;;  %3124 = vmatmul.mubr.bf16.gmra.mxu1 %v5477_v60 }
 0x200   :  { %3020 = vmatprep.mubr.bf16.mxu0 %v5485_v48  ;;  %3133 = vmatprep.mubr.bf16.mxu1 %v5485_v48 }
 0x207   :  { %3021 = vmatmul.mubr.bf16.gmra.mxu0 %v5495_v25  ;;  %3134 = vmatmul.mubr.bf16.gmra.mxu1 %v5495_v25 }
 0x208   :  { %3030 = vmatprep.mubr.bf16.mxu0 %v5503_v42  ;;  %3143 = vmatprep.mubr.bf16.mxu1 %v5503_v42 }
 0x20f   :  { %3031 = vmatmul.mubr.bf16.gmra.mxu0 %v5513_v15  ;;  %3144 = vmatmul.mubr.bf16.gmra.mxu1 %v5513_v15 }
 0x210   :  { %3040 = vmatprep.mubr.bf16.mxu0 %v5521_v54  ;;  %3153 = vmatprep.mubr.bf16.mxu1 %v5521_v54 }
 0x217   :  { %3041 = vmatmul.mubr.bf16.gmra.mxu0 %v5529_v52  ;;  %3154 = vmatmul.mubr.bf16.gmra.mxu1 %v5529_v52 }
 0x218   :  { %3050 = vmatprep.mubr.bf16.mxu0 %v5531_v53  ;;  %3163 = vmatprep.mubr.bf16.mxu1 %v5531_v53 }
 0x21f   :  { %3051 = vmatmul.mubr.bf16.gmra.mxu0 %v5533_v22  ;;  %3164 = vmatmul.mubr.bf16.gmra.mxu1 %v5533_v22 }
 0x25d   :  { %v5601_v59 = vpop.f32.mrf.mxu0  ;;  %v5603_v60 = vpop.f32.mrf.mxu1 }
 0x25f   :  { %v5605_v48 = vpop.f32.mrf.mxu0  ;;  %v5607_v25 = vpop.f32.mrf.mxu1 }
 0x261   :  { %v5609_v42 = vpop.f32.mrf.mxu0  ;;  %v5611_v15 = vpop.f32.mrf.mxu1 }
 0x263   :  { %v5613_v54 = vpop.f32.mrf.mxu0  ;;  %v5615_v52 = vpop.f32.mrf.mxu1 }
 0x269   :  { %v5617_v53 = vpop.f32.mrf.mxu0 }
 0x26a   :  { %v5619_v56 = vpop.f32.mrf.mxu1 }
 0x26b   :  { %v5621_v22 = vpop.f32.mrf.mxu0 }
 0x26c   :  { %v5623_v16 = vpop.f32.mrf.mxu1 }
 0x26d   :  { %v5625_v10 = vpop.f32.mrf.mxu0 }
 0x26e   :  { %v5627_v50 = vpop.f32.mrf.mxu1 }
 0x26f   :  { %v5629_v6 = vpop.f32.mrf.mxu0 }
 0x270   :  { %v5631_v20 = vpop.f32.mrf.mxu1 }
 0x274   :  { %v5633_v3 = vpop.f32.mrf.mxu0  ;;  %v5635_v63 = vpop.f32.mrf.mxu1 }
 0x276   :  { %v5637_v5 = vpop.f32.mrf.mxu0  ;;  %v5639_v12 = vpop.f32.mrf.mxu1 }
 0x278   :  { %v5641_v7 = vpop.f32.mrf.mxu0  ;;  %v5643_v34 = vpop.f32.mrf.mxu1 }
 0x27a   :  { %v5645_v27 = vpop.f32.mrf.mxu0  ;;  %v5647_v31 = vpop.f32.mrf.mxu1 }
 0x27c   :  { %v5649_v14 = vpop.f32.mrf.mxu0  ;;  %v5651_v33 = vpop.f32.mrf.mxu1 }
 0x27e   :  { %v5653_v49 = vpop.f32.mrf.mxu0  ;;  %v5655_v41 = vpop.f32.mrf.mxu1 }
 0x280   :  { %v5657_v8 = vpop.f32.mrf.mxu0  ;;  %v5659_v38 = vpop.f32.mrf.mxu1 }
 0x282   :  { %v5661_v26 = vpop.f32.mrf.mxu0  ;;  %v5663_v47 = vpop.f32.mrf.mxu1 }
 0x284   :  { %v5665_v61 = vpop.f32.mrf.mxu0 }
 0x285   :  { %v5667_v29 = vpop.f32.mrf.mxu1 }
 0x286   :  { %v5669_v19 = vpop.f32.mrf.mxu0 }
 0x287   :  { %v5671_v35 = vpop.f32.mrf.mxu1 }
 0x288   :  { %v5673_v44 = vpop.f32.mrf.mxu0 }
 0x289   :  { %v5675_v24 = vpop.f32.mrf.mxu1 }
 0x28a   :  { %v5677_v0 = vpop.f32.mrf.mxu0 }
 0x28b   :  { %v5679_v32 = vpop.f32.mrf.mxu1 }
 0x28c   :  { %v5681_v40 = vpop.f32.mrf.mxu0 }
 0x28d   :  { %v5683_v4 = vpop.f32.mrf.mxu1 }
 0x28e   :  { %v5685_v13 = vpop.f32.mrf.mxu0 }
 0x28f   :  { %v5687_v43 = vpop.f32.mrf.mxu1 }
 0x290   :  { %v5689_v58 = vpop.f32.mrf.mxu0 }
 0x291   :  { %v5691_v30 = vpop.f32.mrf.mxu1 }
 0x292   :  { %v5693_v11 = vpop.f32.mrf.mxu0 }
 0x293   :  { %v5695_v17 = vpop.f32.mrf.mxu1 }
 0x295   :  { %v5699_v46 = vpop.f32.mrf.mxu1 }
 0x296   :  { %v5697_v36 = vpop.f32.mrf.mxu0  ;;  %6263 = vst [vmem:[#allocation74_spill] sm:$0xff] %v5699_v46 }
 0x297   :  { %6262 = vst [vmem:[#allocation76_spill] sm:$0xff] %v5697_v36  ;;  %v5703_v45 = vpop.f32.mrf.mxu1 }
 0x298   :  { %v5701_v23 = vpop.f32.mrf.mxu0  ;;  %6265 = vst [vmem:[#allocation49_spill] sm:$0xff] %v5703_v45 }
 0x299   :  { %6264 = vst [vmem:[#allocation77_spill] sm:$0xff] %v5701_v23  ;;  %v5707_v9 = vpop.f32.mrf.mxu1 }
 0x29a   :  { %v5705_v39 = vpop.f32.mrf.mxu0  ;;  %6267 = vst [vmem:[#allocation21_spill] sm:$0xff] %v5707_v9 }
 0x29b   :  { %6266 = vst [vmem:[#allocation42_spill] sm:$0xff] %v5705_v39  ;;  %v5711_v28 = vpop.f32.mrf.mxu1 }
 0x29c   :  { %v5709_v55 = vpop.f32.mrf.mxu0  ;;  %6269 = vst [vmem:[#allocation78_spill] sm:$0xff] %v5711_v28 }
 0x29d   :  { %6268 = vst [vmem:[#allocation35_spill] sm:$0xff] %v5709_v55 }
 0x29f   :  { %v5713_v18 = vpop.f32.mrf.mxu0  ;;  %v5715_v2 = vpop.f32.mrf.mxu1 }
 0x2a0   :  { %6270 = vst [vmem:[#allocation45_spill] sm:$0xff] %v5713_v18  ;;  %6271 = vst [vmem:[#allocation38_spill] sm:$0xff] %v5715_v2 }
 0x2a1   :  { %v5717_v62 = vpop.f32.mrf.mxu0  ;;  %v5719_v1 = vpop.f32.mrf.mxu1 }
 0x2a2   :  { %6272 = vst [vmem:[#allocation24_spill] sm:$0xff] %v5717_v62  ;;  %6273 = vst [vmem:[#allocation79_spill] sm:$0xff] %v5719_v1 }
 0x2a3   :  { %v5721_v57 = vpop.f32.mrf.mxu0  ;;  %v5723_v37 = vpop.f32.mrf.mxu1 }
 0x2a4   :  { %6274 = vst [vmem:[#allocation54_spill] sm:$0xff] %v5721_v57  ;;  %6275 = vst [vmem:[#allocation31_spill] sm:$0xff] %v5723_v37 }
 0x2a5   :  { %v5725_v21 = vpop.f32.mrf.mxu0  ;;  %v5727_v51 = vpop.f32.mrf.mxu1 }
 0x2a6   :  { %6276 = vst [vmem:[#allocation80_spill] sm:$0xff] %v5725_v21  ;;  %6277 = vst [vmem:[#allocation50_spill] sm:$0xff] %v5727_v51 }
 0x2a7   :  { %v2982_v9 = vpop.f32.mrf.mxu0  ;;  %v3095_v55 = vpop.f32.mrf.mxu1 }
 0x2a8   :  { %v2983_v18 = vadd.f32 %v2982_v9, %v5601_v59  ;;  %v3096_v2 = vadd.f32 %v3095_v55, %v5603_v60 }
 0x2a9   :  { %v2984_v39 = vpop.f32.mrf.mxu0  ;;  %v3097_v28 = vpop.f32.mrf.mxu1 }
 0x2aa   :  { %v2985_v62 = vadd.f32 %v2984_v39, %v5605_v48  ;;  %v3098_v1 = vadd.f32 %v3097_v28, %v5607_v25 }
 0x2ab   :  { %v2986_v45 = vpop.f32.mrf.mxu0  ;;  %v3099_v57 = vpop.f32.mrf.mxu1 }
 0x2ac   :  { %v3737_v23 = vpack.c.bf16 %v2985_v62, %v2983_v18  ;;  %v3738_v37 = vpack.c.bf16 %v3098_v1, %v3096_v2  ;;  %v2987_v51 = vadd.f32 %v2986_v45, %v5609_v42  ;;  %v3100_v36 = vadd.f32 %v3099_v57, %v5611_v15 }
 0x2ad   :  { %v2988_v46 = vpop.f32.mrf.mxu0  ;;  %v3101_v21 = vpop.f32.mrf.mxu1 }
 0x2ae   :  { %3366 = vst [vmem:[#allocation11] sm:$0xff] %v3737_v23  ;;  %3367 = vst [vmem:[#allocation11 + $0x8] sm:$0xff] %v3738_v37  ;;  %v2989_v59 = vadd.f32 %v2988_v46, %v5613_v54  ;;  %v3102_v60 = vadd.f32 %v3101_v21, %v5615_v52 }
 0x2af   :  { %v2992_v9 = vpop.f32.mrf.mxu0  ;;  %v3105_v48 = vpop.f32.mrf.mxu1 }
 0x2b0   :  { %v3739_v39 = vpack.c.bf16 %v2989_v59, %v2987_v51  ;;  %v3740_v25 = vpack.c.bf16 %v3102_v60, %v3100_v36  ;;  %v2993_v18 = vadd.f32 %v2992_v9, %v5617_v53  ;;  %v3106_v23 = vadd.f32 %v3105_v48, %v5619_v56 }
 0x2b1   :  { %v2994_v55 = vpop.f32.mrf.mxu0  ;;  %v3107_v28 = vpop.f32.mrf.mxu1 }
 0x2b2   :  { %3368 = vst [vmem:[#allocation11 + $0x10] sm:$0xff] %v3739_v39  ;;  %3369 = vst [vmem:[#allocation11 + $0x18] sm:$0xff] %v3740_v25  ;;  %v2995_v42 = vadd.f32 %v2994_v55, %v5621_v22  ;;  %v3108_v15 = vadd.f32 %v3107_v28, %v5623_v16 }
 0x2b3   :  { %v2996_v45 = vpop.f32.mrf.mxu0  ;;  %v3109_v54 = vpop.f32.mrf.mxu1 }
 0x2b4   :  { %v3741_v46 = vpack.c.bf16 %v2995_v42, %v2993_v18  ;;  %v3742_v52 = vpack.c.bf16 %v3108_v15, %v3106_v23  ;;  %v2997_v36 = vadd.f32 %v2996_v45, %v5625_v10  ;;  %v3110_v1 = vadd.f32 %v3109_v54, %v5627_v50 }
 0x2b5   :  { %v2998_v2 = vpop.f32.mrf.mxu0  ;;  %v3111_v62 = vpop.f32.mrf.mxu1 }
 0x2b6   :  { %3370 = vst [vmem:[#allocation11 + $0x20] sm:$0xff] %v3741_v46  ;;  %3371 = vst [vmem:[#allocation11 + $0x28] sm:$0xff] %v3742_v52  ;;  %v2999_v53 = vadd.f32 %v2998_v2, %v5629_v6  ;;  %v3112_v56 = vadd.f32 %v3111_v62, %v5631_v20 }
 0x2b7   :  { %v3002_v57 = vpop.f32.mrf.mxu0  ;;  %v3115_v22 = vpop.f32.mrf.mxu1 }
 0x2b8   :  { %v3743_v37 = vpack.c.bf16 %v2999_v53, %v2997_v36  ;;  %v3744_v16 = vpack.c.bf16 %v3112_v56, %v3110_v1  ;;  %v3003_v59 = vadd.f32 %v3002_v57, %v5633_v3  ;;  %v3116_v60 = vadd.f32 %v3115_v22, %v5635_v63 }
 0x2b9   :  { %v3004_v21 = vpop.f32.mrf.mxu0  ;;  %v3117_v51 = vpop.f32.mrf.mxu1 }
 0x2ba   :  { %3372 = vst [vmem:[#allocation11 + $0x30] sm:$0xff] %v3743_v37  ;;  %3373 = vst [vmem:[#allocation11 + $0x38] sm:$0xff] %v3744_v16  ;;  %v3005_v10 = vadd.f32 %v3004_v21, %v5637_v5  ;;  %v3118_v50 = vadd.f32 %v3117_v51, %v5639_v12 }
 0x2bb   :  { %v3006_v9 = vpop.f32.mrf.mxu0  ;;  %v3119_v6 = vpop.f32.mrf.mxu1 }
 0x2bc   :  { %v3745_v48 = vpack.c.bf16 %v3005_v10, %v3003_v59  ;;  %v3746_v20 = vpack.c.bf16 %v3118_v50, %v3116_v60  ;;  %v3007_v55 = vadd.f32 %v3006_v9, %v5641_v7  ;;  %v3120_v28 = vadd.f32 %v3119_v6, %v5643_v34 }
 0x2bd   :  { %v3008_v39 = vpop.f32.mrf.mxu0  ;;  %v3121_v25 = vpop.f32.mrf.mxu1 }
 0x2be   :  { %3374 = vst [vmem:[#allocation11 + $0x40] sm:$0xff] %v3745_v48  ;;  %3375 = vst [vmem:[#allocation11 + $0x48] sm:$0xff] %v3746_v20  ;;  %v3009_v3 = vadd.f32 %v3008_v39, %v5645_v27  ;;  %v3122_v63 = vadd.f32 %v3121_v25, %v5647_v31 }
 0x2bf   :  { %v3012_v18 = vpop.f32.mrf.mxu0  ;;  %v3125_v5 = vpop.f32.mrf.mxu1 }
 0x2c0   :  { %v3747_v23 = vpack.c.bf16 %v3009_v3, %v3007_v55  ;;  %v3748_v12 = vpack.c.bf16 %v3122_v63, %v3120_v28  ;;  %v3013_v45 = vadd.f32 %v3012_v18, %v5649_v14  ;;  %v3126_v54 = vadd.f32 %v3125_v5, %v5651_v33 }
 0x2c1   :  { %v3014_v42 = vpop.f32.mrf.mxu0  ;;  %v3127_v15 = vpop.f32.mrf.mxu1 }
 0x2c2   :  { %3376 = vst [vmem:[#allocation11 + $0x50] sm:$0xff] %v3747_v23  ;;  %3377 = vst [vmem:[#allocation11 + $0x58] sm:$0xff] %v3748_v12  ;;  %v3015_v7 = vadd.f32 %v3014_v42, %v5653_v49  ;;  %v3128_v34 = vadd.f32 %v3127_v15, %v5655_v41 }
 0x2c3   :  { %v3016_v46 = vpop.f32.mrf.mxu0  ;;  %v3129_v27 = vpop.f32.mrf.mxu1 }
 0x2c4   :  { %v3749_v52 = vpack.c.bf16 %v3015_v7, %v3013_v45  ;;  %v3750_v31 = vpack.c.bf16 %v3128_v34, %v3126_v54  ;;  %v3017_v36 = vadd.f32 %v3016_v46, %v5657_v8  ;;  %v3130_v1 = vadd.f32 %v3129_v27, %v5659_v38  ;;  %v6278_v45 = vld [vmem:[#allocation76_spill] sm:$0xff]  ;;  %v6279_v7 = vld [vmem:[#allocation74_spill] sm:$0xff]  ;;  %v6280_v46 = vld [vmem:[#allocation77_spill] sm:$0xff] }
 0x2c5   :  { %v3018_v2 = vpop.f32.mrf.mxu0  ;;  %v3131_v62 = vpop.f32.mrf.mxu1  ;;  %v6281_v27 = vld [vmem:[#allocation49_spill] sm:$0xff] }
 0x2c6   :  { %3378 = vst [vmem:[#allocation11 + $0x60] sm:$0xff] %v3749_v52  ;;  %3379 = vst [vmem:[#allocation11 + $0x68] sm:$0xff] %v3750_v31  ;;  %v3019_v14 = vadd.f32 %v3018_v2, %v5661_v26  ;;  %v3132_v33 = vadd.f32 %v3131_v62, %v5663_v47 }
 0x2c7   :  { %v3022_v53 = vpop.f32.mrf.mxu0  ;;  %v3135_v49 = vpop.f32.mrf.mxu1 }
 0x2c8   :  { %v3751_v56 = vpack.c.bf16 %v3019_v14, %v3017_v36  ;;  %v3752_v41 = vpack.c.bf16 %v3132_v33, %v3130_v1  ;;  %v3023_v37 = vadd.f32 %v3022_v53, %v5665_v61  ;;  %v3136_v16 = vadd.f32 %v3135_v49, %v5667_v29  ;;  %v6282_v36 = vld [vmem:[#allocation42_spill] sm:$0xff]  ;;  %v6283_v14 = vld [vmem:[#allocation21_spill] sm:$0xff]  ;;  %v6284_v53 = vld [vmem:[#allocation35_spill] sm:$0xff] }
 0x2c9   :  { %v3024_v57 = vpop.f32.mrf.mxu0  ;;  %v3137_v22 = vpop.f32.mrf.mxu1 }
 0x2ca   :  { %3380 = vst [vmem:[#allocation11 + $0x70] sm:$0xff] %v3751_v56  ;;  %3381 = vst [vmem:[#allocation11 + $0x78] sm:$0xff] %v3752_v41  ;;  %v3025_v8 = vadd.f32 %v3024_v57, %v5669_v19  ;;  %v3138_v38 = vadd.f32 %v3137_v22, %v5671_v35  ;;  %v6285_v56 = vld [vmem:[#allocation78_spill] sm:$0xff] }
 0x2cb   :  { %v3026_v21 = vpop.f32.mrf.mxu0  ;;  %v3139_v26 = vpop.f32.mrf.mxu1 }
 0x2cc   :  { %v3753_v51 = vpack.c.bf16 %v3025_v8, %v3023_v37  ;;  %v3754_v47 = vpack.c.bf16 %v3138_v38, %v3136_v16  ;;  %v3027_v10 = vadd.f32 %v3026_v21, %v5673_v44  ;;  %v3140_v50 = vadd.f32 %v3139_v26, %v5675_v24  ;;  %v6286_v21 = vld [vmem:[#allocation45_spill] sm:$0xff] }
 0x2cd   :  { %v3028_v59 = vpop.f32.mrf.mxu0  ;;  %v3141_v60 = vpop.f32.mrf.mxu1 }
 0x2ce   :  { %3382 = vst [vmem:[#allocation11 + $0x80] sm:$0xff] %v3753_v51  ;;  %3383 = vst [vmem:[#allocation11 + $0x88] sm:$0xff] %v3754_v47  ;;  %v3029_v61 = vadd.f32 %v3028_v59, %v5677_v0  ;;  %v3142_v29 = vadd.f32 %v3141_v60, %v5679_v32  ;;  %v6287_v51 = vld [vmem:[#allocation38_spill] sm:$0xff]  ;;  %v6288_v59 = vld [vmem:[#allocation24_spill] sm:$0xff] }
 0x2cf   :  { %v3032_v9 = vpop.f32.mrf.mxu0  ;;  %v3145_v19 = vpop.f32.mrf.mxu1 }
 0x2d0   :  { %v3755_v6 = vpack.c.bf16 %v3029_v61, %v3027_v10  ;;  %v3756_v35 = vpack.c.bf16 %v3142_v29, %v3140_v50  ;;  %v3033_v39 = vadd.f32 %v3032_v9, %v5681_v40  ;;  %v3146_v25 = vadd.f32 %v3145_v19, %v5683_v4  ;;  %v6289_v10 = vld [vmem:[#allocation79_spill] sm:$0xff] }
 0x2d1   :  { %v3034_v48 = vpop.f32.mrf.mxu0  ;;  %v3147_v20 = vpop.f32.mrf.mxu1 }
 0x2d2   :  { %3384 = vst [vmem:[#allocation11 + $0x90] sm:$0xff] %v3755_v6  ;;  %3385 = vst [vmem:[#allocation11 + $0x98] sm:$0xff] %v3756_v35  ;;  %v3035_v44 = vadd.f32 %v3034_v48, %v5685_v13  ;;  %v3148_v24 = vadd.f32 %v3147_v20, %v5687_v43  ;;  %v6290_v48 = vld [vmem:[#allocation54_spill] sm:$0xff] }
 0x2d3   :  { %v3036_v55 = vpop.f32.mrf.mxu0  ;;  %v3149_v0 = vpop.f32.mrf.mxu1 }
 0x2d4   :  { %v3757_v28 = vpack.c.bf16 %v3035_v44, %v3033_v39  ;;  %v3758_v32 = vpack.c.bf16 %v3148_v24, %v3146_v25  ;;  %v3037_v18 = vadd.f32 %v3036_v55, %v5689_v58  ;;  %v3150_v5 = vadd.f32 %v3149_v0, %v5691_v30  ;;  %v6291_v39 = vld [vmem:[#allocation31_spill] sm:$0xff]  ;;  %v6292_v44 = vld [vmem:[#allocation80_spill] sm:$0xff]  ;;  %v6293_v55 = vld [vmem:[#allocation50_spill] sm:$0xff] }
 0x2d5   :  { %v3038_v3 = vpop.f32.mrf.mxu0  ;;  %v3151_v63 = vpop.f32.mrf.mxu1 }
 0x2d6   :  { %3386 = vst [vmem:[#allocation11 + $0xa0] sm:$0xff] %v3757_v28  ;;  %3387 = vst [vmem:[#allocation11 + $0xa8] sm:$0xff] %v3758_v32  ;;  %v3039_v40 = vadd.f32 %v3038_v3, %v5693_v11  ;;  %v3152_v4 = vadd.f32 %v3151_v63, %v5695_v17 }
 0x2d7   :  { %v3042_v23 = vpop.f32.mrf.mxu0  ;;  %v3155_v13 = vpop.f32.mrf.mxu1 }
 0x2d8   :  { %v3759_v12 = vpack.c.bf16 %v3039_v40, %v3037_v18  ;;  %v3760_v43 = vpack.c.bf16 %v3152_v4, %v3150_v5  ;;  %v3043_v54 = vadd.f32 %v3042_v23, %v6278_v45  ;;  %v3156_v34 = vadd.f32 %v3155_v13, %v6279_v7 }
 0x2d9   :  { %v3044_v42 = vpop.f32.mrf.mxu0  ;;  %v3157_v15 = vpop.f32.mrf.mxu1 }
 0x2da   :  { %3388 = vst [vmem:[#allocation11 + $0xb0] sm:$0xff] %v3759_v12  ;;  %3389 = vst [vmem:[#allocation11 + $0xb8] sm:$0xff] %v3760_v43  ;;  %v3045_v58 = vadd.f32 %v3044_v42, %v6280_v46  ;;  %v3158_v30 = vadd.f32 %v3157_v15, %v6281_v27 }
 0x2db   :  { %v3046_v52 = vpop.f32.mrf.mxu0  ;;  %v3159_v11 = vpop.f32.mrf.mxu1 }
 0x2dc   :  { %v3761_v31 = vpack.c.bf16 %v3045_v58, %v3043_v54  ;;  %v3762_v17 = vpack.c.bf16 %v3158_v30, %v3156_v34  ;;  %v3047_v1 = vadd.f32 %v3046_v52, %v6282_v36  ;;  %v3160_v33 = vadd.f32 %v3159_v11, %v6283_v14 }
 0x2dd   :  { %v3048_v2 = vpop.f32.mrf.mxu0  ;;  %v3161_v62 = vpop.f32.mrf.mxu1 }
 0x2de   :  { %3390 = vst [vmem:[#allocation11 + $0xc0] sm:$0xff] %v3761_v31  ;;  %3391 = vst [vmem:[#allocation11 + $0xc8] sm:$0xff] %v3762_v17  ;;  %v3049_v49 = vadd.f32 %v3048_v2, %v6284_v53  ;;  %v3162_v41 = vadd.f32 %v3161_v62, %v6285_v56 }
 0x2df   :  { %v3052_v57 = vpop.f32.mrf.mxu0  ;;  %v3165_v22 = vpop.f32.mrf.mxu1 }
 0x2e0   :  { %v3763_v37 = vpack.c.bf16 %v3049_v49, %v3047_v1  ;;  %v3764_v16 = vpack.c.bf16 %v3162_v41, %v3160_v33  ;;  %v3053_v26 = vadd.f32 %v3052_v57, %v6286_v21  ;;  %v3166_v47 = vadd.f32 %v3165_v22, %v6287_v51 }
 0x2e1   :  { %v3054_v8 = vpop.f32.mrf.mxu0  ;;  %v3167_v38 = vpop.f32.mrf.mxu1 }
 0x2e2   :  { %3392 = vst [vmem:[#allocation11 + $0xd0] sm:$0xff] %v3763_v37  ;;  %3393 = vst [vmem:[#allocation11 + $0xd8] sm:$0xff] %v3764_v16  ;;  %v3055_v60 = vadd.f32 %v3054_v8, %v6288_v59  ;;  %v3168_v50 = vadd.f32 %v3167_v38, %v6289_v10 }
 0x2e3   :  { %v3056_v61 = vpop.f32.mrf.mxu0  ;;  %v3169_v29 = vpop.f32.mrf.mxu1 }
 0x2e4   :  { %v3765_v9 = vpack.c.bf16 %v3055_v60, %v3053_v26  ;;  %v3766_v19 = vpack.c.bf16 %v3168_v50, %v3166_v47  ;;  %v3057_v20 = vadd.f32 %v3056_v61, %v6290_v48  ;;  %v3170_v25 = vadd.f32 %v3169_v29, %v6291_v39 }
 0x2e5   :  { %v3058_v6 = vpop.f32.mrf.mxu0  ;;  %v3171_v35 = vpop.f32.mrf.mxu1 }
 0x2e6   :  { %3394 = vst [vmem:[#allocation11 + $0xe0] sm:$0xff] %v3765_v9  ;;  %3395 = vst [vmem:[#allocation11 + $0xe8] sm:$0xff] %v3766_v19  ;;  %v3059_v24 = vadd.f32 %v3058_v6, %v6292_v44  ;;  %v3172_v0 = vadd.f32 %v3171_v35, %v6293_v55 }
 0x2e8   :  { %v3767_v28 = vpack.c.bf16 %v3059_v24, %v3057_v20  ;;  %v3768_v32 = vpack.c.bf16 %v3172_v0, %v3170_v25 }
 0x2ea   :  { %3396 = vst [vmem:[#allocation11 + $0xf0] sm:$0xff] %v3767_v28  ;;  %3397 = vst [vmem:[#allocation11 + $0xf8] sm:$0xff] %v3768_v32 }
 0x2eb   :  { %4320 = shalt.err (!%p4317_p1)
}
 0x2ec   :  { %3409 = dma.vmem_to_hbm [thread:$0]  %s3404_s4, 4096, %s5804_s5, [#allocation4], %s4339_s23, %s4339_s23, %s4340_s24  }
 0x2ed   :  { %4335 = dma.done.wait [#allocation4], 4096  }
 0x2ee   :  { %4336 = vsyncadd [#allocation4], 4294963200 }
 0x2ef   :  { %3413 = vsyncpa [#allocation3], 1 }
 0x2f0   :  { %3414 = vsyncpa [#allocation6], 1 }
 0x2f1   :  { %3415 = vsyncpa [#allocation9], 1 }
 0x2f2   :  { %3416 = vsyncpa [#allocation4], 1 }

</bundles_post_ra>
